<compile_context>
chip_gen: v7x
topology: tpu7x:2x2x1
jax: 0.10.0
libtpu: 0.0.40
codegen_flags: <defaults>
</compile_context>

<pallas_src>
import jax
import jax.numpy as jnp
from jax import lax
from jax.experimental import pallas as pl
from jax.experimental.pallas import tpu as pltpu


def bottleneck_kernel(x_ref, w1_ref, w2_ref, w3_ref,
                      b1_ref, b2_ref, b3_ref,
                      o_ref, hpad_ref):
    # x_ref:    (1, H, W, Cin)        bf16 input tile (one batch element)
    # w*_ref:   bf16 weights with the BN scale already folded in
    # b*_ref:   (1, C) f32 folded BN biases
    # o_ref:    (1, H, W, Cout)       bf16 output tile
    # hpad_ref: (H+2, W+2, Cmid)      bf16 VMEM scratch (conv2 SAME-padded input)
    _, H, W, Cin = x_ref.shape
    Cmid = w2_ref.shape[1]
    Cout = w3_ref.shape[1]

    # ---- conv1 (1x1, BN scale folded) + bias + relu ------------------------
    x = x_ref[...].reshape(H * W, Cin)                       # bf16
    h1 = jnp.dot(x, w1_ref[...], preferred_element_type=jnp.float32)
    h1 = jnp.maximum(h1 + b1_ref[...], 0.0)                  # f32

    # ---- stage h1 into the zero-padded bf16 scratch ------------------------
    # Border rows/columns are conv2's SAME zero padding.  They are rewritten
    # every step (cheap) so the kernel stays correct when the parallel grid is
    # sharded across cores (each core's scratch starts uninitialized).
    zrow = jnp.zeros((1, W + 2, Cmid), jnp.bfloat16)
    zcol = jnp.zeros((H, 1, Cmid), jnp.bfloat16)
    hpad_ref[0:1, :, :] = zrow
    hpad_ref[H + 1:H + 2, :, :] = zrow
    hpad_ref[1:H + 1, 0:1, :] = zcol
    hpad_ref[1:H + 1, W + 1:W + 2, :] = zcol
    hpad_ref[1:H + 1, 1:W + 1, :] = h1.reshape(H, W, Cmid).astype(jnp.bfloat16)

    # ---- conv2 (3x3, stride 1, pad 1) + bias + relu as ONE im2col matmul ---
    # Tap order k = dy*3 + dx matches w2_ref rows ((dy*3 + dx)*Cmid + cin).
    taps = [hpad_ref[dy:dy + H, dx:dx + W, :]
            for dy in range(3) for dx in range(3)]            # bf16 already
    im2col = jnp.concatenate(taps, axis=-1).reshape(H * W, 9 * Cmid)
    h2 = jnp.dot(im2col, w2_ref[...], preferred_element_type=jnp.float32)
    h2 = jnp.maximum(h2 + b2_ref[...], 0.0)                   # f32

    # ---- conv3 (1x1) + bias + identity residual + relu ---------------------
    h3 = jnp.dot(h2.astype(jnp.bfloat16), w3_ref[...],
                 preferred_element_type=jnp.float32)
    h3 = h3 + b3_ref[...]
    res = x.astype(jnp.float32)                               # identity residual
    out = jnp.maximum(h3 + res, 0.0)
    o_ref[...] = out.reshape(1, H, W, Cout).astype(o_ref.dtype)


def bottleneck_pallas(x_nhwc, params):
    """x_nhwc: (N, H, W, Cin).  Returns (N, H, W, Cout) bf16."""
    N, H, W, Cin = x_nhwc.shape
    w1, w2_hwio, w3 = params["w1"], params["w2_hwio"], params["w3"]
    s1, b1, s2, b2, s3, b3 = (params[k] for k in
                              ("s1", "b1", "s2", "b2", "s3", "b3"))
    Cmid = w1.shape[1]
    Cout = w3.shape[1]

    # Identity residual path only (stride=1, downsample=None in this config).
    assert Cin == Cout, "identity residual requires inplanes == planes * expansion"

    # Fold the BN scale into the conv weights in f32, THEN cast to bf16
    # (avoids compounding bf16 rounding of weight*scale).
    w1_b = (w1 * s1).astype(jnp.bfloat16)                              # (Cin, Cmid)
    w2_b = (w2_hwio * s2[0]).reshape(9 * Cmid, Cmid).astype(jnp.bfloat16)  # (9*Cmid, Cmid)
    w3_b = (w3 * s3).astype(jnp.bfloat16)                              # (Cmid, Cout)

    # bf16 I/O at the HBM boundary; accumulation stays f32 inside the kernel.
    x_b = x_nhwc.astype(jnp.bfloat16)

    def const_spec(shape):
        return pl.BlockSpec(shape, lambda n: (0,) * len(shape))

    x_spec = pl.BlockSpec((1, H, W, Cin), lambda n: (n, 0, 0, 0))
    o_spec = pl.BlockSpec((1, H, W, Cout), lambda n: (n, 0, 0, 0))

    return pl.pallas_call(
        bottleneck_kernel,
        out_shape=jax.ShapeDtypeStruct((N, H, W, Cout), jnp.bfloat16),
        grid=(N,),
        in_specs=[
            x_spec,
            const_spec(w1_b.shape), const_spec(w2_b.shape), const_spec(w3_b.shape),
            const_spec(b1.shape), const_spec(b2.shape), const_spec(b3.shape),
        ],
        out_specs=o_spec,
        scratch_shapes=[pltpu.VMEM((H + 2, W + 2, Cmid), jnp.bfloat16)],
        compiler_params=pltpu.CompilerParams(
            dimension_semantics=("parallel",),
            vmem_limit_bytes=32 * 1024 * 1024),
    )(x_b, w1_b, w2_b, w3_b, b1, b2, b3)


# ------------------------------ reference (pure JAX) -------------------------
def bottleneck_ref(x_b, params):
    """Pure-JAX reference with the same numerics as the kernel: bf16 matmul/
    conv operands (BN scale folded into the weights), f32 accumulation and
    f32 elementwise; returns f32."""
    N, H, W, Cin = x_b.shape
    w1, w2_hwio, w3 = params["w1"], params["w2_hwio"], params["w3"]
    s1, b1, s2, b2, s3, b3 = (params[k] for k in
                              ("s1", "b1", "s2", "b2", "s3", "b3"))
    Cmid = w1.shape[1]
    Cout = w3.shape[1]

    w1_b = (w1 * s1).astype(jnp.bfloat16)
    w2_b = (w2_hwio * s2[0]).astype(jnp.bfloat16)
    w3_b = (w3 * s3).astype(jnp.bfloat16)

    h = jnp.dot(x_b.reshape(-1, Cin), w1_b,
                preferred_element_type=jnp.float32)
    h = jnp.maximum(h + b1, 0.0).reshape(N, H, W, Cmid)
    h = lax.conv_general_dilated(h.astype(jnp.bfloat16), w2_b,
                                 (1, 1), "SAME",
                                 dimension_numbers=("NHWC", "HWIO", "NHWC"),
                                 preferred_element_type=jnp.float32)
    h = jnp.maximum(h + b2[0], 0.0)
    h = jnp.dot(h.reshape(-1, Cmid).astype(jnp.bfloat16), w3_b,
                preferred_element_type=jnp.float32)
    h = (h + b3).reshape(N, H, W, Cout)
    return jnp.maximum(h + x_b.astype(jnp.float32), 0.0)


def fold_bn(gamma, beta, mean, var, eps=1e-5):
    scale = gamma / jnp.sqrt(var + eps)
    bias = beta - mean * scale
    return scale[None, :], bias[None, :]          # (1, C) for 2-D broadcast


if __name__ == "__main__":
    # Lane-dense channels (ResNet conv3_x bottleneck config: inplanes = 512,
    # planes = 128) at a small 16x16 spatial size; batch = 2 keeps >= 2
    # parallel grid steps for the v7x dual-TC case.
    N, H, W = 2, 16, 16
    planes = 128
    inplanes = planes * 4            # 512: Cin == Cout so identity residual is valid
    Cmid, Cout = planes, planes * 4

    key = jax.random.PRNGKey(0)
    ks = jax.random.split(key, 8)

    # Deterministic synthetic parameters (no checkpoint load).
    w1 = jax.random.normal(ks[0], (inplanes, Cmid), jnp.float32) * 0.1
    w2_hwio = jax.random.normal(ks[1], (3, 3, Cmid, Cmid), jnp.float32) * 0.1
    w3 = jax.random.normal(ks[2], (Cmid, Cout), jnp.float32) * 0.1

    def bn_params(k, c):
        k1, k2, k3, k4 = jax.random.split(k, 4)
        gamma = 1.0 + 0.1 * jax.random.normal(k1, (c,), jnp.float32)
        beta = 0.1 * jax.random.normal(k2, (c,), jnp.float32)
        mean = 0.1 * jax.random.normal(k3, (c,), jnp.float32)
        var = jnp.abs(1.0 + 0.1 * jax.random.normal(k4, (c,), jnp.float32))
        return gamma, beta, mean, var

    s1, b1 = fold_bn(*bn_params(ks[3], Cmid))
    s2, b2 = fold_bn(*bn_params(ks[4], Cmid))
    s3, b3 = fold_bn(*bn_params(ks[5], Cout))

    params = dict(w1=w1, w2_hwio=w2_hwio, w3=w3,
                  s1=s1, b1=b1, s2=s2, b2=b2, s3=s3, b3=b3)

    # PyTorch input is NCHW; build NCHW then transpose to the kernel's NHWC.
    x_nchw = jax.random.normal(ks[6], (N, inplanes, H, W), jnp.float32)
    x_nhwc = jnp.transpose(x_nchw, (0, 2, 3, 1))

    out = bottleneck_pallas(x_nhwc, params)
    out = jax.block_until_ready(out)
    assert out.shape == (N, H, W, Cout)
    assert out.dtype == jnp.bfloat16

    # Reference uses the same bf16 input / folded bf16 weights as the kernel.
    ref = bottleneck_ref(x_nhwc.astype(jnp.bfloat16), params)
    out_f32 = out.astype(jnp.float32)
    max_err = float(jnp.max(jnp.abs(out_f32 - ref)))
    denom = float(jnp.max(jnp.abs(ref))) + 1e-6
    assert jnp.allclose(out_f32, ref, rtol=2e-2, atol=2e-2), (max_err, max_err / denom)

    print("KERNEL_OK")
</pallas_src>

<mosaic_0001>
module attributes {stable_mosaic.version = 11 : i64} {
  func.func @bottleneck_kernel(%arg0: i32, %arg1: memref<1x16x16x512xbf16, #tpu.memory_space<vmem>>, %arg2: memref<512x128xbf16, #tpu.memory_space<vmem>>, %arg3: memref<1152x128xbf16, #tpu.memory_space<vmem>>, %arg4: memref<128x512xbf16, #tpu.memory_space<vmem>>, %arg5: memref<1x128xf32, #tpu.memory_space<vmem>>, %arg6: memref<1x128xf32, #tpu.memory_space<vmem>>, %arg7: memref<1x512xf32, #tpu.memory_space<vmem>>, %arg8: memref<1x16x16x512xbf16, #tpu.memory_space<vmem>>, %arg9: memref<18x18x128xbf16, #tpu.memory_space<vmem>>) attributes {dimension_semantics = [#tpu.dimension_semantics<parallel>], iteration_bounds = array<i64: 2>, scalar_prefetch = 0 : i64, scratch_operands = 1 : i64, tpu.core_type = #tpu.core_type<tc>, window_params = [{transform_indices = @transform_0, window_bounds = array<i64: 1, 16, 16, 512>}, {pipeline_mode = #tpu.pipeline_mode<synchronous>, transform_indices = @transform_1, window_bounds = array<i64: 512, 128>}, {pipeline_mode = #tpu.pipeline_mode<synchronous>, transform_indices = @transform_2, window_bounds = array<i64: 1152, 128>}, {pipeline_mode = #tpu.pipeline_mode<synchronous>, transform_indices = @transform_3, window_bounds = array<i64: 128, 512>}, {pipeline_mode = #tpu.pipeline_mode<synchronous>, transform_indices = @transform_4, window_bounds = array<i64: 1, 128>}, {pipeline_mode = #tpu.pipeline_mode<synchronous>, transform_indices = @transform_5, window_bounds = array<i64: 1, 128>}, {pipeline_mode = #tpu.pipeline_mode<synchronous>, transform_indices = @transform_6, window_bounds = array<i64: 1, 512>}, {transform_indices = @transform_7, window_bounds = array<i64: 1, 16, 16, 512>}]} {
    %c0 = arith.constant 0 : index
    %c0_0 = arith.constant 0 : index
    %c0_1 = arith.constant 0 : index
    %c0_2 = arith.constant 0 : index
    %0 = vector.load %arg1[%c0, %c0_0, %c0_1, %c0_2] : memref<1x16x16x512xbf16, #tpu.memory_space<vmem>>, vector<1x16x16x512xbf16>
    %1 = vector.shape_cast %0 : vector<1x16x16x512xbf16> to vector<256x512xbf16>
    %c0_3 = arith.constant 0 : index
    %c0_4 = arith.constant 0 : index
    %2 = vector.load %arg2[%c0_3, %c0_4] : memref<512x128xbf16, #tpu.memory_space<vmem>>, vector<512x128xbf16>
    %cst = arith.constant dense<0.000000e+00> : vector<256x128xf32>
    %3 = tpu.matmul %1, %2, %cst {dimension_numbers = #tpu.dot_dimension_numbers<[1], [0], [0], [1], [0, 0, 1, 1], [], []>} : vector<256x512xbf16>, vector<512x128xbf16>, vector<256x128xf32> -> vector<256x128xf32>
    %c0_5 = arith.constant 0 : index
    %c0_6 = arith.constant 0 : index
    %4 = vector.load %arg5[%c0_5, %c0_6] : memref<1x128xf32, #tpu.memory_space<vmem>>, vector<1x128xf32>
    %5 = vector.broadcast %4 : vector<1x128xf32> to vector<256x128xf32>
    %6 = arith.addf %3, %5 : vector<256x128xf32>
    %cst_7 = arith.constant 0.000000e+00 : f32
    %7 = vector.broadcast %cst_7 : f32 to vector<256x128xf32>
    %8 = arith.maximumf %6, %7 : vector<256x128xf32>
    %cst_8 = arith.constant 0.000000e+00 : bf16
    %9 = vector.broadcast %cst_8 : bf16 to vector<1x18x128xbf16>
    %cst_9 = arith.constant 0.000000e+00 : bf16
    %10 = vector.broadcast %cst_9 : bf16 to vector<16x1x128xbf16>
    %c0_10 = arith.constant 0 : index
    %c0_11 = arith.constant 0 : index
    %c0_12 = arith.constant 0 : index
    %11 = vector.load %arg9[%c0_10, %c0_11, %c0_12] : memref<18x18x128xbf16, #tpu.memory_space<vmem>>, vector<1x18x128xbf16>
    tpu.vector_store %arg9[%c0_10, %c0_11, %c0_12], %9 {strides = array<i32>} : memref<18x18x128xbf16, #tpu.memory_space<vmem>>, vector<1x18x128xbf16>,
    %c17 = arith.constant 17 : index
    %c0_13 = arith.constant 0 : index
    %c0_14 = arith.constant 0 : index
    %12 = vector.load %arg9[%c17, %c0_13, %c0_14] : memref<18x18x128xbf16, #tpu.memory_space<vmem>>, vector<1x18x128xbf16>
    tpu.vector_store %arg9[%c17, %c0_13, %c0_14], %9 {strides = array<i32>} : memref<18x18x128xbf16, #tpu.memory_space<vmem>>, vector<1x18x128xbf16>,
    %c1 = arith.constant 1 : index
    %c0_15 = arith.constant 0 : index
    %c0_16 = arith.constant 0 : index
    %13 = vector.load %arg9[%c1, %c0_15, %c0_16] : memref<18x18x128xbf16, #tpu.memory_space<vmem>>, vector<16x1x128xbf16>
    tpu.vector_store %arg9[%c1, %c0_15, %c0_16], %10 {strides = array<i32>} : memref<18x18x128xbf16, #tpu.memory_space<vmem>>, vector<16x1x128xbf16>,
    %c1_17 = arith.constant 1 : index
    %c17_18 = arith.constant 17 : index
    %c0_19 = arith.constant 0 : index
    %14 = vector.load %arg9[%c1_17, %c17_18, %c0_19] : memref<18x18x128xbf16, #tpu.memory_space<vmem>>, vector<16x1x128xbf16>
    tpu.vector_store %arg9[%c1_17, %c17_18, %c0_19], %10 {strides = array<i32>} : memref<18x18x128xbf16, #tpu.memory_space<vmem>>, vector<16x1x128xbf16>,
    %15 = vector.shape_cast %8 : vector<256x128xf32> to vector<16x16x128xf32>
    %16 = arith.truncf %15 : vector<16x16x128xf32> to vector<16x16x128xbf16>
    %c1_20 = arith.constant 1 : index
    %c1_21 = arith.constant 1 : index
    %c0_22 = arith.constant 0 : index
    %17 = vector.load %arg9[%c1_20, %c1_21, %c0_22] : memref<18x18x128xbf16, #tpu.memory_space<vmem>>, vector<16x16x128xbf16>
    tpu.vector_store %arg9[%c1_20, %c1_21, %c0_22], %16 {strides = array<i32>} : memref<18x18x128xbf16, #tpu.memory_space<vmem>>, vector<16x16x128xbf16>,
    %c0_23 = arith.constant 0 : index
    %c0_24 = arith.constant 0 : index
    %c0_25 = arith.constant 0 : index
    %18 = vector.load %arg9[%c0_23, %c0_24, %c0_25] : memref<18x18x128xbf16, #tpu.memory_space<vmem>>, vector<16x16x128xbf16>
    %c0_26 = arith.constant 0 : index
    %c1_27 = arith.constant 1 : index
    %c0_28 = arith.constant 0 : index
    %19 = vector.load %arg9[%c0_26, %c1_27, %c0_28] : memref<18x18x128xbf16, #tpu.memory_space<vmem>>, vector<16x16x128xbf16>
    %c0_29 = arith.constant 0 : index
    %c2 = arith.constant 2 : index
    %c0_30 = arith.constant 0 : index
    %20 = vector.load %arg9[%c0_29, %c2, %c0_30] : memref<18x18x128xbf16, #tpu.memory_space<vmem>>, vector<16x16x128xbf16>
    %c1_31 = arith.constant 1 : index
    %c0_32 = arith.constant 0 : index
    %c0_33 = arith.constant 0 : index
    %21 = vector.load %arg9[%c1_31, %c0_32, %c0_33] : memref<18x18x128xbf16, #tpu.memory_space<vmem>>, vector<16x16x128xbf16>
    %c1_34 = arith.constant 1 : index
    %c1_35 = arith.constant 1 : index
    %c0_36 = arith.constant 0 : index
    %22 = vector.load %arg9[%c1_34, %c1_35, %c0_36] : memref<18x18x128xbf16, #tpu.memory_space<vmem>>, vector<16x16x128xbf16>
    %c1_37 = arith.constant 1 : index
    %c2_38 = arith.constant 2 : index
    %c0_39 = arith.constant 0 : index
    %23 = vector.load %arg9[%c1_37, %c2_38, %c0_39] : memref<18x18x128xbf16, #tpu.memory_space<vmem>>, vector<16x16x128xbf16>
    %c2_40 = arith.constant 2 : index
    %c0_41 = arith.constant 0 : index
    %c0_42 = arith.constant 0 : index
    %24 = vector.load %arg9[%c2_40, %c0_41, %c0_42] : memref<18x18x128xbf16, #tpu.memory_space<vmem>>, vector<16x16x128xbf16>
    %c2_43 = arith.constant 2 : index
    %c1_44 = arith.constant 1 : index
    %c0_45 = arith.constant 0 : index
    %25 = vector.load %arg9[%c2_43, %c1_44, %c0_45] : memref<18x18x128xbf16, #tpu.memory_space<vmem>>, vector<16x16x128xbf16>
    %c2_46 = arith.constant 2 : index
    %c2_47 = arith.constant 2 : index
    %c0_48 = arith.constant 0 : index
    %26 = vector.load %arg9[%c2_46, %c2_47, %c0_48] : memref<18x18x128xbf16, #tpu.memory_space<vmem>>, vector<16x16x128xbf16>
    %27 = tpu.concatenate %18, %19, %20, %21, %22, %23, %24, %25, %26 in 2 : vector<16x16x128xbf16>, vector<16x16x128xbf16>, vector<16x16x128xbf16>, vector<16x16x128xbf16>, vector<16x16x128xbf16>, vector<16x16x128xbf16>, vector<16x16x128xbf16>, vector<16x16x128xbf16>, vector<16x16x128xbf16> -> vector<16x16x1152xbf16>
    %28 = vector.shape_cast %27 : vector<16x16x1152xbf16> to vector<256x1152xbf16>
    %c0_49 = arith.constant 0 : index
    %c0_50 = arith.constant 0 : index
    %29 = vector.load %arg3[%c0_49, %c0_50] : memref<1152x128xbf16, #tpu.memory_space<vmem>>, vector<1152x128xbf16>
    %cst_51 = arith.constant dense<0.000000e+00> : vector<256x128xf32>
    %30 = tpu.matmul %28, %29, %cst_51 {dimension_numbers = #tpu.dot_dimension_numbers<[1], [0], [0], [1], [0, 0, 1, 1], [], []>} : vector<256x1152xbf16>, vector<1152x128xbf16>, vector<256x128xf32> -> vector<256x128xf32>
    %c0_52 = arith.constant 0 : index
    %c0_53 = arith.constant 0 : index
    %31 = vector.load %arg6[%c0_52, %c0_53] : memref<1x128xf32, #tpu.memory_space<vmem>>, vector<1x128xf32>
    %32 = vector.broadcast %31 : vector<1x128xf32> to vector<256x128xf32>
    %33 = arith.addf %30, %32 : vector<256x128xf32>
    %cst_54 = arith.constant 0.000000e+00 : f32
    %34 = vector.broadcast %cst_54 : f32 to vector<256x128xf32>
    %35 = arith.maximumf %33, %34 : vector<256x128xf32>
    %36 = arith.truncf %35 : vector<256x128xf32> to vector<256x128xbf16>
    %c0_55 = arith.constant 0 : index
    %c0_56 = arith.constant 0 : index
    %37 = vector.load %arg4[%c0_55, %c0_56] : memref<128x512xbf16, #tpu.memory_space<vmem>>, vector<128x512xbf16>
    %cst_57 = arith.constant dense<0.000000e+00> : vector<256x512xf32>
    %38 = tpu.matmul %36, %37, %cst_57 {dimension_numbers = #tpu.dot_dimension_numbers<[1], [0], [0], [1], [0, 0, 1, 1], [], []>} : vector<256x128xbf16>, vector<128x512xbf16>, vector<256x512xf32> -> vector<256x512xf32>
    %c0_58 = arith.constant 0 : index
    %c0_59 = arith.constant 0 : index
    %39 = vector.load %arg7[%c0_58, %c0_59] : memref<1x512xf32, #tpu.memory_space<vmem>>, vector<1x512xf32>
    %40 = vector.broadcast %39 : vector<1x512xf32> to vector<256x512xf32>
    %41 = arith.addf %38, %40 : vector<256x512xf32>
    %42 = arith.extf %1 : vector<256x512xbf16> to vector<256x512xf32>
    %43 = arith.addf %41, %42 : vector<256x512xf32>
    %cst_60 = arith.constant 0.000000e+00 : f32
    %44 = vector.broadcast %cst_60 : f32 to vector<256x512xf32>
    %45 = arith.maximumf %43, %44 : vector<256x512xf32>
    %46 = vector.shape_cast %45 : vector<256x512xf32> to vector<1x16x16x512xf32>
    %47 = arith.truncf %46 : vector<1x16x16x512xf32> to vector<1x16x16x512xbf16>
    %c0_61 = arith.constant 0 : index
    %c0_62 = arith.constant 0 : index
    %c0_63 = arith.constant 0 : index
    %c0_64 = arith.constant 0 : index
    %48 = vector.load %arg8[%c0_61, %c0_62, %c0_63, %c0_64] : memref<1x16x16x512xbf16, #tpu.memory_space<vmem>>, vector<1x16x16x512xbf16>
    tpu.vector_store %arg8[%c0_61, %c0_62, %c0_63, %c0_64], %47 {strides = array<i32>} : memref<1x16x16x512xbf16, #tpu.memory_space<vmem>>, vector<1x16x16x512xbf16>,
    return
  }
  func.func @transform_0(%arg0: i32) -> (i32, i32, i32, i32) {
    %c0_i32 = arith.constant 0 : i32
    %c0_i32_0 = arith.constant 0 : i32
    %c0_i32_1 = arith.constant 0 : i32
    %c0_i32_2 = arith.constant 0 : i32
    return %arg0, %c0_i32, %c0_i32_0, %c0_i32_1 : i32, i32, i32, i32
  }
  func.func @transform_1(%arg0: i32) -> (i32, i32) {
    %c0_i32 = arith.constant 0 : i32
    %c0_i32_0 = arith.constant 0 : i32
    %c0_i32_1 = arith.constant 0 : i32
    return %c0_i32, %c0_i32_0 : i32, i32
  }
  func.func @transform_2(%arg0: i32) -> (i32, i32) {
    %c0_i32 = arith.constant 0 : i32
    %c0_i32_0 = arith.constant 0 : i32
    %c0_i32_1 = arith.constant 0 : i32
    return %c0_i32, %c0_i32_0 : i32, i32
  }
  func.func @transform_3(%arg0: i32) -> (i32, i32) {
    %c0_i32 = arith.constant 0 : i32
    %c0_i32_0 = arith.constant 0 : i32
    %c0_i32_1 = arith.constant 0 : i32
    return %c0_i32, %c0_i32_0 : i32, i32
  }
  func.func @transform_4(%arg0: i32) -> (i32, i32) {
    %c0_i32 = arith.constant 0 : i32
    %c0_i32_0 = arith.constant 0 : i32
    %c0_i32_1 = arith.constant 0 : i32
    return %c0_i32, %c0_i32_0 : i32, i32
  }
  func.func @transform_5(%arg0: i32) -> (i32, i32) {
    %c0_i32 = arith.constant 0 : i32
    %c0_i32_0 = arith.constant 0 : i32
    %c0_i32_1 = arith.constant 0 : i32
    return %c0_i32, %c0_i32_0 : i32, i32
  }
  func.func @transform_6(%arg0: i32) -> (i32, i32) {
    %c0_i32 = arith.constant 0 : i32
    %c0_i32_0 = arith.constant 0 : i32
    %c0_i32_1 = arith.constant 0 : i32
    return %c0_i32, %c0_i32_0 : i32, i32
  }
  func.func @transform_7(%arg0: i32) -> (i32, i32, i32, i32) {
    %c0_i32 = arith.constant 0 : i32
    %c0_i32_0 = arith.constant 0 : i32
    %c0_i32_1 = arith.constant 0 : i32
    %c0_i32_2 = arith.constant 0 : i32
    return %arg0, %c0_i32, %c0_i32_0, %c0_i32_1 : i32, i32, i32, i32
  }
}

</mosaic_0001>

<bundles_post_ra>
// kernel: tpu_custom_call.1
= control target key start
LH: loop header
LB: loop body
LE: loop exit
PB: predicated region body
PF: predicated region fallthrough
CT: control target
= control target key end

     0   :  { %12 = vsyncpa [#allocation4], 0  ;;  %s11068_s0 = inlined_call_operand.hbm [shape: bf16[2,16,16,512], index: 0, kind: input, shape index: {}]   ;;  %s11069_s1 = inlined_call_operand.hbm [shape: bf16[512,128], index: 1, kind: input, shape index: {}]   ;;  %s11070_s2 = inlined_call_operand.hbm [shape: bf16[1152,128], index: 2, kind: input, shape index: {}]   ;;  %s11071_s3 = inlined_call_operand.hbm [shape: bf16[128,512], index: 3, kind: input, shape index: {}]   ;;  %s11072_s4 = inlined_call_operand.vmem [shape: f32[1,128], index: 4, kind: input, shape index: {}]   ;;  %s11073_s5 = inlined_call_operand.vmem [shape: f32[1,128], index: 5, kind: input, shape index: {}]   ;;  %s11074_s6 = inlined_call_operand.vmem [shape: f32[1,512], index: 6, kind: input, shape index: {}]   ;;  %s11075_s7 = inlined_call_operand.hbm [shape: bf16[2,16,16,512], index: 7, kind: output, shape index: {}]  }
   0x1   :  { %14 = vsyncpa [#allocation4 + $0x1], 0 }
   0x2   :  { %15 = vsyncpa [#allocation7], 0 }
   0x3   :  { %16 = vsyncpa [#allocation10], 0 }
   0x4   :  { %17 = vsyncpa [#allocation5], 0 }
   0x5   :  { %19 = vsyncpa [#allocation5 + $0x1], 0  ;;  %s8647_s24 = smov 0   ;;  %s8649_s25 = smov 0  }
   0x6   :  { %s8651_s26 = smov 0   ;;  %s8653_s27 = smov 0  }
   0x7 LB: > { %s8668_s28 = sadd.s32 4294967295, %s8593_s27   ;;  %s6555_s29 = sadd.s32 4294967294, %s8593_s27   ;;  %s8593_s27 = sphi %s8653_s27, %s11184_s27   ;;  %s8589_s26 = sphi %s8651_s26, %s11183_s26   ;;  %s8585_s25 = sphi %s8649_s25, %s11182_s25   ;;  %s8581_s24 = sphi %s8647_s24, %s11181_s24  }
   0x8   : > { %p45_p0 = scmp.ne.s32.totalorder %s8585_s25, %s8581_s24  ;;  %p11076_p1 = scmp.eq.s32.totalorder %s8668_s28, 0 }
   0x9   : > { %p201_p3 = scmp.eq.s32.totalorder %s6555_s29, 1  ;;  %p6556_p5 = scmp.ge.s32.totalorder %s8593_s27, 1 }
   0xa   : > { %p8677_p4 = por %p11076_p1, %p45_p0  ;;  %p208_p7 = scmp.lt.s32.totalorder %s8593_s27, 3 }
   0xb   : > { %p8682_p6 = por %p201_p3, %p45_p0  ;;  %s8595_s10 = smov [#allocation6]  }
   0xc   : > { %s11082_s30 = scalar_select %p8677_p4, 1, 0 }
   0xd   : > { %s11083_s8 = scalar_select %p8682_p6, 1, 0 }
   0xe   : > { %p8687_p8 = pnand %p6556_p5, %p208_p7  ;;  %s220_s11 = sshll.u32 %s8595_s10, 4  ;;  %s8691_s11 = int_to_ptr.vmem [resolvable:$true] %s220_s11 }
   0xf   : > { %11084 = sst [smem:[#allocation16_spill]] %s11083_s8  ;;  %s8596_s13 = smov [#allocation8]  }
  0x10   : > { %s11085_s9 = scalar_select %p8687_p8, 1, 0 }
  0x11   : > { %p7891_p9 = pneg %p8687_p8  ;;  %s233_s14 = sshll.u32 %s8596_s13, 4  ;;  %s8702_s14 = int_to_ptr.vmem [resolvable:$true] %s233_s14 }
  0x12   : > { %s8597_s15 = smov [#allocation9]   ;;  %s8405_s19 = scalar_lea.hbm %s11069_s1, 4096 }
  0x13   : > { %p8698_p11 = pnand %p7891_p9, %p11076_p1  ;;  %s8704_s16 = sshll.u32 %s8597_s15, 4  ;;  %s247_s16 = int_to_ptr.vmem [resolvable:$true] %s8704_s16 }
  0x14   : > { %p8406_p12 = scmp.ne.s32.totalorder %s11069_s1, %s8405_s19  ;;  %p8412_p5 = scmp.lt.u32.totalorder %s8405_s19, %s11069_s1 }
  0x15   : > { %p8714_p13 = pneg %p8698_p11 }
  0x17   : > { %p8408_p0 = pnand %p8714_p13, %p8406_p12 }
  0x19   : > { %p8409_p3 = pneg %p8408_p0 }
  0x1b   : > { %p8414_p7 = pnand %p8412_p5, %p8409_p3 }
  0x1d   : > { %8417 = shalt.err (!%p8414_p7)
}
  0x1e   : > { %s8418_s10 = scalar_lea.vmem %s8691_s11, 4096  ;;  %p8426_p2 = scmp.lt.s32.totalorder %s8691_s11, %s8691_s11 }
  0x1f   : > { %p8419_p9 = scmp.ne.s32.totalorder %s8691_s11, %s8418_s10  ;;  %p8427_p6 = scmp.lt.s32.totalorder %s8418_s10, %s8418_s10 }
  0x21   : > { %p8421_p10 = pnand %p8419_p9, %p8714_p13  ;;  %p8428_p12 = por %p8427_p6, %p8426_p2 }
  0x23   : > { %p8422_p1 = pneg %p8421_p10 }
  0x25   : > { %p8429_p0 = pnand %p8428_p12, %p8422_p1 }
  0x27   : > { %8432 = shalt.err (!%p8429_p0)
}
  0x28   : > { %s8598_s13 = smov 64   ;;  %s8599_s15 = smov 4  }
  0x29   : > { %7894 = dma.hbm_to_vmem [thread:$0]  (!%p8698_p11), %s11069_s1, 4096, %s8691_s11, [#allocation7], %s8598_s13, %s8598_s13, %s8599_s15  }
  0x2a   : > { %s8433_s21 = scalar_lea.hbm %s11070_s2, 9216 }
  0x2b   : > { %p8434_p2 = scmp.ne.s32.totalorder %s11070_s2, %s8433_s21  ;;  %p8440_p10 = scmp.lt.u32.totalorder %s8433_s21, %s11070_s2 }
  0x2d   : > { %p8436_p1 = pnand %p8434_p2, %p8714_p13 }
  0x2f   : > { %p8437_p6 = pneg %p8436_p1 }
  0x31   : > { %p8442_p3 = pnand %p8440_p10, %p8437_p6 }
  0x33   : > { %8445 = shalt.err (!%p8442_p3)
}
  0x34   : > { %s8446_s11 = scalar_lea.vmem %s8702_s14, 9216  ;;  %p8454_p12 = scmp.lt.s32.totalorder %s8702_s14, %s8702_s14 }
  0x35   : > { %p8447_p5 = scmp.ne.s32.totalorder %s8702_s14, %s8446_s11  ;;  %p8455_p0 = scmp.lt.s32.totalorder %s8446_s11, %s8446_s11 }
  0x37   : > { %p8449_p7 = pnand %p8447_p5, %p8714_p13  ;;  %p8456_p2 = por %p8455_p0, %p8454_p12 }
  0x39   : > { %p8450_p9 = pneg %p8449_p7 }
  0x3b   : > { %p8457_p1 = pnand %p8456_p2, %p8450_p9 }
  0x3d   : > { %8460 = shalt.err (!%p8457_p1)
}
  0x3e   : > { %7897 = dma.hbm_to_vmem [thread:$0]  (!%p8698_p11), %s11070_s2, 9216, %s8702_s14, [#allocation7], %s8598_s13, %s8598_s13, %s8599_s15  }
  0x3f   : > { %s8461_s20 = scalar_lea.hbm %s11071_s3, 4096 }
  0x40   : > { %p8462_p6 = scmp.ne.s32.totalorder %s11071_s3, %s8461_s20  ;;  %p8468_p5 = scmp.lt.u32.totalorder %s8461_s20, %s11071_s3 }
  0x42   : > { %p8464_p10 = pnand %p8462_p6, %p8714_p13 }
  0x44   : > { %p8465_p3 = pneg %p8464_p10 }
  0x46   : > { %p8470_p7 = pnand %p8468_p5, %p8465_p3 }
  0x48   : > { %8473 = shalt.err (!%p8470_p7)
}
  0x49   : > { %s8474_s11 = scalar_lea.vmem %s247_s16, 4096  ;;  %p8482_p2 = scmp.lt.s32.totalorder %s247_s16, %s247_s16 }
  0x4a   : > { %p8475_p9 = scmp.ne.s32.totalorder %s247_s16, %s8474_s11  ;;  %p8483_p1 = scmp.lt.s32.totalorder %s8474_s11, %s8474_s11 }
  0x4c   : > { %p8477_p12 = pnand %p8475_p9, %p8714_p13  ;;  %p8484_p4 = por %p8483_p1, %p8482_p2 }
  0x4e   : > { %p8478_p0 = pneg %p8477_p12 }
  0x50   : > { %p8485_p8 = pnand %p8484_p4, %p8478_p0 }
  0x52   : > { %8488 = shalt.err (!%p8485_p8)
}
  0x53   : > { %s8600_s14 = smov 256   ;;  %s8601_s22 = smov 16  }
  0x54   : > { %7900 = dma.hbm_to_vmem [thread:$0]  (!%p8698_p11), %s11071_s3, 4096, %s247_s16, [#allocation10], %s8600_s14, %s8600_s14, %s8601_s22  }
  0x55   : > { %s8781_s8 = sadd.s32 1, %s8593_s27   ;;  %s32_s18 = sadd.s32 1, %s8589_s26 }
  0x56   : > { %s29_s17 = ssub.s32 %s8593_s27, %s8781_s8  ;;  %p39_p8 = scmp.ne.s32.totalorder %s8589_s26, %s8585_s25 }
  0x57   : > { %p30_p4 = scmp.eq.s32.totalorder %s29_s17, 0  ;;  %p40_p13 = scmp.eq.s32.totalorder %s8593_s27, 0 }
  0x58   : > { %p7912_p6 = scmp.lt.s32.totalorder %s8593_s27, 2  ;;  %p11088_p3 = scmp.eq.s32.totalorder %s8668_s28, 1 }
  0x59   : > { %s8791_s19 = scalar_select %p30_p4, %s8589_s26, %s32_s18  }
  0x5a   : > { %p41_p10 = por %p40_p13, %p39_p8  ;;  %p8795_p5 = por %p11088_p3, %p39_p8 }
  0x5b   : > { %s269_s20 = sand.u32 1, %s8589_s26   ;;  %s7017_s21 = sshll.u32 %s8593_s27, 13 }
  0x5c   : > { %s6561_s16 = sshll.u32 %s269_s20, 9  ;;  %s8804_s10 = scalar_lea.hbm %s11068_s0, %s7017_s21 }
  0x5d   : > { %s273_s11 = scalar_lea.vmem [#allocation3], %s6561_s16  ;;  %p8806_p11 = pnand %p7912_p6, %p41_p10 }
  0x5e   : > { %s280_s13 = sshll.u32 %s273_s11, 4  ;;  %s8812_s17 = scalar_lea.sflag [#allocation4], %s269_s20  ;;  %s8810_s13 = int_to_ptr.vmem [resolvable:$true] %s280_s13 }
  0x5f   : > { %s8489_s18 = scalar_lea.hbm %s8804_s10, 8192  ;;  %p8491_p9 = pneg %p8806_p11 }
  0x60   : > { %p8490_p7 = scmp.ne.s32.totalorder %s8804_s10, %s8489_s18  ;;  %s8494_s23 = scalar_lea.hbm %s11068_s0, 16384 }
  0x61   : > { %p8495_p2 = scmp.lt.u32.totalorder %s8804_s10, %s11068_s0  ;;  %p8496_p1 = scmp.lt.u32.totalorder %s8494_s23, %s8489_s18 }
  0x62   : > { %p8492_p12 = pnand %p8491_p9, %p8490_p7  ;;  %p8498_p8 = scmp.lt.u32.totalorder %s8489_s18, %s8804_s10 }
  0x63   : > { %p8497_p4 = por %p8496_p1, %p8495_p2 }
  0x64   : > { %p8493_p0 = pneg %p8492_p12 }
  0x65   : > { %p8499_p13 = por %p8498_p8, %p8497_p4 }
  0x67   : > { %p8500_p6 = pnand %p8499_p13, %p8493_p0 }
  0x69   : > { %8503 = shalt.err (!%p8500_p6)
}
  0x6a   : > { %s8504_s20 = scalar_lea.vmem %s8810_s13, 8192  ;;  %s8602_s21 = smov [#allocation3]  }
  0x6b   : > { %p8505_p10 = scmp.ne.s32.totalorder %s8810_s13, %s8504_s20  ;;  %s8509_s16 = sshll.u32 %s8602_s21, 4  ;;  %s8510_s16 = int_to_ptr.vmem [resolvable:$false] %s8509_s16 }
  0x6c   : > { %s8511_s29 = scalar_lea.vmem %s8510_s16, 16384  ;;  %p8512_p12 = scmp.lt.s32.totalorder %s8810_s13, %s8510_s16 }
  0x6d   : > { %p8507_p3 = pnand %p8505_p10, %p8491_p9  ;;  %p8513_p2 = scmp.lt.s32.totalorder %s8511_s29, %s8504_s20 }
  0x6f   : > { %p8508_p7 = pneg %p8507_p3  ;;  %p8514_p1 = por %p8513_p2, %p8512_p12 }
  0x71   : > { %p8515_p4 = pnand %p8514_p1, %p8508_p7 }
  0x73   : > { %8518 = shalt.err (!%p8515_p4)
}
  0x74   : > { %7904 = dma.hbm_to_vmem [thread:$0]  (!%p8806_p11), %s8804_s10, 8192, %s8810_s13, %s8812_s17, %s8600_s14, %s8600_s14, %s8601_s22  }
  0x75   : > { %p11091_p9 = scmp.ne.s32.totalorder %s11085_s9, 0 }
  0x76   : > { %s8846_s18 = sand.u32 (!%p11091_p9), 1, %s8585_s25   ;;  %p11092_p0 = scmp.ne.s32.totalorder (!%p11091_p9), %s11082_s30, 0 }
  0x77   : > { %292 = sbr.rel (%p11091_p9) target bundleno = 1313 (0x521), region = 48  ;;  %s6565_s23 = sshll.u32 (!%p11091_p9), %s8846_s18, 9 }
  0x78   : > { %s295_s11 = scalar_lea.sflag (!%p11091_p9), [#allocation4], %s8846_s18  ;;  %s8852_s15 = scalar_lea.vmem (!%p11091_p9), [#allocation3], %s6565_s23 }
  0x7e   : > { %8564 = dma.done.wait (%p11092_p0), %s295_s11, 8192  }
  0x7f   : > { %8566 = vsyncadd (%p11092_p0), %s295_s11, 4294959104  ;;  %p11093_p11 = scmp.eq.s32.totalorder %s8668_s28, 0 }
  0x81   : > { %8568 = dma.done.wait (%p11093_p11), [#allocation7], 13312   ;;  %p11094_p8 = pmov %p11093_p11 }
  0x83   : > { %8570 = vsyncadd (%p11094_p8), [#allocation7], 4294953984  ;;  %p11095_p13 = pmov %p11094_p8 }
  0x84   : > { %p11096_p6 = pmov %p11094_p8 }
  0x85   : > { %8572 = dma.done.wait (%p11095_p13), [#allocation10], 4096  }
  0x86   : > { %8574 = vsyncadd (%p11096_p6), [#allocation10], 4294963200  ;;  %v7959_v0 = vld [vmem:[#allocation6 + $0x40] sm:$0xff]   ;;  %v7961_v2 = vld [vmem:[#allocation6 + $0x48] sm:$0xff]   ;;  %vm1351_vm0 = vcmask 1040384   ;;  %vm2578_vm6 = vcmask 1046528  }
  0x87   : > { %v7960_v1 = vld [vmem:[#allocation6] sm:$0xff]   ;;  %7859 = vmatprep.subr.bf16.mxu1 %v7959_v0  ;;  %7115 = vmatprep.subr.bf16.mxu0 %v7959_v0  ;;  %v7962_v3 = vld [vmem:[#allocation6 + $0x8] sm:$0xff]   ;;  %v7963_v4 = vld [vmem:[#allocation6 + $0x50] sm:$0xff]   ;;  %vm1352_vm1 = vsmask.f32 256  ;;  %vm1870_vm7 = vcmask 1043456  }
  0x88   : > { %7867 = vmatpush3.bf16.msra.mxu1 %v7960_v1  ;;  %7116 = vmatpush3.bf16.msra.mxu0 %v7960_v1  ;;  %v7964_v5 = vld [vmem:[#allocation6 + $0x10] sm:$0xff]   ;;  %v7965_v6 = vld [vmem:[#allocation6 + $0x58] sm:$0xff]   ;;  %v7967_v8 = vld [vmem:[#allocation6 + $0x60] sm:$0xff]   ;;  %vm1402_vm3 = vsmask.f32 7938  ;;  %s10469_s29 = scalar_lea.vmem [#allocation11], %s6565_s23 }
  0x89   : > { %7860 = vmatprep.subr.bf16.mxu1 %v7961_v2  ;;  %7117 = vmatprep.subr.bf16.mxu0 %v7961_v2  ;;  %v7966_v7 = vld [vmem:[#allocation6 + $0x18] sm:$0xff]   ;;  %v7968_v9 = vld [vmem:[#allocation6 + $0x20] sm:$0xff]   ;;  %v7969_v10 = vld [vmem:[#allocation6 + $0x68] sm:$0xff]   ;;  %vm2321_vm5 = vsmask.f32 7424  ;;  %s7114_s23 = sshll.u32 %s8668_s28, 13 }
  0x8a   : > { %v390_v11 = vld [vmem:[%s8852_s15 + $0x180] sm:$0xff]  ;;  %v392_v12 = vld [vmem:[%s8852_s15 + $0x190] sm:$0xff]  ;;  %v7970_v14 = vld [vmem:[#allocation6 + $0x28] sm:$0xff]   ;;  %vm1548_vm8 = vsmask.f32 4368  ;;  %s6453_s11 = sshll.u32 %s10469_s29, 4  ;;  %s11018_s9 = scalar_lea.hbm %s11075_s7, %s7114_s23  ;;  %s11020_s11 = int_to_ptr.vmem [resolvable:$true] %s6453_s11 }
  0x8b   : > { %v6620_v13 = vcombine.high %v390_v11, %v392_v12  ;;  %v7971_v15 = vld [vmem:[#allocation6 + $0x70] sm:$0xff]   ;;  %v7973_v17 = vld [vmem:[#allocation6 + $0x78] sm:$0xff]   ;;  %v7977_v19 = vld [vmem:[#allocation6 + $0xc0] sm:$0xff]   ;;  %v6619_v22 = vcombine.low %v390_v11, %v392_v12  ;;  %s6440_s28 = scalar_lea.sflag [#allocation5], %s8846_s18  ;;  %s8519_s14 = scalar_lea.vmem %s11020_s11, 8192 }
  0x8c   : > { %7868 = vmatpush3.bf16.msra.mxu1 %v7962_v3  ;;  %7118 = vmatpush3.bf16.msra.mxu0 %v7962_v3  ;;  %v7972_v16 = vld [vmem:[#allocation6 + $0x30] sm:$0xff]   ;;  %v7974_v18 = vld [vmem:[#allocation6 + $0x38] sm:$0xff]   ;;  %v394_v20 = vld [vmem:[%s8852_s15 + $0x1a0] sm:$0xff]  ;;  %p8520_p10 = scmp.ne.s32.totalorder %s11020_s11, %s8519_s14  ;;  %s8604_s22 = smov [#allocation11]  }
  0x8d   : > { %7861 = vmatprep.subr.bf16.mxu1 %v7963_v4  ;;  %7119 = vmatprep.subr.bf16.mxu0 %v7963_v4  ;;  %v396_v21 = vld [vmem:[%s8852_s15 + $0x1b0] sm:$0xff]  ;;  %v7978_v23 = vld [vmem:[#allocation6 + $0x80] sm:$0xff]   ;;  %v7979_v25 = vld [vmem:[#allocation6 + $0xc8] sm:$0xff]   ;;  %s8523_s10 = sshll.u32 %s8604_s22, 4  ;;  %s8524_s10 = int_to_ptr.vmem [resolvable:$false] %s8523_s10 }
  0x8e   : > { %1117 = vmatprep.mubr.bf16.mxu1 %v6620_v13  ;;  %v6624_v24 = vcombine.high %v394_v20, %v396_v21  ;;  %v342_v26 = vld [vmem:[%s8852_s15] sm:$0xff]  ;;  %v344_v27 = vld [vmem:[%s8852_s15 + $0x10] sm:$0xff]  ;;  %v7980_v30 = vld [vmem:[#allocation6 + $0x88] sm:$0xff]   ;;  %v6623_v37 = vcombine.low %v394_v20, %v396_v21  ;;  %p8521_p3 = pnand %p8520_p10, %p8795_p5  ;;  %s8525_s13 = scalar_lea.vmem %s8524_s10, 16384 }
  0x8f   : > { %v6572_v28 = vcombine.high %v342_v26, %v344_v27  ;;  %v6571_v29 = vcombine.low %v342_v26, %v344_v27  ;;  %v7983_v31 = vld [vmem:[#allocation6 + $0xd0] sm:$0xff]   ;;  %v398_v32 = vld [vmem:[%s8852_s15 + $0x1c0] sm:$0xff]  ;;  %v7985_v42 = vld [vmem:[#allocation6 + $0xd8] sm:$0xff]   ;;  %p8526_p12 = scmp.lt.s32.totalorder %s11020_s11, %s8524_s10  ;;  %p8527_p2 = scmp.lt.s32.totalorder %s8525_s13, %s8519_s14 }
  0x90   : > { %7869 = vmatpush3.bf16.msra.mxu1 %v7964_v5  ;;  %7120 = vmatpush3.bf16.msra.mxu0 %v7964_v5  ;;  %v400_v33 = vld [vmem:[%s8852_s15 + $0x1d0] sm:$0xff]  ;;  %v346_v34 = vld [vmem:[%s8852_s15 + $0x20] sm:$0xff]  ;;  %v7986_v45 = vld [vmem:[#allocation6 + $0x98] sm:$0xff]   ;;  %p8522_p7 = pneg %p8521_p3 }
  0x91   : > { %7862 = vmatprep.subr.bf16.mxu1 %v7965_v6  ;;  %7121 = vmatprep.subr.bf16.mxu0 %v7965_v6  ;;  %v348_v35 = vld [vmem:[%s8852_s15 + $0x30] sm:$0xff]  ;;  %v6628_v39 = vcombine.high %v398_v32, %v400_v33  ;;  %v350_v40 = vld [vmem:[%s8852_s15 + $0x40] sm:$0xff]  ;;  %v6627_v49 = vcombine.low %v398_v32, %v400_v33  ;;  %v7991_v54 = vld [vmem:[#allocation6 + $0xe8] sm:$0xff]   ;;  %p8528_p1 = por %p8527_p2, %p8526_p12 }
  0x92   : > { %1021 = vmatprep.mubr.bf16.mxu0 %v6572_v28  ;;  %v6576_v36 = vcombine.high %v346_v34, %v348_v35  ;;  %v7984_v38 = vld [vmem:[#allocation6 + $0x90] sm:$0xff]   ;;  %v6575_v43 = vcombine.low %v346_v34, %v348_v35  ;;  %v7989_v46 = vld [vmem:[#allocation6 + $0xe0] sm:$0xff]   ;;  %v7992_v57 = vld [vmem:[#allocation6 + $0xa8] sm:$0xff]  }
  0x93   : > { %v352_v41 = vld [vmem:[%s8852_s15 + $0x50] sm:$0xff]  ;;  %v402_v47 = vld [vmem:[%s8852_s15 + $0x1e0] sm:$0xff]  ;;  %v343_v59 = vld [vmem:[%s8852_s15 + $0x8] sm:$0xff]  ;;  %p8529_p4 = pnand %p8528_p1, %p8522_p7 }
  0x94   : > { %7870 = vmatpush3.bf16.msra.mxu1 %v7966_v7  ;;  %7122 = vmatpush3.bf16.msra.mxu0 %v7966_v7  ;;  %v6580_v44 = vcombine.high %v350_v40, %v352_v41  ;;  %v404_v48 = vld [vmem:[%s8852_s15 + $0x1f0] sm:$0xff]  ;;  %v7990_v50 = vld [vmem:[#allocation6 + $0xa0] sm:$0xff]   ;;  %v6579_v55 = vcombine.low %v350_v40, %v352_v41  ;;  %v345_v60 = vld [vmem:[%s8852_s15 + $0x18] sm:$0xff] }
  0x95   : > { %7863 = vmatprep.subr.bf16.mxu1 %v7967_v8  ;;  %7123 = vmatprep.subr.bf16.mxu0 %v7967_v8  ;;  %v6632_v51 = vcombine.high %v402_v47, %v404_v48  ;;  %v354_v52 = vld [vmem:[%s8852_s15 + $0x60] sm:$0xff]  ;;  %v356_v53 = vld [vmem:[%s8852_s15 + $0x70] sm:$0xff]  ;;  %v6631_v0 = vcombine.low %v402_v47, %v404_v48  ;;  %v7999_v1 = vld [vmem:[#allocation6 + $0xf8] sm:$0xff]   ;;  %v6574_v2 = vcombine.high %v343_v59, %v345_v60 }
  0x96   : > { %v6584_v56 = vcombine.high %v354_v52, %v356_v53  ;;  %v7995_v58 = vld [vmem:[#allocation6 + $0xf0] sm:$0xff]   ;;  %v358_v62 = vld [vmem:[%s8852_s15 + $0x80] sm:$0xff]  ;;  %v6583_v3 = vcombine.low %v354_v52, %v356_v53  ;;  %v8000_v4 = vld [vmem:[#allocation6 + $0xb8] sm:$0xff]  }
  0x97   : > { %v7996_v61 = vld [vmem:[#allocation6 + $0xb0] sm:$0xff]   ;;  %v8055_v6 = vld [vmem:[#allocation8 + $0x40] sm:$0xff]   ;;  %v347_v8 = vld [vmem:[%s8852_s15 + $0x28] sm:$0xff] }
  0x98   : > { %7871 = vmatpush3.bf16.msra.mxu1 %v7968_v9  ;;  %7124 = vmatpush3.bf16.msra.mxu0 %v7968_v9  ;;  %v360_v63 = vld [vmem:[%s8852_s15 + $0x90] sm:$0xff]  ;;  %v8056_v7 = vld [vmem:[#allocation8] sm:$0xff]   ;;  %v349_v9 = vld [vmem:[%s8852_s15 + $0x38] sm:$0xff] }
  0x99   : > { %7864 = vmatprep.subr.bf16.mxu1 %v7969_v10  ;;  %7125 = vmatprep.subr.bf16.mxu0 %v7969_v10  ;;  %v6588_v5 = vcombine.high %v358_v62, %v360_v63  ;;  %v8057_v10 = vld [vmem:[#allocation8 + $0x48] sm:$0xff]   ;;  %v362_v12 = vld [vmem:[%s8852_s15 + $0xa0] sm:$0xff]  ;;  %v364_v13 = vld [vmem:[%s8852_s15 + $0xb0] sm:$0xff] }
  0x9a   : > { %v8058_v11 = vld [vmem:[#allocation8 + $0x8] sm:$0xff]   ;;  %v353_v20 = vld [vmem:[%s8852_s15 + $0x58] sm:$0xff]  ;;  %v6592_v21 = vcombine.high %v362_v12, %v364_v13  ;;  %v6591_v26 = vcombine.low %v362_v12, %v364_v13  ;;  %v380_v47 = vld [vmem:[%s8852_s15 + $0x130] sm:$0xff] }
  0x9b   : > { %v355_v27 = vld [vmem:[%s8852_s15 + $0x68] sm:$0xff]  ;;  %v357_v28 = vld [vmem:[%s8852_s15 + $0x78] sm:$0xff]  ;;  %vm8925_vm2 = vmand %vm1351_vm0, %vm1352_vm1 }
  0x9c   : > { %7872 = vmatpush3.bf16.msra.mxu1 %v7970_v14  ;;  %7126 = vmatpush3.bf16.msra.mxu0 %v7970_v14  ;;  %v8059_v14 = vld [vmem:[#allocation8 + $0x50] sm:$0xff]   ;;  %v6586_v33 = vcombine.high %v355_v27, %v357_v28  ;;  %v359_v35 = vld [vmem:[%s8852_s15 + $0x88] sm:$0xff]  ;;  %v6585_v40 = vcombine.low %v355_v27, %v357_v28  ;;  %v369_v52 = vld [vmem:[%s8852_s15 + $0xd8] sm:$0xff] }
  0x9d   : > { %7865 = vmatprep.subr.bf16.mxu1 %v7971_v15  ;;  %7127 = vmatprep.subr.bf16.mxu0 %v7971_v15  ;;  %v6573_v15 = vcombine.low %v343_v59, %v345_v60  ;;  %v371_v59 = vld [vmem:[%s8852_s15 + $0xe8] sm:$0xff]  ;;  %v373_v60 = vld [vmem:[%s8852_s15 + $0xf8] sm:$0xff]  ;;  %v8067_v27 = vld [vmem:[#allocation8 + $0xc0] sm:$0xff]  }
  0x9e   : > { %v381_v12 = vld [vmem:[%s8852_s15 + $0x138] sm:$0xff]  ;;  %v8068_v28 = vld [vmem:[#allocation8 + $0x80] sm:$0xff]   ;;  %vm8934_vm4 = vmand %vm1351_vm0, %vm1402_vm3 }
  0x9f   : > { %vm9057_vm9 = vmand %vm1870_vm7, %vm1402_vm3 }
  0xa0   : > { %7873 = vmatpush3.bf16.msra.mxu1 %v7972_v16  ;;  %7128 = vmatpush3.bf16.msra.mxu0 %v7972_v16  ;;  %v6578_v16 = vcombine.high %v347_v8, %v349_v9  ;;  %vm9067_vm10 = vmor %vm1352_vm1, %vm1548_vm8 }
  0xa1   : > { %7866 = vmatprep.subr.bf16.mxu1 %v7973_v17  ;;  %7129 = vmatprep.subr.bf16.mxu0 %v7973_v17  ;;  %v8060_v17 = vld [vmem:[#allocation8 + $0x10] sm:$0xff]  }
  0xa4   : > { %7874 = vmatpush3.bf16.msra.mxu1 %v7974_v18  ;;  %7130 = vmatpush3.bf16.msra.mxu0 %v7974_v18  ;;  %v6587_v18 = vcombine.low %v358_v62, %v360_v63  ;;  %v386_v62 = vld [vmem:[%s8852_s15 + $0x160] sm:$0xff]  ;;  %v388_v63 = vld [vmem:[%s8852_s15 + $0x170] sm:$0xff] }
  0xa5   : > { %7227 = vmatprep.subr.bf16.mxu1 %v7977_v19  ;;  %7339 = vmatprep.subr.bf16.mxu0 %v8055_v6  ;;  %v351_v19 = vld [vmem:[%s8852_s15 + $0x48] sm:$0xff]  ;;  %v6601_v6 = vcombine.low %v371_v59, %v373_v60 }
  0xa6   : > { %v6581_v32 = vcombine.low %v351_v19, %v353_v20 }
  0xa7   : > { %1118 = vmatmul.mubr.bf16.vlgmr.msra.gmra.mrb[0].mxu1 %v6619_v22  ;;  %1022 = vmatmul.mubr.bf16.vlgmr.msra.gmra.mrb[0].mxu0 %v6571_v29  ;;  %v366_v22 = vld [vmem:[%s8852_s15 + $0xc0] sm:$0xff] }
  0xa8   : > { %7228 = vmatpush3.bf16.msra.mxu1 %v7978_v23  ;;  %1125 = vmatprep.mubr.bf16.mxu1 %v6624_v24  ;;  %v368_v23 = vld [vmem:[%s8852_s15 + $0xd0] sm:$0xff]  ;;  %v6577_v24 = vcombine.low %v347_v8, %v349_v9  ;;  %v8061_v8 = vld [vmem:[#allocation8 + $0x58] sm:$0xff]  }
  0xa9   : > { %7229 = vmatprep.subr.bf16.mxu1 %v7979_v25  ;;  %1029 = vmatprep.mubr.bf16.mxu0 %v6576_v36  ;;  %v6582_v25 = vcombine.high %v351_v19, %v353_v20  ;;  %v6596_v29 = vcombine.high %v366_v22, %v368_v23  ;;  %v6595_v34 = vcombine.low %v366_v22, %v368_v23  ;;  %v361_v36 = vld [vmem:[%s8852_s15 + $0x98] sm:$0xff] }
  0xaa   : > { %7340 = vmatpush3.bf16.msra.mxu0 %v8056_v7  ;;  %v6590_v41 = vcombine.high %v359_v35, %v361_v36  ;;  %v6589_v48 = vcombine.low %v359_v35, %v361_v36  ;;  %v8062_v9 = vld [vmem:[#allocation8 + $0x18] sm:$0xff]   ;;  %v8073_v35 = vld [vmem:[#allocation8 + $0xd0] sm:$0xff]  }
  0xab   : > { %7341 = vmatprep.subr.bf16.mxu0 %v8057_v10  ;;  %v6615_v10 = vcombine.low %v386_v62, %v388_v63  ;;  %v389_v22 = vld [vmem:[%s8852_s15 + $0x178] sm:$0xff]  ;;  %v8074_v36 = vld [vmem:[#allocation8 + $0x90] sm:$0xff]  }
  0xac   : > { %7230 = vmatpush3.bf16.msra.mxu1 %v7980_v30  ;;  %v370_v30 = vld [vmem:[%s8852_s15 + $0xe0] sm:$0xff] }
  0xad   : > { %7231 = vmatprep.subr.bf16.mxu1 %v7983_v31  ;;  %v372_v31 = vld [vmem:[%s8852_s15 + $0xf0] sm:$0xff] }
  0xae   : > { %7342 = vmatpush3.bf16.msra.mxu0 %v8058_v11  ;;  %v379_v11 = vld [vmem:[%s8852_s15 + $0x128] sm:$0xff] }
  0xaf   : > { %1126 = vmatmul.mubr.bf16.gmra.mrb[4].mxu1 %v6623_v37  ;;  %1030 = vmatmul.mubr.bf16.gmra.mrb[4].mxu0 %v6575_v43  ;;  %v6600_v37 = vcombine.high %v370_v30, %v372_v31  ;;  %v363_v43 = vld [vmem:[%s8852_s15 + $0xa8] sm:$0xff]  ;;  %v6609_v19 = vcombine.low %v379_v11, %v381_v12 }
  0xb0   : > { %7232 = vmatpush3.bf16.msra.mxu1 %v7984_v38  ;;  %1133 = vmatprep.mubr.bf16.mxu1 %v6628_v39  ;;  %v374_v38 = vld [vmem:[%s8852_s15 + $0x100] sm:$0xff]  ;;  %v376_v39 = vld [vmem:[%s8852_s15 + $0x110] sm:$0xff] }
  0xb1   : > { %7233 = vmatprep.subr.bf16.mxu1 %v7985_v42  ;;  %1037 = vmatprep.mubr.bf16.mxu0 %v6580_v44  ;;  %v6599_v42 = vcombine.low %v370_v30, %v372_v31  ;;  %v365_v44 = vld [vmem:[%s8852_s15 + $0xb8] sm:$0xff]  ;;  %v8069_v31 = vld [vmem:[#allocation8 + $0xc8] sm:$0xff]  }
  0xb2   : > { %7343 = vmatprep.subr.bf16.mxu0 %v8059_v14  ;;  %v6610_v14 = vcombine.high %v379_v11, %v381_v12  ;;  %v393_v30 = vld [vmem:[%s8852_s15 + $0x198] sm:$0xff]  ;;  %v403_v11 = vld [vmem:[%s8852_s15 + $0x1e8] sm:$0xff] }
  0xb3   : > { %7344 = vmatpush3.bf16.msra.mxu0 %v8060_v17  ;;  %v383_v17 = vld [vmem:[%s8852_s15 + $0x148] sm:$0xff]  ;;  %v405_v12 = vld [vmem:[%s8852_s15 + $0x1f8] sm:$0xff] }
  0xb4   : > { %7234 = vmatpush3.bf16.msra.mxu1 %v7986_v45  ;;  %v6604_v45 = vcombine.high %v374_v38, %v376_v39  ;;  %7345 = vmatprep.subr.bf16.mxu0 %v8061_v8 }
  0xb5   : > { %7235 = vmatprep.subr.bf16.mxu1 %v7989_v46  ;;  %v378_v46 = vld [vmem:[%s8852_s15 + $0x120] sm:$0xff] }
  0xb6   : > { %v6608_v53 = vcombine.high %v378_v46, %v380_v47 }
  0xb7   : > { %1134 = vmatmul.mubr.bf16.gmra.mrb[8].mxu1 %v6627_v49  ;;  %1038 = vmatmul.mubr.bf16.gmra.mrb[8].mxu0 %v6579_v55  ;;  %v6594_v49 = vcombine.high %v363_v43, %v365_v44  ;;  %v384_v55 = vld [vmem:[%s8852_s15 + $0x150] sm:$0xff] }
  0xb8   : > { %7236 = vmatpush3.bf16.msra.mxu1 %v7990_v50  ;;  %1141 = vmatprep.mubr.bf16.mxu1 %v6632_v51  ;;  %v6603_v50 = vcombine.low %v374_v38, %v376_v39  ;;  %v367_v51 = vld [vmem:[%s8852_s15 + $0xc8] sm:$0xff]  ;;  %v1354_v38 = vld [vmem:[#allocation2 + $0xc] sm:$0x1] }
  0xb9   : > { %7237 = vmatprep.subr.bf16.mxu1 %v7991_v54  ;;  %1045 = vmatprep.mubr.bf16.mxu0 %v6584_v56  ;;  %v382_v54 = vld [vmem:[%s8852_s15 + $0x140] sm:$0xff]  ;;  %v6593_v56 = vcombine.low %v363_v43, %v365_v44  ;;  %v395_v39 = vld [vmem:[%s8852_s15 + $0x1a8] sm:$0xff]  ;;  %v1404_v43 = vld [vmem:[#allocation2 + $0x14] sm:$0x1] }
  0xba   : > { %7346 = vmatpush3.bf16.msra.mxu0 %v8062_v9  ;;  %v8075_v44 = vld [vmem:[#allocation8 + $0xd8] sm:$0xff]  }
  0xbc   : > { %7238 = vmatpush3.bf16.msra.mxu1 %v7992_v57  ;;  %v6598_v57 = vcombine.high %v367_v51, %v369_v52 }
  0xbd   : > { %7239 = vmatprep.subr.bf16.mxu1 %v7995_v58  ;;  %v6607_v58 = vcombine.low %v378_v46, %v380_v47  ;;  %v1405_v46 = vsel %vm8934_vm4, 0, %v1404_v43  ;;  %v11080_v47 = vmov 0   ;;  %v1369_v43 = vld [vmem:[#allocation2 + $0x48] sm:$0x1] }
  0xbe   : > { %1343 = vst [vmem:[#allocation2] sm:$0xf] %v11080_v47  ;;  %1344 = vst [vmem:[#allocation2 + $0x4] sm:$0xf] %v11080_v47 }
  0xbf   : > { %1142 = vmatmul.mubr.bf16.gmra.mrb[12].mxu1 %v6631_v0  ;;  %1046 = vmatmul.mubr.bf16.gmra.mrb[12].mxu0 %v6583_v3  ;;  %v6597_v0 = vcombine.low %v367_v51, %v369_v52  ;;  %v6616_v3 = vcombine.high %v386_v62, %v388_v63  ;;  %1345 = vst [vmem:[#allocation2 + $0x8] sm:$0x1] %v11080_v47  ;;  %1347 = vst [vmem:[#allocation2 + $0xcc] sm:$0xf] %v11080_v47  ;;  %v1357_v51 = vld [vmem:[#allocation2 + $0x18] sm:$0x1] }
  0xc0   : > { %7240 = vmatpush3.bf16.msra.mxu1 %v7996_v61  ;;  %1182 = vmatprep.mubr.bf16.mxu1 %v6574_v2  ;;  %v6612_v61 = vcombine.high %v382_v54, %v384_v55  ;;  %v6611_v2 = vcombine.low %v382_v54, %v384_v55  ;;  %1348 = vst [vmem:[#allocation2 + $0xd0] sm:$0xf] %v11080_v47  ;;  %1349 = vst [vmem:[#allocation2 + $0xd4] sm:$0x1] %v11080_v47  ;;  %v8078_v52 = vld [vmem:[#allocation8 + $0xa0] sm:$0xff]   ;;  %v401_v54 = vld [vmem:[%s8852_s15 + $0x1d8] sm:$0xff] }
  0xc1   : > { %7241 = vmatprep.subr.bf16.mxu1 %v7999_v1  ;;  %1053 = vmatprep.mubr.bf16.mxu0 %v6588_v5  ;;  %v6602_v1 = vcombine.high %v371_v59, %v373_v60  ;;  %v377_v5 = vld [vmem:[%s8852_s15 + $0x118] sm:$0xff]  ;;  %1406 = vst [vmem:[#allocation2 + $0x14] sm:$0x1] %v1405_v46  ;;  %v1358_v55 = vsel %vm8925_vm2, 0, %v1357_v51  ;;  %v8081_v62 = vld [vmem:[#allocation8 + $0xe8] sm:$0xff]  }
  0xc2   : > { %1359 = vst [vmem:[#allocation2 + $0x18] sm:$0x1] %v1358_v55  ;;  %v8082_v63 = vld [vmem:[#allocation8 + $0xa8] sm:$0xff]  }
  0xc4   : > { %7242 = vmatpush3.bf16.msra.mxu1 %v8000_v4  ;;  %v375_v4 = vld [vmem:[%s8852_s15 + $0x108] sm:$0xff] }
  0xc5   : > { %v6606_v7 = vcombine.high %v375_v4, %v377_v5  ;;  %v6605_v13 = vcombine.low %v375_v4, %v377_v5  ;;  %7451 = vmatprep.subr.bf16.mxu1 %v8067_v27  ;;  %v1984_v59 = vld [vmem:[#allocation2] sm:$0xf]  ;;  %v8079_v4 = vld [vmem:[#allocation8 + $0x78] sm:$0xff]   ;;  %v8083_v5 = vld [vmem:[#allocation8 + $0xf0] sm:$0xff]  }
  0xc7   : > { %1183 = vmatmul.mubr.bf16.vlgmr.msra.gmra.mrb[16].mxu1 %v6573_v15  ;;  %1054 = vmatmul.mubr.bf16.gmra.mrb[16].mxu0 %v6587_v18  ;;  %v8063_v15 = vld [vmem:[#allocation8 + $0x60] sm:$0xff]   ;;  %v385_v18 = vld [vmem:[%s8852_s15 + $0x158] sm:$0xff] }
  0xc8   : > { %1190 = vmatprep.mubr.bf16.mxu1 %v6578_v16  ;;  %1061 = vmatprep.mubr.bf16.mxu0 %v6592_v21  ;;  %v8064_v16 = vld [vmem:[#allocation8 + $0x20] sm:$0xff]   ;;  %v6614_v20 = vcombine.high %v383_v17, %v385_v18  ;;  %v387_v21 = vld [vmem:[%s8852_s15 + $0x168] sm:$0xff]  ;;  %v6613_v23 = vcombine.low %v383_v17, %v385_v18  ;;  %v1410_v18 = vld [vmem:[#allocation2 + $0x2c] sm:$0x1] }
  0xc9   : > { %7347 = vmatprep.subr.bf16.mxu0 %v8063_v15  ;;  %7452 = vmatpush3.bf16.msra.mxu1 %v8068_v28 }
  0xca   : > { %7348 = vmatpush3.bf16.msra.mxu0 %v8064_v16  ;;  %7453 = vmatprep.subr.bf16.mxu1 %v8069_v31 }
  0xcf   : > { %1191 = vmatmul.mubr.bf16.gmra.mrb[20].mxu1 %v6577_v24  ;;  %1062 = vmatmul.mubr.bf16.gmra.mrb[20].mxu0 %v6591_v26  ;;  %v6618_v24 = vcombine.high %v387_v21, %v389_v22  ;;  %v8066_v26 = vld [vmem:[#allocation8 + $0x28] sm:$0xff]  }
  0xd0   : > { %1198 = vmatprep.mubr.bf16.mxu1 %v6582_v25  ;;  %1069 = vmatprep.mubr.bf16.mxu0 %v6596_v29  ;;  %v8065_v25 = vld [vmem:[#allocation8 + $0x68] sm:$0xff]  }
  0xd1   : > { %7349 = vmatprep.subr.bf16.mxu0 %v8065_v25  ;;  %v391_v29 = vld [vmem:[%s8852_s15 + $0x188] sm:$0xff] }
  0xd2   : > { %7350 = vmatpush3.bf16.msra.mxu0 %v8066_v26 }
  0xd7   : > { %1199 = vmatmul.mubr.bf16.gmra.mrb[24].mxu1 %v6581_v32  ;;  %1070 = vmatmul.mubr.bf16.gmra.mrb[24].mxu0 %v6595_v34  ;;  %v6617_v32 = vcombine.low %v387_v21, %v389_v22  ;;  %v6622_v34 = vcombine.high %v391_v29, %v393_v30  ;;  %v1411_v21 = vsel %vm8934_vm4, 0, %v1410_v18 }
  0xd8   : > { %1206 = vmatprep.mubr.bf16.mxu1 %v6586_v33  ;;  %1077 = vmatprep.mubr.bf16.mxu0 %v6600_v37  ;;  %v8070_v33 = vld [vmem:[#allocation8 + $0x88] sm:$0xff]   ;;  %1412 = vst [vmem:[#allocation2 + $0x2c] sm:$0x1] %v1411_v21 }
  0xd9   : > { %7454 = vmatpush3.bf16.msra.mxu1 %v8070_v33  ;;  %v1413_v33 = vld [vmem:[#allocation2 + $0x38] sm:$0x1] }
  0xda   : > { %7455 = vmatprep.subr.bf16.mxu1 %v8073_v35  ;;  %v1366_v35 = vld [vmem:[#allocation2 + $0x3c] sm:$0x1] }
  0xdd   : > { %7456 = vmatpush3.bf16.msra.mxu1 %v8074_v36  ;;  %v1367_v36 = vsel %vm8925_vm2, 0, %v1366_v35 }
  0xde   : > { %7457 = vmatprep.subr.bf16.mxu1 %v8075_v44  ;;  %1368 = vst [vmem:[#allocation2 + $0x3c] sm:$0x1] %v1367_v36  ;;  %v1370_v44 = vsel %vm8925_vm2, 0, %v1369_v43 }
  0xdf   : > { %1207 = vmatmul.mubr.bf16.gmra.mrb[28].mxu1 %v6585_v40  ;;  %1078 = vmatmul.mubr.bf16.gmra.mrb[28].mxu0 %v6599_v42  ;;  %v397_v40 = vld [vmem:[%s8852_s15 + $0x1b8] sm:$0xff]  ;;  %1371 = vst [vmem:[#allocation2 + $0x48] sm:$0x1] %v1370_v44 }
  0xe0   : > { %1214 = vmatprep.mubr.bf16.mxu1 %v6590_v41  ;;  %1085 = vmatprep.mubr.bf16.mxu0 %v6604_v45  ;;  %v1355_v41 = vsel %vm8925_vm2, 0, %v1354_v38  ;;  %v6621_v45 = vcombine.low %v391_v29, %v393_v30  ;;  %v1363_v29 = vld [vmem:[#allocation2 + $0x30] sm:$0x1]  ;;  %v1416_v38 = vld [vmem:[#allocation2 + $0x44] sm:$0x1] }
  0xe1   : > { %1356 = vst [vmem:[#allocation2 + $0xc] sm:$0x1] %v1355_v41  ;;  %v1364_v31 = vsel %vm8925_vm2, 0, %v1363_v29  ;;  %v8093_v41 = vld [vmem:[#allocation8 + $0x100] sm:$0xff]  }
  0xe2   : > { %1365 = vst [vmem:[#allocation2 + $0x30] sm:$0x1] %v1364_v31 }
  0xe7   : > { %1215 = vmatmul.mubr.bf16.gmra.mrb[32].mxu1 %v6589_v48  ;;  %1086 = vmatmul.mubr.bf16.gmra.mrb[32].mxu0 %v6603_v50  ;;  %v6626_v48 = vcombine.high %v395_v39, %v397_v40  ;;  %v8077_v50 = vld [vmem:[#allocation8 + $0xe0] sm:$0xff]  }
  0xe8   : > { %1222 = vmatprep.mubr.bf16.mxu1 %v6594_v49  ;;  %1093 = vmatprep.mubr.bf16.mxu0 %v6608_v53  ;;  %v8076_v49 = vld [vmem:[#allocation8 + $0x98] sm:$0xff]   ;;  %v399_v53 = vld [vmem:[%s8852_s15 + $0x1c8] sm:$0xff] }
  0xe9   : > { %7458 = vmatpush3.bf16.msra.mxu1 %v8076_v49  ;;  %v6630_v60 = vcombine.high %v399_v53, %v401_v54  ;;  %v6629_v17 = vcombine.low %v399_v53, %v401_v54  ;;  %v8105_v49 = vld [vmem:[#allocation8 + $0x108] sm:$0xff]  }
  0xea   : > { %7459 = vmatprep.subr.bf16.mxu1 %v8077_v50  ;;  %v1372_v50 = vld [vmem:[#allocation2 + $0x54] sm:$0x1]  ;;  %v1375_v53 = vld [vmem:[#allocation2 + $0x60] sm:$0x1] }
  0xeb   : > { %v1373_v51 = vsel %vm8925_vm2, 0, %v1372_v50  ;;  %v1376_v55 = vsel %vm8925_vm2, 0, %v1375_v53  ;;  %v8139_v53 = vld [vmem:[#allocation8 + $0x160] sm:$0xff]  }
  0xec   : > { %1374 = vst [vmem:[#allocation2 + $0x54] sm:$0x1] %v1373_v51  ;;  %1377 = vst [vmem:[#allocation2 + $0x60] sm:$0x1] %v1376_v55 }
  0xed   : > { %7460 = vmatpush3.bf16.msra.mxu1 %v8078_v52  ;;  %v1422_v52 = vld [vmem:[#allocation2 + $0x5c] sm:$0x1] }
  0xee   : > { %7461 = vmatprep.subr.bf16.mxu1 %v8081_v62  ;;  %v1423_v54 = vsel %vm8934_vm4, 0, %v1422_v52  ;;  %v1428_v62 = vld [vmem:[#allocation2 + $0x74] sm:$0x1] }
  0xef   : > { %1223 = vmatmul.mubr.bf16.gmra.mrb[36].mxu1 %v6593_v56  ;;  %1094 = vmatmul.mubr.bf16.gmra.mrb[36].mxu0 %v6607_v58  ;;  %v8071_v56 = vld [vmem:[#allocation8 + $0x70] sm:$0xff]   ;;  %1424 = vst [vmem:[#allocation2 + $0x5c] sm:$0x1] %v1423_v54  ;;  %v8141_v54 = vld [vmem:[#allocation8 + $0x120] sm:$0xff]  }
  0xf0   : > { %1230 = vmatprep.mubr.bf16.mxu1 %v6598_v57  ;;  %1101 = vmatprep.mubr.bf16.mxu0 %v6612_v61  ;;  %v6625_v57 = vcombine.low %v395_v39, %v397_v40  ;;  %v8072_v58 = vld [vmem:[#allocation8 + $0x30] sm:$0xff]   ;;  %v1407_v61 = vld [vmem:[#allocation2 + $0x20] sm:$0x1]  ;;  %v1417_v39 = vsel %vm8934_vm4, 0, %v1416_v38  ;;  %v8091_v40 = vld [vmem:[#allocation8 + $0x140] sm:$0xff]  }
  0xf1   : > { %7351 = vmatprep.subr.bf16.mxu0 %v8071_v56  ;;  %7462 = vmatpush3.bf16.msra.mxu1 %v8082_v63  ;;  %1418 = vst [vmem:[#allocation2 + $0x44] sm:$0x1] %v1417_v39  ;;  %v1425_v56 = vld [vmem:[#allocation2 + $0x68] sm:$0x1]  ;;  %v1429_v63 = vsel %vm8934_vm4, 0, %v1428_v62 }
  0xf2   : > { %7352 = vmatpush3.bf16.msra.mxu0 %v8072_v58  ;;  %7463 = vmatprep.subr.bf16.mxu1 %v8083_v5  ;;  %v8117_v58 = vld [vmem:[#allocation8 + $0x110] sm:$0xff]   ;;  %1430 = vst [vmem:[#allocation2 + $0x74] sm:$0x1] %v1429_v63 }
  0xf3   : > { %7353 = vmatprep.subr.bf16.mxu0 %v8079_v4 }
  0xf7   : > { %1231 = vmatmul.mubr.bf16.gmra.mrb[40].mxu1 %v6597_v0  ;;  %1102 = vmatmul.mubr.bf16.gmra.mrb[40].mxu0 %v6611_v2  ;;  %v1408_v0 = vsel %vm8934_vm4, 0, %v1407_v61 }
  0xf8   : > { %1238 = vmatprep.mubr.bf16.mxu1 %v6602_v1  ;;  %1109 = vmatprep.mubr.bf16.mxu0 %v6616_v3  ;;  %v1985_v1 = vld [vmem:[#allocation2 + $0x4] sm:$0xf]  ;;  %1409 = vst [vmem:[#allocation2 + $0x20] sm:$0x1] %v1408_v0  ;;  %v1381_v0 = vld [vmem:[#allocation2 + $0x78] sm:$0x1] }
  0xf9   : > { %v6699_v2 = vcombine.low %v1984_v59, %v1985_v1  ;;  %v8086_v3 = vld [vmem:[#allocation2 + $0x8] ss:$0 sps:$4 sm:$0x11]   ;;  %v1426_v59 = vsel %vm8934_vm4, 0, %v1425_v56  ;;  %v1390_v56 = vld [vmem:[#allocation2 + $0x9c] sm:$0x1] }
  0xfa   : > { %v2580_v28 = vrot.slane %v8086_v3, 1  ;;  %1427 = vst [vmem:[#allocation2 + $0x68] sm:$0x1] %v1426_v59 }
  0xfb   : > { %v2323_v8 = vshrl.u32 %v6699_v2, 16  ;;  %v2325_v9 = vshll.u32 %v6699_v2, 16 }
  0xfd   : > { %v2327_v15 = vrot.slane %v2325_v9, 1  ;;  %v8129_v9 = vld [vmem:[#allocation8 + $0x118] sm:$0xff]  }
  0xff   : > { %1239 = vmatmul.mubr.bf16.gmra.mrb[44].mxu1 %v6601_v6  ;;  %1110 = vmatmul.mubr.bf16.gmra.mrb[44].mxu0 %v6615_v10  ;;  %v8080_v6 = vld [vmem:[#allocation8 + $0x38] sm:$0xff]   ;;  %v2330_v10 = vshll.u32 %v8086_v3, 16  ;;  %v2328_v22 = vor.u32 %v2327_v15, %v2323_v8  ;;  %v1431_v3 = vld [vmem:[#allocation2 + $0x80] sm:$0x1] }
 0x100   : > { %1246 = vmatprep.mubr.bf16.mxu1 %v6606_v7  ;;  %v8084_v7 = vld [vmem:[#allocation8 + $0xb0] sm:$0xff]   ;;  %7354 = vmatpush3.bf16.msra.mxu0 %v8080_v6  ;;  %v1432_v5 = vsel %vm8934_vm4, 0, %v1431_v3  ;;  %v8127_v8 = vld [vmem:[#allocation8 + $0x158] sm:$0xff]  }
 0x101   : > { %v2332_v16 = vrot.slane %v2330_v10, 1  ;;  %7464 = vmatpush3.bf16.msra.mxu1 %v8084_v7  ;;  %7563 = vmatprep.subr.bf16.mxu0 %v8091_v40  ;;  %1433 = vst [vmem:[#allocation2 + $0x80] sm:$0x1] %v1432_v5 }
 0x103   : > { %v2333_v26 = vsel %vm2321_vm5, %v2328_v22, %v2332_v16 }
 0x104   : > { %4186 = vmatprep.mubr.bf16.mxu0 %v2333_v26  ;;  %v1434_v26 = vld [vmem:[#allocation2 + $0x8c] sm:$0x1] }
 0x105   : > { %v1435_v29 = vsel %vm8934_vm4, 0, %v1434_v26 }
 0x106   : > { %1436 = vst [vmem:[#allocation2 + $0x8c] sm:$0x1] %v1435_v29 }
 0x107   : > { %1247 = vmatmul.mubr.bf16.gmra.mrb[48].mxu1 %v6605_v13  ;;  %v1360_v13 = vld [vmem:[#allocation2 + $0x24] sm:$0x1]  ;;  %4187 = vmatmul.mubr.bf16.vlgmr.msra.gmra.mrb[48].mxu0 %v6699_v2 }
 0x108   : > { %1254 = vmatprep.mubr.bf16.mxu1 %v6610_v14  ;;  %v1361_v14 = vsel %vm8925_vm2, 0, %v1360_v13  ;;  %7564 = vmatpush3.bf16.msra.mxu0 %v8093_v41 }
 0x109   : > { %1362 = vst [vmem:[#allocation2 + $0x24] sm:$0x1] %v1361_v14 }
 0x10f   : > { %1255 = vmatmul.mubr.bf16.gmra.mrb[52].mxu1 %v6609_v19  ;;  %v8087_v19 = vld [vmem:[#allocation8 + $0xf8] sm:$0xff]  }
 0x110   : > { %1262 = vmatprep.mubr.bf16.mxu1 %v6614_v20  ;;  %v6634_v20 = vcombine.high %v403_v11, %v405_v12  ;;  %7465 = vmatprep.subr.bf16.mxu1 %v8087_v19 }
 0x117   : > { %1263 = vmatmul.mubr.bf16.gmra.mrb[56].mxu1 %v6613_v23  ;;  %v2032_v23 = vld [vmem:[#allocation2] sm:$0xe] }
 0x118   : > { %1270 = vmatprep.mubr.bf16.mxu1 %v6618_v24  ;;  %v8088_v24 = vld [vmem:[#allocation8 + $0xb8] sm:$0xff]   ;;  %v6731_v25 = vcombine.low %v2032_v23, %v1985_v1  ;;  %v1382_v1 = vsel %vm8925_vm2, 0, %v1381_v0 }
 0x119   : > { %7466 = vmatpush3.bf16.msra.mxu1 %v8088_v24  ;;  %1383 = vst [vmem:[#allocation2 + $0x78] sm:$0x1] %v1382_v1 }
 0x11a   : > { %v2579_v27 = vrot.slane %v6731_v25, 1 }
 0x11c   : > { %v8960_v30 = vsel %vm2578_vm6, %v2579_v27, %v2580_v28 }
 0x11f   : > { %1271 = vmatmul.mubr.bf16.gmra.mrb[60].mxu1 %v6617_v32  ;;  %v6633_v32 = vcombine.low %v403_v11, %v405_v12  ;;  %v1384_v12 = vld [vmem:[#allocation2 + $0x84] sm:$0x1] }
 0x120   : > { %1278 = vmatprep.mubr.bf16.mxu1 %v6622_v34  ;;  %v1414_v34 = vsel %vm8934_vm4, 0, %v1413_v33  ;;  %v1385_v15 = vsel %vm8925_vm2, 0, %v1384_v12  ;;  %v1387_v33 = vld [vmem:[#allocation2 + $0x90] sm:$0x1] }
 0x121   : > { %1415 = vst [vmem:[#allocation2 + $0x38] sm:$0x1] %v1414_v34  ;;  %1386 = vst [vmem:[#allocation2 + $0x84] sm:$0x1] %v1385_v15  ;;  %v1388_v35 = vsel %vm8925_vm2, 0, %v1387_v33 }
 0x122   : > { %1389 = vst [vmem:[#allocation2 + $0x90] sm:$0x1] %v1388_v35 }
 0x127   : > { %1279 = vmatmul.mubr.bf16.gmra.mrb[64].mxu1 %v6621_v45  ;;  %v1419_v45 = vld [vmem:[#allocation2 + $0x50] sm:$0x1] }
 0x128   : > { %1286 = vmatprep.mubr.bf16.mxu1 %v6626_v48  ;;  %v1420_v46 = vsel %vm8934_vm4, 0, %v1419_v45  ;;  %v8103_v48 = vld [vmem:[#allocation8 + $0x148] sm:$0xff]  }
 0x129   : > { %1421 = vst [vmem:[#allocation2 + $0x50] sm:$0x1] %v1420_v46  ;;  %7565 = vmatprep.subr.bf16.mxu0 %v8103_v48  ;;  %v1437_v48 = vld [vmem:[#allocation2 + $0x98] sm:$0x1] }
 0x12a   : > { %7566 = vmatpush3.bf16.msra.mxu0 %v8105_v49  ;;  %v1438_v51 = vsel %vm8934_vm4, 0, %v1437_v48 }
 0x12b   : > { %1439 = vst [vmem:[#allocation2 + $0x98] sm:$0x1] %v1438_v51 }
 0x12f   : > { %1287 = vmatmul.mubr.bf16.gmra.mrb[68].mxu1 %v6625_v57  ;;  %v8115_v57 = vld [vmem:[#allocation8 + $0x150] sm:$0xff]  }
 0x130   : > { %1294 = vmatprep.mubr.bf16.mxu1 %v6630_v60  ;;  %v1378_v60 = vld [vmem:[#allocation2 + $0x6c] sm:$0x1]  ;;  %7567 = vmatprep.subr.bf16.mxu0 %v8115_v57 }
 0x131   : > { %v1379_v61 = vsel %vm8925_vm2, 0, %v1378_v60  ;;  %7568 = vmatpush3.bf16.msra.mxu0 %v8117_v58  ;;  %v1391_v58 = vsel %vm8925_vm2, 0, %v1390_v56 }
 0x132   : > { %1380 = vst [vmem:[#allocation2 + $0x6c] sm:$0x1] %v1379_v61  ;;  %7569 = vmatprep.subr.bf16.mxu0 %v8127_v8  ;;  %1392 = vst [vmem:[#allocation2 + $0x9c] sm:$0x1] %v1391_v58  ;;  %v9035_v8 = vld [vmem:[%s11072_s4] ss:$0 sm:$0xff] }
 0x135   : > { %7570 = vmatpush3.bf16.msra.mxu0 %v8129_v9 }
 0x136   : > { %7571 = vmatprep.subr.bf16.mxu0 %v8139_v53 }
 0x137   : > { %1295 = vmatmul.mubr.bf16.gmra.mrb[72].mxu1 %v6629_v17 }
 0x138   : > { %1302 = vmatprep.mubr.bf16.mxu1 %v6634_v20 }
 0x139   : > { %7572 = vmatpush3.bf16.msra.mxu0 %v8141_v54 }
 0x13f   : > { %1303 = vmatmul.mubr.bf16.gmra.mrb[76].mxu1 %v6633_v32 }
 0x17a   : > { %v7203_v2 = vpop.f32.mrb[0].mxu1  ;;  %v7131_v11 = vpop.f32.mrb[0].mxu0 }
 0x17b   : > { %v7204_v4 = vpop.f32.mrb[1].mxu1  ;;  %v7132_v14 = vpop.f32.mrb[1].mxu0 }
 0x17c   : > { %v8990_v6 = vadd.f32 %v7204_v4, %v7203_v2  ;;  %v7206_v7 = vpop.f32.mrb[2].mxu1  ;;  %v8996_v16 = vadd.f32 %v7132_v14, %v7131_v11  ;;  %v7134_v17 = vpop.f32.mrb[2].mxu0  ;;  %v1440_v4 = vld [vmem:[#allocation2 + $0xa4] sm:$0x1] }
 0x17d   : > { %v7207_v10 = vpop.f32.mrb[3].mxu1  ;;  %v7135_v18 = vpop.f32.mrb[3].mxu0 }
 0x17e   : > { %v8992_v13 = vadd.f32 %v7207_v10, %v7206_v7  ;;  %v8998_v19 = vadd.f32 %v7135_v18, %v7134_v17  ;;  %v1441_v7 = vsel %vm8934_vm4, 0, %v1440_v4  ;;  %v1393_v10 = vld [vmem:[#allocation2 + $0xa8] sm:$0x1]  ;;  %v1024_v12 = vadd.f32 %v8996_v16, %v9035_v8 }
 0x17f   : > { %1442 = vst [vmem:[#allocation2 + $0xa4] sm:$0x1] %v1441_v7  ;;  %v1394_v14 = vsel %vm8925_vm2, 0, %v1393_v10 }
 0x180   : > { %1395 = vst [vmem:[#allocation2 + $0xa8] sm:$0x1] %v1394_v14 }
 0x182   : > { %v7209_v20 = vpop.f32.mrb[4].mxu1  ;;  %v7137_v25 = vpop.f32.mrb[4].mxu0 }
 0x183   : > { %v7210_v21 = vpop.f32.mrb[5].mxu1  ;;  %v7138_v28 = vpop.f32.mrb[5].mxu0 }
 0x184   : > { %v9000_v22 = vadd.f32 %v7210_v21, %v7209_v20  ;;  %v7212_v23 = vpop.f32.mrb[6].mxu1  ;;  %v9006_v31 = vadd.f32 %v7138_v28, %v7137_v25  ;;  %v7140_v32 = vpop.f32.mrb[6].mxu0 }
 0x185   : > { %v7213_v24 = vpop.f32.mrb[7].mxu1  ;;  %v7141_v34 = vpop.f32.mrb[7].mxu0 }
 0x186   : > { %v9002_v27 = vadd.f32 %v7213_v24, %v7212_v23  ;;  %v9010_v36 = vadd.f32 %v7141_v34, %v7140_v32  ;;  %v1027_v24 = vadd.f32 %v8998_v19, %v9035_v8  ;;  %v1443_v34 = vld [vmem:[#allocation2 + $0xb0] sm:$0x1]  ;;  %v1032_v19 = vadd.f32 %v9006_v31, %v9035_v8 }
 0x188   : > { %v1035_v4 = vadd.f32 %v9010_v36, %v9035_v8  ;;  %v1446_v36 = vld [vmem:[#allocation2 + $0xbc] sm:$0x1] }
 0x18a   : > { %v7215_v38 = vpop.f32.mrb[8].mxu1  ;;  %v7143_v44 = vpop.f32.mrb[8].mxu0 }
 0x18b   : > { %v7216_v39 = vpop.f32.mrb[9].mxu1  ;;  %v7144_v46 = vpop.f32.mrb[9].mxu0 }
 0x18c   : > { %v9012_v40 = vadd.f32 %v7216_v39, %v7215_v38  ;;  %v7218_v41 = vpop.f32.mrb[10].mxu1  ;;  %v9016_v49 = vadd.f32 %v7144_v46, %v7143_v44  ;;  %v7146_v50 = vpop.f32.mrb[10].mxu0  ;;  %v1444_v38 = vsel %vm8934_vm4, 0, %v1443_v34  ;;  %v8151_v44 = vld [vmem:[#allocation8 + $0x168] sm:$0xff]  }
 0x18d   : > { %v7219_v43 = vpop.f32.mrb[11].mxu1  ;;  %v7147_v52 = vpop.f32.mrb[11].mxu0  ;;  %1445 = vst [vmem:[#allocation2 + $0xb0] sm:$0x1] %v1444_v38  ;;  %v8153_v46 = vld [vmem:[#allocation8 + $0x128] sm:$0xff]   ;;  %7573 = vmatprep.subr.bf16.mxu0 %v8151_v44 }
 0x18e   : > { %v9014_v45 = vadd.f32 %v7219_v43, %v7218_v41  ;;  %v9020_v55 = vadd.f32 %v7147_v52, %v7146_v50  ;;  %v1396_v50 = vld [vmem:[#allocation2 + $0xb4] sm:$0x1]  ;;  %7574 = vmatpush3.bf16.msra.mxu0 %v8153_v46  ;;  %v1040_v34 = vadd.f32 %v9016_v49, %v9035_v8 }
 0x18f   : > { %v1397_v58 = vsel %vm8925_vm2, 0, %v1396_v50 }
 0x190   : > { %1398 = vst [vmem:[#allocation2 + $0xb4] sm:$0x1] %v1397_v58 }
 0x192   : > { %v7221_v57 = vpop.f32.mrb[12].mxu1  ;;  %v7149_v63 = vpop.f32.mrb[12].mxu0 }
 0x193   : > { %v7222_v59 = vpop.f32.mrb[13].mxu1  ;;  %v7150_v1 = vpop.f32.mrb[13].mxu0 }
 0x194   : > { %v9024_v60 = vadd.f32 %v7222_v59, %v7221_v57  ;;  %v7224_v61 = vpop.f32.mrb[14].mxu1  ;;  %v9028_v2 = vadd.f32 %v7150_v1, %v7149_v63  ;;  %v7152_v3 = vpop.f32.mrb[14].mxu0 }
 0x195   : > { %v7225_v62 = vpop.f32.mrb[15].mxu1  ;;  %v7153_v5 = vpop.f32.mrb[15].mxu0 }
 0x196   : > { %v9026_v0 = vadd.f32 %v7225_v62, %v7224_v61  ;;  %v9037_v9 = vadd.f32 %v7153_v5, %v7152_v3  ;;  %v1872_v3 = vld [vmem:[#allocation2 + $0xc] sm:$0xf] }
 0x19a   : > { %v7243_v11 = vpop.f32.mrb[16].mxu1  ;;  %v7155_v21 = vpop.f32.mrb[16].mxu0 }
 0x19b   : > { %v7244_v15 = vpop.f32.mrb[17].mxu1  ;;  %v7156_v26 = vpop.f32.mrb[17].mxu0 }
 0x19c   : > { %v7245_v17 = vadd.f32 %v7244_v15, %v7243_v11  ;;  %v7246_v18 = vpop.f32.mrb[18].mxu1  ;;  %v9045_v28 = vadd.f32 %v7156_v26, %v7155_v21  ;;  %v7158_v29 = vpop.f32.mrb[18].mxu0  ;;  %v1876_v21 = vld [vmem:[#allocation2 + $0x14] sm:$0x1] }
 0x19d   : > { %v7247_v20 = vpop.f32.mrb[19].mxu1  ;;  %v7159_v33 = vpop.f32.mrb[19].mxu0 }
 0x19e   : > { %v1185_v23 = vadd.f32 %v7245_v17, %v1024_v12  ;;  %v7248_v25 = vadd.f32 %v7247_v20, %v7246_v18  ;;  %v9047_v35 = vadd.f32 %v7159_v33, %v7158_v29 }
 0x1a0   : > { %v1311_v32 = vmax.f32 %v1185_v23, 0.0  ;;  %v1188_v16 = vadd.f32 %v7248_v25, %v1027_v24 }
 0x1a2   : > { %v7018_v39 = vpack.c.bf16 %v1311_v32, %v1311_v32  ;;  %v1312_v41 = vmax.f32 %v1188_v16, 0.0  ;;  %v7249_v43 = vpop.f32.mrb[20].mxu1  ;;  %v7161_v57 = vpop.f32.mrb[20].mxu0 }
 0x1a3   : > { %v7250_v48 = vpop.f32.mrb[21].mxu1  ;;  %v7162_v63 = vpop.f32.mrb[21].mxu0 }
 0x1a4   : > { %v1551_v51 = vshrl.u32 %v7018_v39, 16  ;;  %v7019_v52 = vpack.c.bf16 %v1312_v41, %v1312_v41  ;;  %v7251_v53 = vadd.f32 %v7250_v48, %v7249_v43  ;;  %v7252_v54 = vpop.f32.mrb[22].mxu1  ;;  %v1554_v31 = vshll.u32 %v7018_v39, 16  ;;  %v7164_v10 = vpop.f32.mrb[22].mxu0  ;;  %v1399_v41 = vld [vmem:[#allocation2 + $0xc0] sm:$0x1] }
 0x1a5   : > { %v7253_v56 = vpop.f32.mrb[23].mxu1  ;;  %v9063_v7 = vadd.f32 %v7162_v63, %v7161_v57  ;;  %v7165_v17 = vpop.f32.mrb[23].mxu0  ;;  %v1447_v39 = vsel %vm8934_vm4, 0, %v1446_v36 }
 0x1a6   : > { %v1553_v59 = vrot.slane %v1551_v51, 7  ;;  %v1559_v61 = vshrl.u32 %v7019_v52, 16  ;;  %v1193_v62 = vadd.f32 %v7251_v53, %v1032_v19  ;;  %v7254_v5 = vadd.f32 %v7253_v56, %v7252_v54  ;;  %1448 = vst [vmem:[#allocation2 + $0xbc] sm:$0x1] %v1447_v39  ;;  %v8163_v39 = vld [vmem:[#allocation8 + $0x170] sm:$0xff]  }
 0x1a7   : > { %v1562_v14 = vshll.u32 %v7019_v52, 16  ;;  %v9071_v24 = vadd.f32 %v7165_v17, %v7164_v10  ;;  %v1400_v52 = vsel %vm8925_vm2, 0, %v1399_v41  ;;  %v1043_v56 = vadd.f32 %v9020_v55, %v9035_v8  ;;  %7575 = vmatprep.subr.bf16.mxu0 %v8163_v39 }
 0x1a8   : > { %v1556_v11 = vor.u32 %v1554_v31, %v1553_v59  ;;  %v1561_v12 = vrot.slane %v1559_v61, 7  ;;  %v1313_v15 = vmax.f32 %v1193_v62, 0.0  ;;  %v1557_v18 = vrot.slane %v1553_v59, 4  ;;  %1401 = vst [vmem:[#allocation2 + $0xc0] sm:$0x1] %v1400_v52 }
 0x1a9   : > { %v1196_v23 = vadd.f32 %v7254_v5, %v1035_v4  ;;  %v1879_v59 = vld [vmem:[#allocation2 + $0x18] sm:$0xf] }
 0x1aa   : > { %v1873_v25 = vsel %vm9057_vm9, %v1556_v11, %v1872_v3  ;;  %v1564_v26 = vor.u32 %v1562_v14, %v1561_v12  ;;  %v1566_v29 = vrot.slane %v1561_v12, 4  ;;  %v7020_v32 = vpack.c.bf16 %v1313_v15, %v1313_v15  ;;  %v7255_v16 = vpop.f32.mrb[24].mxu1  ;;  %v7167_v49 = vpop.f32.mrb[24].mxu0  ;;  %v1883_v15 = vld [vmem:[#allocation2 + $0x20] sm:$0x1] }
 0x1ab   : > { %1874 = vst [vmem:[#allocation2 + $0xc] sm:$0xf] %v1873_v25  ;;  %v1314_v33 = vmax.f32 %v1196_v23, 0.0  ;;  %v7256_v38 = vpop.f32.mrb[25].mxu1  ;;  %v7168_v58 = vpop.f32.mrb[25].mxu0 }
 0x1ac   : > { %v1565_v43 = vsel %vm9067_vm10, %v1557_v18, %v1564_v26  ;;  %v1877_v19 = vsel %vm8925_vm2, %v1566_v29, %v1876_v21  ;;  %v1568_v44 = vshrl.u32 %v7020_v32, 16  ;;  %v7258_v46 = vpop.f32.mrb[26].mxu1  ;;  %v7257_v50 = vadd.f32 %v7256_v38, %v7255_v16  ;;  %v7170_v63 = vpop.f32.mrb[26].mxu0 }
 0x1ad   : > { %1875 = vst [vmem:[#allocation2 + $0x10] sm:$0xf] %v1565_v43  ;;  %1878 = vst [vmem:[#allocation2 + $0x14] sm:$0x1] %v1877_v19  ;;  %v7021_v48 = vpack.c.bf16 %v1314_v33, %v1314_v33  ;;  %v7259_v51 = vpop.f32.mrb[27].mxu1  ;;  %v1571_v54 = vshll.u32 %v7020_v32, 16  ;;  %v9087_v62 = vadd.f32 %v7168_v58, %v7167_v49  ;;  %v1048_v21 = vadd.f32 %v9028_v2, %v9035_v8 }
 0x1ae   : > { %v1570_v53 = vrot.slane %v1568_v44, 7  ;;  %v7260_v57 = vadd.f32 %v7259_v51, %v7258_v46  ;;  %v1201_v61 = vadd.f32 %v7257_v50, %v1040_v34  ;;  %v7171_v5 = vpop.f32.mrb[27].mxu0  ;;  %v1886_v46 = vld [vmem:[#allocation2 + $0x24] sm:$0xf]  ;;  %v1051_v51 = vadd.f32 %v9037_v9, %v9035_v8  ;;  %v1890_v9 = vld [vmem:[#allocation2 + $0x2c] sm:$0x1] }
 0x1af   : > { %v1576_v31 = vshrl.u32 %v7021_v48, 16  ;;  %v1579_v11 = vshll.u32 %v7021_v48, 16  ;;  %v9089_v14 = vadd.f32 %v7171_v5, %v7170_v63 }
 0x1b0   : > { %v1573_v3 = vor.u32 %v1571_v54, %v1570_v53  ;;  %v1204_v4 = vadd.f32 %v7260_v57, %v1043_v56  ;;  %v1315_v12 = vmax.f32 %v1201_v61, 0.0  ;;  %v1574_v23 = vrot.slane %v1570_v53, 4 }
 0x1b1   : > { %v1578_v10 = vrot.slane %v1576_v31, 7 }
 0x1b2   : > { %v1880_v55 = vsel %vm9057_vm9, %v1573_v3, %v1879_v59  ;;  %v1316_v17 = vmax.f32 %v1204_v4, 0.0  ;;  %v7261_v18 = vpop.f32.mrb[28].mxu1  ;;  %v7022_v26 = vpack.c.bf16 %v1315_v12, %v1315_v12  ;;  %v9101_v44 = vpop.f32.mrb[28].mxu0  ;;  %v2048_v52 = vld [vmem:[#allocation2 + $0xc] sm:$0xf] }
 0x1b3   : > { %1881 = vst [vmem:[#allocation2 + $0x18] sm:$0xf] %v1880_v55  ;;  %v1581_v36 = vor.u32 %v1579_v11, %v1578_v10  ;;  %v1583_v25 = vrot.slane %v1578_v10, 4  ;;  %v7262_v29 = vpop.f32.mrb[29].mxu1  ;;  %v1986_v53 = vld [vmem:[#allocation2 + $0xc] sm:$0xf]  ;;  %v1056_v55 = vadd.f32 %v9045_v28, %v9035_v8 }
 0x1b4   : > { %v7023_v32 = vpack.c.bf16 %v1316_v17, %v1316_v17  ;;  %v7263_v16 = vadd.f32 %v7262_v29, %v7261_v18  ;;  %v7264_v33 = vpop.f32.mrb[30].mxu1  ;;  %v2049_v34 = vld [vmem:[#allocation2 + $0x10] sm:$0xf]  ;;  %v1585_v2 = vshrl.u32 %v7022_v26, 16  ;;  %v9105_v54 = vpop.f32.mrb[29].mxu0  ;;  %v1588_v57 = vshll.u32 %v7022_v26, 16 }
 0x1b5   : > { %v9095_v38 = vld [vmem:[#allocation2 + $0x10] sm:$0xf]  ;;  %v1582_v41 = vsel %vm9067_vm10, %v1574_v23, %v1581_v36  ;;  %v1884_v43 = vsel %vm8925_vm2, %v1583_v25, %v1883_v15  ;;  %v7265_v19 = vpop.f32.mrb[31].mxu1  ;;  %v9107_v58 = vcombine.low %v2048_v52, %v2049_v34  ;;  %v9112_v31 = vld [vmem:[#allocation2 + $0x14] ss:$0 sps:$4 sm:$0x11]   ;;  %v1059_v15 = vadd.f32 %v9047_v35, %v9035_v8 }
 0x1b6   : > { %1882 = vst [vmem:[#allocation2 + $0x1c] sm:$0xf] %v1582_v41  ;;  %1885 = vst [vmem:[#allocation2 + $0x20] sm:$0x1] %v1884_v43  ;;  %v1593_v48 = vshrl.u32 %v7023_v32, 16  ;;  %v1209_v50 = vadd.f32 %v7263_v16, %v1048_v21  ;;  %v7266_v49 = vadd.f32 %v7265_v19, %v7264_v33  ;;  %v1587_v56 = vrot.slane %v1585_v2, 7 }
 0x1b7   : > { %v9110_v59 = vcombine.low %v1986_v53, %v9095_v38  ;;  %v9114_v61 = vpop.f32.mrb[30].mxu0  ;;  %v1596_v3 = vshll.u32 %v7023_v32, 16  ;;  %4347 = vmatprep.mubr.bf16.mxu1 %v9107_v58  ;;  %v8165_v17 = vld [vmem:[#allocation8 + $0x130] sm:$0xff]   ;;  %v8166_v18 = vld [vmem:[#allocation8 + $0x1c0] sm:$0xff]   ;;  %v8168_v32 = vld [vmem:[#allocation8 + $0x1c8] sm:$0xff]   ;;  %v2342_v34 = vshll.u32 %v9112_v31, 16  ;;  %v9130_v35 = vadd.f32 %v9063_v7, %v9035_v8 }
 0x1b8   : > { %v1595_v63 = vrot.slane %v1593_v48, 7  ;;  %v1317_v4 = vmax.f32 %v1209_v50, 0.0  ;;  %v1212_v5 = vadd.f32 %v7266_v49, %v1051_v51  ;;  %v9116_v10 = vpop.f32.mrb[31].mxu0  ;;  %v1590_v11 = vor.u32 %v1588_v57, %v1587_v56  ;;  %v8167_v21 = vld [vmem:[#allocation8 + $0x180] sm:$0xff]   ;;  %4348 = vmatmul.mubr.bf16.vlgmr.msra.gmra.mrb[80].mxu1 %v8960_v30  ;;  %7576 = vmatpush3.bf16.msra.mxu0 %v8165_v17  ;;  %v1893_v7 = vld [vmem:[#allocation2 + $0x30] sm:$0xf] }
 0x1b9   : > { %v1591_v12 = vrot.slane %v1587_v56, 4  ;;  %v2337_v33 = vshll.u32 %v9110_v59, 16  ;;  %7675 = vmatprep.subr.bf16.mxu1 %v8166_v18  ;;  %v9138_v19 = vadd.f32 %v9071_v24, %v9035_v8  ;;  %v2335_v49 = vshrl.u32 %v9110_v59, 16 }
 0x1ba   : > { %v1598_v23 = vor.u32 %v1596_v3, %v1595_v63  ;;  %v1600_v36 = vrot.slane %v1595_v63, 4  ;;  %v7024_v25 = vpack.c.bf16 %v1317_v4, %v1317_v4  ;;  %v1318_v26 = vmax.f32 %v1212_v5, 0.0  ;;  %v7267_v29 = vpop.f32.mrb[32].mxu1  ;;  %v2050_v2 = vld [vmem:[#allocation2 + $0x18] sm:$0xf]  ;;  %7676 = vmatpush3.bf16.msra.mxu1 %v8167_v21  ;;  %v9141_v56 = vpop.f32.mrb[32].mxu0 }
 0x1bb   : > { %v1887_v16 = vsel %vm9057_vm9, %v1590_v11, %v1886_v46  ;;  %v7268_v28 = vpop.f32.mrb[33].mxu1  ;;  %v8169_v46 = vld [vmem:[#allocation8 + $0x188] sm:$0xff]   ;;  %v2339_v52 = vrot.slane %v2337_v33, 1  ;;  %7677 = vmatprep.subr.bf16.mxu1 %v8168_v32 }
 0x1bc   : > { %1888 = vst [vmem:[#allocation2 + $0x24] sm:$0xf] %v1887_v16  ;;  %v1599_v30 = vsel %vm9067_vm10, %v1591_v12, %v1598_v23  ;;  %v1891_v39 = vsel %vm8925_vm2, %v1600_v36, %v1890_v9  ;;  %v1602_v41 = vshrl.u32 %v7024_v25, 16  ;;  %v7270_v43 = vpop.f32.mrb[34].mxu1  ;;  %v7025_v48 = vpack.c.bf16 %v1318_v26, %v1318_v26  ;;  %v9145_v9 = vpop.f32.mrb[33].mxu0  ;;  %v8175_v16 = vld [vmem:[#allocation8 + $0x1d0] sm:$0xff]  }
 0x1bd   : > { %1889 = vst [vmem:[#allocation2 + $0x28] sm:$0xf] %v1599_v30  ;;  %1892 = vst [vmem:[#allocation2 + $0x2c] sm:$0x1] %v1891_v39  ;;  %v7269_v50 = vadd.f32 %v7268_v28, %v7267_v29  ;;  %v7271_v51 = vpop.f32.mrb[35].mxu1  ;;  %v1605_v63 = vshll.u32 %v7024_v25, 16  ;;  %v2340_v11 = vor.u32 %v2339_v52, %v2335_v49 }
 0x1be   : > { %v2051_v53 = vld [vmem:[#allocation2 + $0x1c] sm:$0xf]  ;;  %v1604_v57 = vrot.slane %v1602_v41, 7  ;;  %v7272_v3 = vadd.f32 %v7271_v51, %v7270_v43  ;;  %v1610_v4 = vshrl.u32 %v7025_v48, 16  ;;  %v2344_v12 = vrot.slane %v2342_v34, 1  ;;  %v9149_v18 = vpop.f32.mrb[34].mxu0  ;;  %7678 = vmatpush3.bf16.msra.mxu1 %v8169_v46 }
 0x1bf   : > { %v9143_v24 = vcombine.low %v2050_v2, %v2051_v53  ;;  %v1217_v5 = vadd.f32 %v7269_v50, %v1056_v55  ;;  %v9147_v17 = vld [vmem:[#allocation2 + $0x1c] sm:$0xf]  ;;  %v1613_v36 = vshll.u32 %v7025_v48, 16  ;;  %v1897_v26 = vld [vmem:[#allocation2 + $0x38] sm:$0x1]  ;;  %v9152_v32 = vpop.f32.mrb[35].mxu0  ;;  %7679 = vmatprep.subr.bf16.mxu1 %v8175_v16 }
 0x1c0   : > { %v1607_v21 = vor.u32 %v1605_v63, %v1604_v57  ;;  %v1608_v23 = vrot.slane %v1604_v57, 4  ;;  %v1220_v29 = vadd.f32 %v7272_v3, %v1059_v15  ;;  %v2033_v25 = vld [vmem:[#allocation2 + $0xc] sm:$0xe]  ;;  %v1612_v28 = vrot.slane %v1610_v4, 7  ;;  %v1988_v30 = vld [vmem:[#allocation2 + $0x18] sm:$0xf] }
 0x1c1   : > { %4355 = vmatprep.mubr.bf16.mxu1 %v9143_v24  ;;  %v1319_v55 = vmax.f32 %v1217_v5, 0.0  ;;  %v2345_v33 = vsel %vm2321_vm5, %v2340_v11, %v2344_v12  ;;  %v6732_v34 = vcombine.low %v2033_v25, %v9095_v38  ;;  %v8176_v39 = vld [vmem:[#allocation8 + $0x190] sm:$0xff]   ;;  %v8177_v41 = vld [vmem:[#allocation8 + $0x1d8] sm:$0xff]   ;;  %v2583_v2 = vrot.slane %v9112_v31, 1  ;;  %v8186_v12 = vld [vmem:[#allocation8 + $0x1e0] sm:$0xff]  }
 0x1c2   : > { %v1894_v43 = vsel %vm9057_vm9, %v1607_v21, %v1893_v7  ;;  %v1320_v15 = vmax.f32 %v1220_v29, 0.0  ;;  %4194 = vmatprep.mubr.bf16.mxu0 %v2345_v33  ;;  %v7273_v48 = vpop.f32.mrb[36].mxu1  ;;  %v9160_v46 = vcombine.low %v1988_v30, %v9147_v17  ;;  %v8183_v50 = vld [vmem:[#allocation8 + $0x178] sm:$0xff]   ;;  %v1615_v49 = vor.u32 %v1613_v36, %v1612_v28  ;;  %v9163_v7 = vld [vmem:[#allocation2 + $0x20] ss:$0 sps:$4 sm:$0x11]   ;;  %7680 = vmatpush3.bf16.msra.mxu1 %v8176_v39 }
 0x1c3   : > { %v8185_v51 = vld [vmem:[#allocation8 + $0x138] sm:$0xff]   ;;  %1895 = vst [vmem:[#allocation2 + $0x30] sm:$0xf] %v1894_v43  ;;  %v1617_v38 = vrot.slane %v1612_v28, 4  ;;  %v7026_v52 = vpack.c.bf16 %v1319_v55, %v1319_v55  ;;  %4195 = vmatmul.mubr.bf16.gmra.mrb[52].mxu0 %v9110_v59  ;;  %v2582_v53 = vrot.slane %v6732_v34, 1  ;;  %v7274_v57 = vpop.f32.mrb[37].mxu1  ;;  %v9168_v5 = vadd.f32 %v9087_v62, %v9035_v8  ;;  %7577 = vmatprep.subr.bf16.mxu0 %v8183_v50 }
 0x1c4   : > { %v7027_v63 = vpack.c.bf16 %v1320_v15, %v1320_v15  ;;  %v7275_v3 = vadd.f32 %v7274_v57, %v7273_v48  ;;  %v7276_v31 = vpop.f32.mrb[38].mxu1  ;;  %v2349_v4 = vshll.u32 %v9160_v46, 16  ;;  %v8178_v11 = vld [vmem:[#allocation8 + $0x198] sm:$0xff]   ;;  %v1616_v59 = vsel %vm9067_vm10, %v1608_v23, %v1615_v49  ;;  %v2053_v16 = vld [vmem:[#allocation2 + $0x28] sm:$0xf]  ;;  %v9175_v28 = vpop.f32.mrb[36].mxu0  ;;  %7681 = vmatprep.subr.bf16.mxu1 %v8177_v41  ;;  %7578 = vmatpush3.bf16.msra.mxu0 %v8185_v51 }
 0x1c5   : > { %v1898_v21 = vsel %vm8925_vm2, %v1617_v38, %v1897_v26  ;;  %v1619_v36 = vshrl.u32 %v7026_v52, 16  ;;  %v7277_v29 = vpop.f32.mrb[39].mxu1  ;;  %v2347_v25 = vshrl.u32 %v9160_v46, 16  ;;  %1896 = vst [vmem:[#allocation2 + $0x34] sm:$0xf] %v1616_v59  ;;  %v1622_v62 = vshll.u32 %v7026_v52, 16 }
 0x1c6   : > { %1899 = vst [vmem:[#allocation2 + $0x38] sm:$0x1] %v1898_v21  ;;  %v1900_v55 = vld [vmem:[#allocation2 + $0x3c] sm:$0xf]  ;;  %v1627_v33 = vshrl.u32 %v7027_v63, 16  ;;  %v2584_v34 = vsel %vm2578_vm6, %v2582_v53, %v2583_v2  ;;  %v1225_v23 = vadd.f32 %v7275_v3, %v9130_v35  ;;  %v7278_v39 = vadd.f32 %v7277_v29, %v7276_v31  ;;  %v9180_v48 = vpop.f32.mrb[37].mxu0  ;;  %7682 = vmatpush3.bf16.msra.mxu1 %v8178_v11 }
 0x1c7   : > { %v2052_v30 = vld [vmem:[#allocation2 + $0x24] sm:$0xf]  ;;  %v1621_v26 = vrot.slane %v1619_v36, 7  ;;  %4356 = vmatmul.mubr.bf16.gmra.mrb[84].mxu1 %v2584_v34  ;;  %v2351_v43 = vrot.slane %v2349_v4, 1  ;;  %v2354_v15 = vshll.u32 %v9163_v7, 16  ;;  %v1630_v50 = vshll.u32 %v7027_v63, 16  ;;  %7683 = vmatprep.subr.bf16.mxu1 %v8186_v12 }
 0x1c8   : > { %v1629_v41 = vrot.slane %v1627_v33, 7  ;;  %v1321_v51 = vmax.f32 %v1225_v23, 0.0  ;;  %v9182_v49 = vcombine.low %v2052_v30, %v2053_v16  ;;  %v9184_v38 = vpop.f32.mrb[38].mxu0  ;;  %v8187_v2 = vld [vmem:[#allocation8 + $0x1a0] sm:$0xff]   ;;  %v1904_v35 = vld [vmem:[#allocation2 + $0x44] sm:$0x1]  ;;  %v1228_v53 = vadd.f32 %v7278_v39, %v9138_v19 }
 0x1c9   : > { %v1624_v52 = vor.u32 %v1622_v62, %v1621_v26  ;;  %v2352_v57 = vor.u32 %v2351_v43, %v2347_v25  ;;  %v1075_v3 = vadd.f32 %v9089_v14, %v9035_v8  ;;  %v9189_v31 = vpop.f32.mrb[39].mxu0  ;;  %v8188_v4 = vld [vmem:[#allocation8 + $0x1e8] sm:$0xff]   ;;  %v1625_v63 = vrot.slane %v1621_v26, 4  ;;  %v2034_v11 = vld [vmem:[#allocation2 + $0x18] sm:$0xe] }
 0x1ca   : > { %v1632_v59 = vor.u32 %v1630_v50, %v1629_v41  ;;  %v1634_v21 = vrot.slane %v1629_v41, 4  ;;  %v7028_v36 = vpack.c.bf16 %v1321_v51, %v1321_v51  ;;  %4363 = vmatprep.mubr.bf16.mxu1 %v9182_v49  ;;  %v7279_v29 = vpop.f32.mrb[40].mxu1  ;;  %v1322_v19 = vmax.f32 %v1228_v53, 0.0  ;;  %v1990_v33 = vld [vmem:[#allocation2 + $0x24] sm:$0xf]  ;;  %7684 = vmatpush3.bf16.msra.mxu1 %v8187_v2  ;;  %v9205_v51 = vpop.f32.mrb[40].mxu0 }
 0x1cb   : > { %v1901_v16 = vsel %vm9057_vm9, %v1624_v52, %v1900_v55  ;;  %v2356_v25 = vrot.slane %v2354_v15, 1  ;;  %v6733_v62 = vcombine.low %v2034_v11, %v9147_v17  ;;  %v7280_v14 = vpop.f32.mrb[41].mxu1  ;;  %v9195_v34 = vld [vmem:[#allocation2 + $0x28] sm:$0xf]  ;;  %v2586_v41 = vrot.slane %v9163_v7, 1  ;;  %7685 = vmatprep.subr.bf16.mxu1 %v8188_v4  ;;  %v8189_v52 = vld [vmem:[#allocation8 + $0x1a8] sm:$0xff]  }
 0x1cc   : > { %1902 = vst [vmem:[#allocation2 + $0x3c] sm:$0xf] %v1901_v16  ;;  %v1633_v12 = vsel %vm9067_vm10, %v1625_v63, %v1632_v59  ;;  %v1905_v23 = vsel %vm8925_vm2, %v1634_v21, %v1904_v35  ;;  %v1636_v30 = vshrl.u32 %v7028_v36, 16  ;;  %v1639_v26 = vshll.u32 %v7028_v36, 16  ;;  %v7282_v39 = vpop.f32.mrb[42].mxu1  ;;  %v9210_v2 = vpop.f32.mrb[41].mxu0 }
 0x1cd   : > { %v9201_v43 = vld [vmem:[#allocation2 + $0x2c] ss:$0 sps:$4 sm:$0x11]   ;;  %1903 = vst [vmem:[#allocation2 + $0x40] sm:$0xf] %v1633_v12  ;;  %v7029_v17 = vpack.c.bf16 %v1322_v19, %v1322_v19  ;;  %v2357_v55 = vsel %vm2321_vm5, %v2352_v57, %v2356_v25  ;;  %v2585_v15 = vrot.slane %v6733_v62, 1  ;;  %v7281_v53 = vadd.f32 %v7280_v14, %v7279_v29 }
 0x1ce   : > { %1906 = vst [vmem:[#allocation2 + $0x44] sm:$0x1] %v1905_v23  ;;  %v7283_v50 = vpop.f32.mrb[43].mxu1  ;;  %v1638_v35 = vrot.slane %v1636_v30, 7  ;;  %4202 = vmatprep.mubr.bf16.mxu0 %v2357_v55  ;;  %v9208_v59 = vcombine.low %v1990_v33, %v9195_v34  ;;  %v8196_v21 = vld [vmem:[#allocation8 + $0x1f0] sm:$0xff]   ;;  %v2366_v25 = vshll.u32 %v9201_v43, 16  ;;  %7686 = vmatpush3.bf16.msra.mxu1 %v8189_v52 }
 0x1cf   : > { %v7284_v63 = vadd.f32 %v7283_v50, %v7282_v39  ;;  %v1907_v36 = vld [vmem:[#allocation2 + $0x48] sm:$0xf]  ;;  %v1644_v57 = vshrl.u32 %v7029_v17, 16  ;;  %v1647_v11 = vshll.u32 %v7029_v17, 16  ;;  %4203 = vmatmul.mubr.bf16.gmra.mrb[56].mxu0 %v9160_v46  ;;  %v2587_v7 = vsel %vm2578_vm6, %v2585_v15, %v2586_v41  ;;  %v1911_v4 = vld [vmem:[#allocation2 + $0x50] sm:$0x1]  ;;  %7687 = vmatprep.subr.bf16.mxu1 %v8196_v21 }
 0x1d0   : > { %v1641_v16 = vor.u32 %v1639_v26, %v1638_v35  ;;  %4364 = vmatmul.mubr.bf16.gmra.mrb[88].mxu1 %v2587_v7  ;;  %v1233_v19 = vadd.f32 %v7281_v53, %v9168_v5  ;;  %v2055_v62 = vld [vmem:[#allocation2 + $0x34] sm:$0xf]  ;;  %v9216_v14 = vpop.f32.mrb[42].mxu0  ;;  %v1642_v33 = vrot.slane %v1638_v35, 4  ;;  %v2359_v23 = vshrl.u32 %v9208_v59, 16  ;;  %v8197_v26 = vld [vmem:[#allocation8 + $0x1b0] sm:$0xff]  }
 0x1d1   : > { %v1236_v29 = vadd.f32 %v7284_v63, %v1075_v3  ;;  %v1646_v12 = vrot.slane %v1644_v57, 7  ;;  %v2361_v30 = vshll.u32 %v9208_v59, 16  ;;  %v9220_v46 = vpop.f32.mrb[43].mxu0  ;;  %v7175_v17 = vadd.f32 %v9105_v54, %v9101_v44  ;;  %v2054_v55 = vld [vmem:[#allocation2 + $0x30] sm:$0xf]  ;;  %v8202_v57 = vld [vmem:[#allocation8 + $0x200] sm:$0xff]  }
 0x1d2   : > { %v1908_v39 = vsel %vm9057_vm9, %v1641_v16, %v1907_v36  ;;  %v1323_v5 = vmax.f32 %v1233_v19, 0.0  ;;  %v7285_v15 = vpop.f32.mrb[44].mxu1  ;;  %v8200_v41 = vld [vmem:[#allocation8 + $0x1f8] sm:$0xff]   ;;  %v9226_v63 = vcombine.low %v2054_v55, %v2055_v62  ;;  %v2035_v16 = vld [vmem:[#allocation2 + $0x24] sm:$0xe]  ;;  %7688 = vmatpush3.bf16.msra.mxu1 %v8197_v26  ;;  %7811 = vmatprep.subr.bf16.mxu0 %v8202_v57 }
 0x1d3   : > { %v1324_v3 = vmax.f32 %v1236_v29, 0.0  ;;  %1909 = vst [vmem:[#allocation2 + $0x48] sm:$0xf] %v1908_v39  ;;  %v1649_v50 = vor.u32 %v1647_v11, %v1646_v12  ;;  %v1651_v35 = vrot.slane %v1646_v12, 4  ;;  %v2363_v53 = vrot.slane %v2361_v30, 1  ;;  %v7286_v52 = vpop.f32.mrb[45].mxu1  ;;  %7689 = vmatprep.subr.bf16.mxu1 %v8200_v41 }
 0x1d4   : > { %v7030_v7 = vpack.c.bf16 %v1323_v5, %v1323_v5  ;;  %v1080_v36 = vadd.f32 %v7175_v17, %v9035_v8  ;;  %v7288_v19 = vpop.f32.mrb[46].mxu1  ;;  %v2368_v11 = vrot.slane %v2366_v25, 1  ;;  %4371 = vmatprep.mubr.bf16.mxu1 %v9226_v63  ;;  %v9234_v62 = vld [vmem:[#allocation2 + $0x34] sm:$0xf]  ;;  %v2589_v25 = vrot.slane %v9201_v43, 1 }
 0x1d5   : > { %v7031_v47 = vpack.c.bf16 %v1324_v3, %v1324_v3  ;;  %v1650_v44 = vsel %vm9067_vm10, %v1642_v33, %v1649_v50  ;;  %v1912_v54 = vsel %vm8925_vm2, %v1651_v35, %v1911_v4  ;;  %v2364_v21 = vor.u32 %v2363_v53, %v2359_v23  ;;  %v7289_v29 = vpop.f32.mrb[47].mxu1  ;;  %v8201_v12 = vld [vmem:[#allocation8 + $0x1b8] sm:$0xff]   ;;  %v9241_v17 = vld [vmem:[#allocation2 + $0x38] ss:$0 sps:$4 sm:$0x11]  }
 0x1d6   : > { %1910 = vst [vmem:[#allocation2 + $0x4c] sm:$0xf] %v1650_v44  ;;  %1913 = vst [vmem:[#allocation2 + $0x50] sm:$0x1] %v1912_v54  ;;  %v1653_v30 = vshrl.u32 %v7030_v7, 16  ;;  %v1656_v39 = vshll.u32 %v7030_v7, 16  ;;  %v6734_v4 = vcombine.low %v2035_v16, %v9195_v34  ;;  %v7178_v23 = vadd.f32 %v9116_v10, %v9114_v61  ;;  %7690 = vmatpush3.bf16.msra.mxu1 %v8201_v12 }
 0x1d7   : > { %v1661_v5 = vshrl.u32 %v7031_v47, 16  ;;  %v1664_v3 = vshll.u32 %v7031_v47, 16  ;;  %v2369_v33 = vsel %vm2321_vm5, %v2364_v21, %v2368_v11  ;;  %v7287_v50 = vadd.f32 %v7286_v52, %v7285_v15  ;;  %v1992_v53 = vld [vmem:[#allocation2 + $0x30] sm:$0xf]  ;;  %v9243_v47 = vpop.f32.mrb[44].mxu0 }
 0x1d8   : > { %v1655_v26 = vrot.slane %v1653_v30, 7  ;;  %4210 = vmatprep.mubr.bf16.mxu0 %v2369_v33  ;;  %v7290_v35 = vadd.f32 %v7289_v29, %v7288_v19  ;;  %v1914_v41 = vld [vmem:[#allocation2 + $0x54] sm:$0xf]  ;;  %v1918_v57 = vld [vmem:[#allocation2 + $0x5c] sm:$0x1]  ;;  %v2588_v34 = vrot.slane %v6734_v4, 1  ;;  %v1083_v43 = vadd.f32 %v7178_v23, %v9035_v8 }
 0x1d9   : > { %v1663_v55 = vrot.slane %v1661_v5, 7  ;;  %4211 = vmatmul.mubr.bf16.gmra.mrb[60].mxu0 %v9208_v59  ;;  %v9248_v7 = vcombine.low %v1992_v53, %v9234_v62  ;;  %v9250_v61 = vpop.f32.mrb[45].mxu0  ;;  %v1241_v21 = vadd.f32 %v7287_v50, %v1080_v36  ;;  %v2378_v11 = vshll.u32 %v9241_v17, 16  ;;  %v2057_v29 = vld [vmem:[#allocation2 + $0x40] sm:$0xf] }
 0x1da   : > { %v1658_v10 = vor.u32 %v1656_v39, %v1655_v26  ;;  %v1659_v16 = vrot.slane %v1655_v26, 4  ;;  %v7291_v19 = vpop.f32.mrb[48].mxu1  ;;  %v9252_v44 = vpop.f32.mrb[46].mxu0  ;;  %v2590_v54 = vsel %vm2578_vm6, %v2588_v34, %v2589_v25  ;;  %v1244_v59 = vadd.f32 %v7290_v35, %v1083_v43  ;;  %v2036_v33 = vld [vmem:[#allocation2 + $0x30] sm:$0xe] }
 0x1db   : > { %v1666_v15 = vor.u32 %v1664_v3, %v1663_v55  ;;  %v1668_v52 = vrot.slane %v1663_v55, 4  ;;  %v7292_v30 = vpop.f32.mrb[49].mxu1  ;;  %4372 = vmatmul.mubr.bf16.gmra.mrb[92].mxu1 %v2590_v54  ;;  %v2373_v3 = vshll.u32 %v9248_v7, 16  ;;  %v9263_v36 = vpop.f32.mrb[47].mxu0  ;;  %v1325_v25 = vmax.f32 %v1241_v21, 0.0 }
 0x1dc   : > { %v1915_v5 = vsel %vm9057_vm9, %v1658_v10, %v1914_v41  ;;  %v7294_v4 = vpop.f32.mrb[50].mxu1  ;;  %v1326_v23 = vmax.f32 %v1244_v59, 0.0  ;;  %v7181_v26 = vadd.f32 %v9145_v9, %v9141_v56  ;;  %v2056_v55 = vld [vmem:[#allocation2 + $0x3c] sm:$0xf]  ;;  %v2371_v35 = vshrl.u32 %v9248_v7, 16 }
 0x1dd   : > { %v1667_v12 = vsel %vm9067_vm10, %v1659_v16, %v1666_v15  ;;  %v1919_v39 = vsel %vm8925_vm2, %v1668_v52, %v1918_v57  ;;  %1916 = vst [vmem:[#allocation2 + $0x54] sm:$0xf] %v1915_v5  ;;  %v7295_v50 = vpop.f32.mrb[51].mxu1  ;;  %v2375_v53 = vrot.slane %v2373_v3, 1  ;;  %v9268_v41 = vcombine.low %v2056_v55, %v2057_v29  ;;  %v1995_v54 = vld [vmem:[#allocation2 + $0x40] sm:$0xf] }
 0x1de   : > { %1917 = vst [vmem:[#allocation2 + $0x58] sm:$0xf] %v1667_v12  ;;  %1920 = vst [vmem:[#allocation2 + $0x5c] sm:$0x1] %v1919_v39  ;;  %v6735_v57 = vcombine.low %v2036_v33, %v9234_v62  ;;  %v7032_v34 = vpack.c.bf16 %v1325_v25, %v1325_v25  ;;  %v7033_v43 = vpack.c.bf16 %v1326_v23, %v1326_v23  ;;  %v2380_v10 = vrot.slane %v2378_v11, 1 }
 0x1df   : > { %v2592_v16 = vrot.slane %v9241_v17, 1  ;;  %v2376_v15 = vor.u32 %v2375_v53, %v2371_v35  ;;  %v1088_v52 = vadd.f32 %v7181_v26, %v9035_v8  ;;  %4379 = vmatprep.mubr.bf16.mxu1 %v9268_v41  ;;  %v7184_v9 = vadd.f32 %v9152_v32, %v9149_v18  ;;  %v2059_v21 = vld [vmem:[#allocation2 + $0x4c] sm:$0xf]  ;;  %v1994_v3 = vld [vmem:[#allocation2 + $0x3c] sm:$0xf] }
 0x1e0   : > { %v2591_v56 = vrot.slane %v6735_v57, 1  ;;  %v1670_v59 = vshrl.u32 %v7032_v34, 16  ;;  %v1673_v29 = vshll.u32 %v7032_v34, 16  ;;  %v1678_v5 = vshrl.u32 %v7033_v43, 16  ;;  %v2058_v55 = vld [vmem:[#allocation2 + $0x48] sm:$0xf] }
 0x1e1   : > { %v1681_v62 = vshll.u32 %v7033_v43, 16  ;;  %v2381_v12 = vsel %vm2321_vm5, %v2376_v15, %v2380_v10  ;;  %v1091_v17 = vadd.f32 %v7184_v9, %v9035_v8  ;;  %v7293_v39 = vadd.f32 %v7292_v30, %v7291_v19  ;;  %v9279_v33 = vld [vmem:[#allocation2 + $0x44] ss:$0 sps:$4 sm:$0x11]   ;;  %v1921_v53 = vld [vmem:[#allocation2 + $0x60] sm:$0xf] }
 0x1e2   : > { %v2593_v11 = vsel %vm2578_vm6, %v2591_v56, %v2592_v16  ;;  %v7297_v25 = vpop.f32.mrb[52].mxu1  ;;  %v1672_v23 = vrot.slane %v1670_v59, 7  ;;  %v1680_v26 = vrot.slane %v1678_v5, 7  ;;  %4218 = vmatprep.mubr.bf16.mxu0 %v2381_v12  ;;  %v7296_v18 = vadd.f32 %v7295_v50, %v7294_v4  ;;  %v1925_v57 = vld [vmem:[#allocation2 + $0x68] sm:$0x1] }
 0x1e3   : > { %v9281_v32 = vcombine.low %v1994_v3, %v1995_v54  ;;  %v7298_v35 = vpop.f32.mrb[53].mxu1  ;;  %4219 = vmatmul.mubr.bf16.gmra.mrb[64].mxu0 %v9248_v7  ;;  %4380 = vmatmul.mubr.bf16.gmra.mrb[96].mxu1 %v2593_v11  ;;  %v1249_v34 = vadd.f32 %v7293_v39, %v1088_v52  ;;  %v7187_v19 = vadd.f32 %v9180_v48, %v9175_v28  ;;  %v2390_v5 = vshll.u32 %v9279_v33, 16  ;;  %v2037_v12 = vld [vmem:[#allocation2 + $0x3c] sm:$0xe]  ;;  %v9300_v3 = vld [vmem:[#allocation2 + $0x4c] sm:$0xf] }
 0x1e4   : > { %v9286_v30 = vcombine.low %v2058_v55, %v2059_v21  ;;  %v7300_v43 = vpop.f32.mrb[54].mxu1  ;;  %v1675_v10 = vor.u32 %v1673_v29, %v1672_v23  ;;  %v1676_v16 = vrot.slane %v1672_v23, 4  ;;  %v1683_v15 = vor.u32 %v1681_v62, %v1680_v26 }
 0x1e5   : > { %v1685_v4 = vrot.slane %v1680_v26, 4  ;;  %v7301_v50 = vpop.f32.mrb[55].mxu1  ;;  %v1327_v56 = vmax.f32 %v1249_v34, 0.0  ;;  %v1252_v9 = vadd.f32 %v7296_v18, %v1091_v17  ;;  %v2385_v59 = vshll.u32 %v9281_v32, 16 }
 0x1e6   : > { %4387 = vmatprep.mubr.bf16.mxu1 %v9286_v30  ;;  %v1922_v7 = vsel %vm9057_vm9, %v1675_v10, %v1921_v53  ;;  %v1684_v28 = vsel %vm9067_vm10, %v1676_v16, %v1683_v15  ;;  %v2383_v29 = vshrl.u32 %v9281_v32, 16  ;;  %v1096_v11 = vadd.f32 %v7187_v19, %v9035_v8  ;;  %v9302_v53 = vld [vmem:[#allocation2 + $0x50] ss:$0 sps:$4 sm:$0x11]  }
 0x1e7   : > { %v1926_v48 = vsel %vm8925_vm2, %v1685_v4, %v1925_v57  ;;  %1923 = vst [vmem:[#allocation2 + $0x60] sm:$0xf] %v1922_v7  ;;  %1924 = vst [vmem:[#allocation2 + $0x64] sm:$0xf] %v1684_v28  ;;  %v7034_v52 = vpack.c.bf16 %v1327_v56, %v1327_v56  ;;  %v1328_v21 = vmax.f32 %v1252_v9, 0.0  ;;  %v2387_v62 = vrot.slane %v2385_v59, 1 }
 0x1e8   : > { %1927 = vst [vmem:[#allocation2 + $0x68] sm:$0x1] %v1926_v48  ;;  %v6736_v17 = vcombine.low %v2037_v12, %v1995_v54  ;;  %v2595_v39 = vrot.slane %v9279_v33, 1  ;;  %v2392_v55 = vrot.slane %v2390_v5, 1  ;;  %v7190_v10 = vadd.f32 %v9189_v31, %v9184_v38  ;;  %v1996_v56 = vld [vmem:[#allocation2 + $0x48] sm:$0xf] }
 0x1e9   : > { %v1687_v23 = vshrl.u32 %v7034_v52, 16  ;;  %v7035_v26 = vpack.c.bf16 %v1328_v21, %v1328_v21  ;;  %v2388_v18 = vor.u32 %v2387_v62, %v2383_v29  ;;  %v7299_v16 = vadd.f32 %v7298_v35, %v7297_v25  ;;  %v1928_v59 = vld [vmem:[#allocation2 + $0x6c] sm:$0xf]  ;;  %v9315_v7 = vld [vmem:[%s11072_s4] ss:$0 sm:$0xff] }
 0x1ea   : > { %v9304_v57 = vpop.f32.mrb[56].mxu1  ;;  %v2594_v34 = vrot.slane %v6736_v17, 1  ;;  %v7302_v15 = vadd.f32 %v7301_v50, %v7300_v43  ;;  %v1690_v33 = vshll.u32 %v7034_v52, 16  ;;  %v1099_v38 = vadd.f32 %v9315_v7, %v7190_v10  ;;  %v1932_v52 = vld [vmem:[#allocation2 + $0x74] sm:$0x1] }
 0x1eb   : > { %v9308_v8 = vpop.f32.mrb[57].mxu1  ;;  %v1689_v54 = vrot.slane %v1687_v23, 7  ;;  %v1695_v19 = vshrl.u32 %v7035_v26, 16  ;;  %v2393_v4 = vsel %vm2321_vm5, %v2388_v18, %v2392_v55  ;;  %v1257_v31 = vadd.f32 %v7299_v16, %v1096_v11  ;;  %v2061_v17 = vld [vmem:[#allocation2 + $0x58] sm:$0xf] }
 0x1ec   : > { %v7306_v9 = vpop.f32.mrb[58].mxu1  ;;  %4226 = vmatprep.mubr.bf16.mxu0 %v2393_v4  ;;  %v2596_v5 = vsel %vm2578_vm6, %v2594_v34, %v2595_v39  ;;  %v6705_v25 = vcombine.low %v1996_v56, %v9300_v3  ;;  %v1698_v48 = vshll.u32 %v7035_v26, 16  ;;  %v1260_v29 = vadd.f32 %v7302_v15, %v1099_v38  ;;  %v2060_v10 = vld [vmem:[#allocation2 + $0x54] sm:$0xf] }
 0x1ed   : > { %v7307_v35 = vpop.f32.mrb[59].mxu1  ;;  %v1692_v43 = vor.u32 %v1690_v33, %v1689_v54  ;;  %v1693_v50 = vrot.slane %v1689_v54, 4  ;;  %v1697_v28 = vrot.slane %v1695_v19, 7  ;;  %4227 = vmatmul.mubr.bf16.gmra.mrb[68].mxu0 %v9281_v32  ;;  %4388 = vmatmul.mubr.bf16.gmra.mrb[100].mxu1 %v2596_v5  ;;  %v1329_v21 = vmax.f32 %v1257_v31, 0.0  ;;  %v2038_v5 = vld [vmem:[#allocation2 + $0x48] sm:$0xe] }
 0x1ee   : > { %v2397_v62 = vshll.u32 %v6705_v25, 16  ;;  %v2402_v12 = vshll.u32 %v9302_v53, 16  ;;  %v2395_v18 = vshrl.u32 %v6705_v25, 16  ;;  %v1330_v34 = vmax.f32 %v1260_v29, 0.0 }
 0x1ef   : > { %v1929_v11 = vsel %vm9057_vm9, %v1692_v43, %v1928_v59  ;;  %v1700_v39 = vor.u32 %v1698_v48, %v1697_v28  ;;  %v1702_v23 = vrot.slane %v1697_v28, 4  ;;  %v7036_v55 = vpack.c.bf16 %v1329_v21, %v1329_v21  ;;  %v1999_v43 = vld [vmem:[#allocation2 + $0x58] sm:$0xf] }
 0x1f0   : > { %1930 = vst [vmem:[#allocation2 + $0x6c] sm:$0xf] %v1929_v11  ;;  %v2399_v26 = vrot.slane %v2397_v62, 1  ;;  %v7193_v32 = vadd.f32 %v9210_v2, %v9205_v51  ;;  %v9329_v54 = vcombine.low %v2060_v10, %v2061_v17  ;;  %v7037_v4 = vpack.c.bf16 %v1330_v34, %v1330_v34 }
 0x1f1   : > { %v1701_v16 = vsel %vm9067_vm10, %v1693_v50, %v1700_v39  ;;  %v1933_v15 = vsel %vm8925_vm2, %v1702_v23, %v1932_v52  ;;  %v1704_v19 = vshrl.u32 %v7036_v55, 16  ;;  %v2404_v59 = vrot.slane %v2402_v12, 1  ;;  %v1935_v52 = vld [vmem:[#allocation2 + $0x78] sm:$0xf]  ;;  %v1998_v39 = vld [vmem:[#allocation2 + $0x54] sm:$0xf] }
 0x1f2   : > { %v9331_v33 = vpop.f32.mrb[60].mxu1  ;;  %1931 = vst [vmem:[#allocation2 + $0x70] sm:$0xf] %v1701_v16  ;;  %1934 = vst [vmem:[#allocation2 + $0x74] sm:$0x1] %v1933_v15  ;;  %v2400_v56 = vor.u32 %v2399_v26, %v2395_v18  ;;  %v1104_v51 = vadd.f32 %v9315_v7, %v7193_v32  ;;  %4395 = vmatprep.mubr.bf16.mxu1 %v9329_v54  ;;  %v6737_v2 = vcombine.low %v2038_v5, %v9300_v3 }
 0x1f3   : > { %v9333_v38 = vpop.f32.mrb[61].mxu1  ;;  %v2598_v31 = vrot.slane %v9302_v53, 1  ;;  %v1706_v28 = vrot.slane %v1704_v19, 7  ;;  %v1707_v48 = vshll.u32 %v7036_v55, 16  ;;  %v1712_v21 = vshrl.u32 %v7037_v4, 16 }
 0x1f4   : > { %v7312_v50 = vpop.f32.mrb[62].mxu1  ;;  %v2405_v29 = vsel %vm2321_vm5, %v2400_v56, %v2404_v59  ;;  %v2597_v12 = vrot.slane %v6737_v2, 1  ;;  %v7196_v17 = vadd.f32 %v9220_v46, %v9216_v14  ;;  %v7305_v11 = vadd.f32 %v9308_v8, %v9304_v57  ;;  %v8131_v53 = vld [vmem:[#allocation2 + $0x5c] ss:$0 sps:$4 sm:$0x11]  }
 0x1f5   : > { %v7313_v62 = vpop.f32.mrb[63].mxu1  ;;  %4234 = vmatprep.mubr.bf16.mxu0 %v2405_v29  ;;  %v7308_v3 = vadd.f32 %v7307_v35, %v7306_v9  ;;  %v1709_v23 = vor.u32 %v1707_v48, %v1706_v28  ;;  %v1714_v18 = vrot.slane %v1712_v21, 7  ;;  %v1715_v34 = vshll.u32 %v7037_v4, 16  ;;  %v1939_v26 = vld [vmem:[#allocation2 + $0x80] sm:$0x1] }
 0x1f6   : > { %4235 = vmatmul.mubr.bf16.gmra.mrb[72].mxu0 %v6705_v25  ;;  %v6706_v55 = vcombine.low %v1998_v39, %v1999_v43  ;;  %v2599_v32 = vsel %vm2578_vm6, %v2597_v12, %v2598_v31  ;;  %v1107_v10 = vadd.f32 %v9315_v7, %v7196_v17  ;;  %v1265_v16 = vadd.f32 %v7305_v11, %v1104_v51  ;;  %v2063_v15 = vld [vmem:[#allocation2 + $0x64] sm:$0xf]  ;;  %v2062_v4 = vld [vmem:[#allocation2 + $0x60] sm:$0xf]  ;;  %v2039_v29 = vld [vmem:[#allocation2 + $0x54] sm:$0xe] }
 0x1f7   : > { %v1710_v19 = vrot.slane %v1706_v28, 4  ;;  %v1936_v14 = vsel %vm9057_vm9, %v1709_v23, %v1935_v52  ;;  %v1717_v46 = vor.u32 %v1715_v34, %v1714_v18  ;;  %v1719_v57 = vrot.slane %v1714_v18, 4  ;;  %4396 = vmatmul.mubr.bf16.gmra.mrb[104].mxu1 %v2599_v32  ;;  %v2001_v34 = vld [vmem:[#allocation2 + $0x64] sm:$0xf] }
 0x1f8   : > { %1937 = vst [vmem:[#allocation2 + $0x78] sm:$0xf] %v1936_v14  ;;  %v1331_v8 = vmax.f32 %v1265_v16, 0.0  ;;  %v1268_v9 = vadd.f32 %v7308_v3, %v1107_v10  ;;  %v2409_v35 = vshll.u32 %v6706_v55, 16  ;;  %v2414_v25 = vshll.u32 %v8131_v53, 16 }
 0x1f9   : > { %v1718_v59 = vsel %vm9067_vm10, %v1710_v19, %v1717_v46  ;;  %v1940_v5 = vsel %vm8925_vm2, %v1719_v57, %v1939_v26  ;;  %v7199_v51 = vadd.f32 %v9250_v61, %v9243_v47  ;;  %v9356_v2 = vcombine.low %v2062_v4, %v2063_v15  ;;  %v2000_v15 = vld [vmem:[#allocation2 + $0x60] sm:$0xf]  ;;  %v9370_v19 = vld [vmem:[#allocation2 + $0x68] ss:$0 sps:$4 sm:$0x11]  }
 0x1fa   : > { %v9348_v56 = vpop.f32.mrb[64].mxu1  ;;  %1938 = vst [vmem:[#allocation2 + $0x7c] sm:$0xf] %v1718_v59  ;;  %1941 = vst [vmem:[#allocation2 + $0x80] sm:$0x1] %v1940_v5  ;;  %v7038_v28 = vpack.c.bf16 %v1331_v8, %v1331_v8  ;;  %v1332_v48 = vmax.f32 %v1268_v9, 0.0  ;;  %v6738_v11 = vcombine.low %v2039_v29, %v1999_v43  ;;  %v7202_v32 = vadd.f32 %v9263_v36, %v9252_v44 }
 0x1fb   : > { %v9358_v31 = vpop.f32.mrb[65].mxu1  ;;  %v2407_v52 = vshrl.u32 %v6706_v55, 16  ;;  %v2411_v21 = vrot.slane %v2409_v35, 1  ;;  %v1112_v17 = vadd.f32 %v9315_v7, %v7199_v51  ;;  %4403 = vmatprep.mubr.bf16.mxu1 %v9356_v2  ;;  %v2601_v3 = vrot.slane %v8131_v53, 1  ;;  %v1942_v57 = vld [vmem:[#allocation2 + $0x84] sm:$0xf] }
 0x1fc   : > { %v9360_v12 = vpop.f32.mrb[66].mxu1  ;;  %v1721_v61 = vshrl.u32 %v7038_v28, 16  ;;  %v7039_v39 = vpack.c.bf16 %v1332_v48, %v1332_v48  ;;  %v2416_v18 = vrot.slane %v2414_v25, 1  ;;  %v2600_v26 = vrot.slane %v6738_v11, 1  ;;  %v1946_v8 = vld [vmem:[#allocation2 + $0x8c] sm:$0x1] }
 0x1fd   : > { %v9364_v47 = vpop.f32.mrb[67].mxu1  ;;  %v2412_v23 = vor.u32 %v2411_v21, %v2407_v52  ;;  %v7311_v10 = vadd.f32 %v9333_v38, %v9331_v33  ;;  %v7314_v16 = vadd.f32 %v7313_v62, %v7312_v50  ;;  %v1724_v53 = vshll.u32 %v7038_v28, 16  ;;  %v2065_v62 = vld [vmem:[#allocation2 + $0x70] sm:$0xf]  ;;  %v2040_v48 = vld [vmem:[#allocation2 + $0x60] sm:$0xe] }
 0x1fe   : > { %v1723_v43 = vrot.slane %v1721_v61, 7  ;;  %v1729_v14 = vshrl.u32 %v7039_v39, 16  ;;  %v2602_v9 = vsel %vm2578_vm6, %v2600_v26, %v2601_v3  ;;  %v1115_v35 = vadd.f32 %v9315_v7, %v7202_v32  ;;  %v2064_v3 = vld [vmem:[#allocation2 + $0x6c] sm:$0xf] }
 0x1ff   : > { %v2417_v46 = vsel %vm2321_vm5, %v2412_v23, %v2416_v18  ;;  %v1273_v44 = vadd.f32 %v7311_v10, %v1112_v17  ;;  %v6707_v36 = vcombine.low %v2000_v15, %v2001_v34  ;;  %v1732_v50 = vshll.u32 %v7039_v39, 16  ;;  %4404 = vmatmul.mubr.bf16.gmra.mrb[108].mxu1 %v2602_v9  ;;  %v1949_v9 = vld [vmem:[#allocation2 + $0x90] sm:$0xf] }
 0x200   : > { %4242 = vmatprep.mubr.bf16.mxu0 %v2417_v46  ;;  %v1726_v25 = vor.u32 %v1724_v53, %v1723_v43  ;;  %v1727_v33 = vrot.slane %v1723_v43, 4  ;;  %v1731_v38 = vrot.slane %v1729_v14, 7  ;;  %v1276_v5 = vadd.f32 %v7314_v16, %v1115_v35 }
 0x201   : > { %4243 = vmatmul.mubr.bf16.gmra.mrb[76].mxu0 %v6706_v55  ;;  %v1333_v59 = vmax.f32 %v1273_v44, 0.0  ;;  %v2421_v51 = vshll.u32 %v6707_v36, 16  ;;  %v2426_v28 = vshll.u32 %v9370_v19, 16  ;;  %v2419_v11 = vshrl.u32 %v6707_v36, 16 }
 0x202   : > { %v9375_v4 = vpop.f32.mrb[68].mxu1  ;;  %v1943_v21 = vsel %vm9057_vm9, %v1726_v25, %v1942_v57  ;;  %v1734_v29 = vor.u32 %v1732_v50, %v1731_v38  ;;  %v1736_v17 = vrot.slane %v1731_v38, 4  ;;  %v1334_v39 = vmax.f32 %v1276_v5, 0.0  ;;  %v2003_v57 = vld [vmem:[#allocation2 + $0x70] sm:$0xf] }
 0x203   : > { %v9378_v52 = vpop.f32.mrb[69].mxu1  ;;  %1944 = vst [vmem:[#allocation2 + $0x84] sm:$0xf] %v1943_v21  ;;  %v7040_v61 = vpack.c.bf16 %v1333_v59, %v1333_v59  ;;  %v2423_v23 = vrot.slane %v2421_v51, 1  ;;  %v9384_v18 = vcombine.low %v2064_v3, %v2065_v62  ;;  %v6739_v16 = vcombine.low %v2040_v48, %v2001_v34  ;;  %v2002_v62 = vld [vmem:[#allocation2 + $0x6c] sm:$0xf] }
 0x204   : > { %v9382_v55 = vpop.f32.mrb[70].mxu1  ;;  %v1735_v32 = vsel %vm9067_vm10, %v1727_v33, %v1734_v29  ;;  %v1947_v10 = vsel %vm8925_vm2, %v1736_v17, %v1946_v8  ;;  %v1120_v15 = vadd.f32 %v9315_v7, %v8990_v6  ;;  %v7041_v53 = vpack.c.bf16 %v1334_v39, %v1334_v39  ;;  %v9400_v6 = vld [vmem:[#allocation2 + $0x74] ss:$0 sps:$4 sm:$0x11]   ;;  %v1953_v17 = vld [vmem:[#allocation2 + $0x98] sm:$0x1] }
 0x205   : > { %v9386_v26 = vpop.f32.mrb[71].mxu1  ;;  %1945 = vst [vmem:[#allocation2 + $0x88] sm:$0xf] %v1735_v32  ;;  %1948 = vst [vmem:[#allocation2 + $0x8c] sm:$0x1] %v1947_v10  ;;  %v1738_v43 = vshrl.u32 %v7040_v61, 16  ;;  %v2424_v14 = vor.u32 %v2423_v23, %v2419_v11  ;;  %4411 = vmatprep.mubr.bf16.mxu1 %v9384_v18  ;;  %v7317_v8 = vadd.f32 %v9358_v31, %v9348_v56 }
 0x206   : > { %v2428_v46 = vrot.slane %v2426_v28, 1  ;;  %v2603_v35 = vrot.slane %v6739_v16, 1  ;;  %v2604_v44 = vrot.slane %v9370_v19, 1  ;;  %v1123_v34 = vadd.f32 %v9315_v7, %v8992_v13  ;;  %v2067_v56 = vld [vmem:[#allocation2 + $0x7c] sm:$0xf] }
 0x207   : > { %v1740_v25 = vrot.slane %v1738_v43, 7  ;;  %v1741_v33 = vshll.u32 %v7040_v61, 16  ;;  %v1746_v38 = vshrl.u32 %v7041_v53, 16  ;;  %v1281_v5 = vadd.f32 %v7317_v8, %v1120_v15  ;;  %v2066_v16 = vld [vmem:[#allocation2 + $0x78] sm:$0xf] }
 0x208   : > { %v2429_v50 = vsel %vm2321_vm5, %v2424_v14, %v2428_v46  ;;  %v2605_v59 = vsel %vm2578_vm6, %v2603_v35, %v2604_v44  ;;  %v7320_v19 = vadd.f32 %v9364_v47, %v9360_v12  ;;  %v6708_v51 = vcombine.low %v2002_v62, %v2003_v57  ;;  %v2041_v46 = vld [vmem:[#allocation2 + $0x6c] sm:$0xe]  ;;  %v1956_v62 = vld [vmem:[#allocation2 + $0x9c] sm:$0xf] }
 0x209   : > { %4250 = vmatprep.mubr.bf16.mxu0 %v2429_v50  ;;  %v1743_v13 = vor.u32 %v1741_v33, %v1740_v25  ;;  %v1744_v28 = vrot.slane %v1740_v25, 4  ;;  %v1748_v48 = vrot.slane %v1746_v38, 7  ;;  %v1749_v21 = vshll.u32 %v7041_v53, 16  ;;  %4412 = vmatmul.mubr.bf16.gmra.mrb[112].mxu1 %v2605_v59  ;;  %v2005_v50 = vld [vmem:[#allocation2 + $0x7c] sm:$0xf] }
 0x20a   : > { %v9406_v31 = vpop.f32.mrb[72].mxu1  ;;  %4251 = vmatmul.mubr.bf16.gmra.mrb[80].mxu0 %v6707_v36  ;;  %v1335_v11 = vmax.f32 %v1281_v5, 0.0  ;;  %v1284_v3 = vadd.f32 %v7320_v19, %v1123_v34  ;;  %v2433_v61 = vshll.u32 %v6708_v51, 16  ;;  %v2438_v39 = vshll.u32 %v9400_v6, 16 }
 0x20b   : > { %v9408_v29 = vpop.f32.mrb[73].mxu1  ;;  %v1950_v12 = vsel %vm9057_vm9, %v1743_v13, %v1949_v9  ;;  %v1751_v47 = vor.u32 %v1749_v21, %v1748_v48  ;;  %v1753_v32 = vrot.slane %v1748_v48, 4  ;;  %v2431_v10 = vshrl.u32 %v6708_v51, 16  ;;  %v2004_v21 = vld [vmem:[#allocation2 + $0x78] sm:$0xf] }
 0x20c   : > { %v9411_v23 = vpop.f32.mrb[74].mxu1  ;;  %1951 = vst [vmem:[#allocation2 + $0x90] sm:$0xf] %v1950_v12  ;;  %v7042_v36 = vpack.c.bf16 %v1335_v11, %v1335_v11  ;;  %v1336_v43 = vmax.f32 %v1284_v3, 0.0  ;;  %v2435_v53 = vrot.slane %v2433_v61, 1  ;;  %v9417_v14 = vcombine.low %v2066_v16, %v2067_v56 }
 0x20d   : > { %v9415_v15 = vpop.f32.mrb[75].mxu1  ;;  %v1752_v35 = vsel %vm9067_vm10, %v1744_v28, %v1751_v47  ;;  %v1954_v44 = vsel %vm8925_vm2, %v1753_v32, %v1953_v17  ;;  %v6740_v9 = vcombine.low %v2041_v46, %v2003_v57  ;;  %v1128_v8 = vadd.f32 %v9315_v7, %v9000_v22  ;;  %v9431_v22 = vld [vmem:[#allocation2 + $0x80] ss:$0 sps:$4 sm:$0x11]   ;;  %v9439_v3 = vld [vmem:[#allocation2 + $0x88] sm:$0xf] }
 0x20e   : > { %1952 = vst [vmem:[#allocation2 + $0x94] sm:$0xf] %v1752_v35  ;;  %1955 = vst [vmem:[#allocation2 + $0x98] sm:$0x1] %v1954_v44  ;;  %v1755_v34 = vshrl.u32 %v7042_v36, 16  ;;  %v7043_v25 = vpack.c.bf16 %v1336_v43, %v1336_v43  ;;  %v2436_v33 = vor.u32 %v2435_v53, %v2431_v10  ;;  %v2440_v38 = vrot.slane %v2438_v39, 1  ;;  %4419 = vmatprep.mubr.bf16.mxu1 %v9417_v14 }
 0x20f   : > { %v2606_v59 = vrot.slane %v6740_v9, 1  ;;  %v2607_v5 = vrot.slane %v9400_v6, 1  ;;  %v7323_v19 = vadd.f32 %v9378_v52, %v9375_v4  ;;  %v1131_v57 = vadd.f32 %v9315_v7, %v9002_v27  ;;  %v1960_v10 = vld [vmem:[#allocation2 + $0xa4] sm:$0x1] }
 0x210   : > { %v1757_v56 = vrot.slane %v1755_v34, 7  ;;  %v1758_v13 = vshll.u32 %v7042_v36, 16  ;;  %v1763_v28 = vshrl.u32 %v7043_v25, 16  ;;  %v2441_v48 = vsel %vm2321_vm5, %v2436_v33, %v2440_v38  ;;  %v2068_v9 = vld [vmem:[#allocation2 + $0x84] sm:$0xf] }
 0x211   : > { %4258 = vmatprep.mubr.bf16.mxu0 %v2441_v48  ;;  %v2608_v11 = vsel %vm2578_vm6, %v2606_v59, %v2607_v5  ;;  %v1289_v6 = vadd.f32 %v7323_v19, %v1128_v8  ;;  %v7326_v4 = vadd.f32 %v9386_v26, %v9382_v55  ;;  %v6709_v52 = vcombine.low %v2004_v21, %v2005_v50  ;;  %v2042_v33 = vld [vmem:[#allocation2 + $0x78] sm:$0xe] }
 0x212   : > { %v9434_v17 = vpop.f32.mrb[76].mxu1  ;;  %v1760_v61 = vor.u32 %v1758_v13, %v1757_v56  ;;  %v1761_v39 = vrot.slane %v1757_v56, 4  ;;  %v1765_v12 = vrot.slane %v1763_v28, 7  ;;  %v1766_v47 = vshll.u32 %v7043_v25, 16  ;;  %4259 = vmatmul.mubr.bf16.gmra.mrb[84].mxu0 %v6708_v51  ;;  %4420 = vmatmul.mubr.bf16.gmra.mrb[116].mxu1 %v2608_v11  ;;  %v2007_v28 = vld [vmem:[#allocation2 + $0x88] sm:$0xf] }
 0x213   : > { %v9441_v27 = vpop.f32.mrb[77].mxu1  ;;  %v1337_v16 = vmax.f32 %v1289_v6, 0.0  ;;  %v1292_v36 = vadd.f32 %v7326_v4, %v1131_v57  ;;  %v2445_v43 = vshll.u32 %v6709_v52, 16  ;;  %v2450_v53 = vshll.u32 %v9431_v22, 16 }
 0x214   : > { %v9443_v32 = vpop.f32.mrb[78].mxu1  ;;  %v1957_v26 = vsel %vm9057_vm9, %v1760_v61, %v1956_v62  ;;  %v1768_v46 = vor.u32 %v1766_v47, %v1765_v12  ;;  %v1770_v35 = vrot.slane %v1765_v12, 4  ;;  %v2443_v44 = vshrl.u32 %v6709_v52, 16  ;;  %v9465_v6 = vld [vmem:[#allocation2 + $0x8c] ss:$0 sps:$4 sm:$0x11]  }
 0x215   : > { %v9446_v55 = vpop.f32.mrb[79].mxu1  ;;  %1958 = vst [vmem:[#allocation2 + $0x9c] sm:$0xf] %v1957_v26  ;;  %v7044_v51 = vpack.c.bf16 %v1337_v16, %v1337_v16  ;;  %v1338_v8 = vmax.f32 %v1292_v36, 0.0  ;;  %v2447_v34 = vrot.slane %v2445_v43, 1  ;;  %v9451_v25 = vcombine.low %v2068_v9, %v9439_v3 }
 0x216   : > { %v1769_v38 = vsel %vm9067_vm10, %v1761_v39, %v1768_v46  ;;  %v1961_v59 = vsel %vm8925_vm2, %v1770_v35, %v1960_v10  ;;  %v6741_v5 = vcombine.low %v2042_v33, %v2005_v50  ;;  %v1136_v62 = vadd.f32 %v9315_v7, %v9012_v40  ;;  %v2006_v12 = vld [vmem:[#allocation2 + $0x84] sm:$0xf]  ;;  %v1963_v47 = vld [vmem:[#allocation2 + $0xa8] sm:$0xf]  ;;  %v1967_v26 = vld [vmem:[#allocation2 + $0xb0] sm:$0x1] }
 0x217   : > { %1959 = vst [vmem:[#allocation2 + $0xa0] sm:$0xf] %v1769_v38  ;;  %1962 = vst [vmem:[#allocation2 + $0xa4] sm:$0x1] %v1961_v59  ;;  %v1772_v19 = vshrl.u32 %v7044_v51, 16  ;;  %v7045_v57 = vpack.c.bf16 %v1338_v8, %v1338_v8  ;;  %v2448_v56 = vor.u32 %v2447_v34, %v2443_v44  ;;  %v2452_v13 = vrot.slane %v2450_v53, 1  ;;  %4427 = vmatprep.mubr.bf16.mxu1 %v9451_v25 }
 0x218   : > { %v2609_v48 = vrot.slane %v6741_v5, 1  ;;  %v2610_v21 = vrot.slane %v9431_v22, 1  ;;  %v7329_v11 = vadd.f32 %v9408_v29, %v9406_v31  ;;  %v1139_v50 = vadd.f32 %v9315_v7, %v9014_v45  ;;  %v2071_v53 = vld [vmem:[#allocation2 + $0x94] sm:$0xf]  ;;  %v2043_v5 = vld [vmem:[#allocation2 + $0x84] sm:$0xe] }
 0x219   : > { %v1774_v40 = vrot.slane %v1772_v19, 7  ;;  %v1775_v4 = vshll.u32 %v7044_v51, 16  ;;  %v1780_v61 = vshrl.u32 %v7045_v57, 16  ;;  %v2453_v39 = vsel %vm2321_vm5, %v2448_v56, %v2452_v13 }
 0x21a   : > { %4266 = vmatprep.mubr.bf16.mxu0 %v2453_v39  ;;  %v2611_v10 = vsel %vm2578_vm6, %v2609_v48, %v2610_v21  ;;  %v1297_v16 = vadd.f32 %v7329_v11, %v1136_v62  ;;  %v7332_v22 = vadd.f32 %v9415_v15, %v9411_v23  ;;  %v6710_v31 = vcombine.low %v2006_v12, %v2007_v28  ;;  %v2070_v15 = vld [vmem:[#allocation2 + $0x90] sm:$0xf]  ;;  %v9490_v12 = vld [vmem:[#allocation2 + $0x98] ss:$0 sps:$4 sm:$0x11]  }
 0x21b   : > { %v1777_v29 = vor.u32 %v1775_v4, %v1774_v40  ;;  %v1778_v36 = vrot.slane %v1774_v40, 4  ;;  %v1782_v45 = vrot.slane %v1780_v61, 7  ;;  %v1783_v43 = vshll.u32 %v7045_v57, 16  ;;  %4267 = vmatmul.mubr.bf16.gmra.mrb[88].mxu0 %v6709_v52  ;;  %4428 = vmatmul.mubr.bf16.gmra.mrb[120].mxu1 %v2611_v10  ;;  %v9483_v40 = vld [vmem:[#allocation2 + $0x94] sm:$0xf] }
 0x21c   : > { %v1339_v46 = vmax.f32 %v1297_v16, 0.0  ;;  %v1300_v35 = vadd.f32 %v7332_v22, %v1139_v50  ;;  %v2457_v44 = vshll.u32 %v6710_v31, 16  ;;  %v2462_v9 = vshll.u32 %v9465_v6, 16  ;;  %v1449_v50 = vld [vmem:[#allocation2 + $0xc8] sm:$0x1] }
 0x21d   : > { %v1964_v51 = vsel %vm9057_vm9, %v1777_v29, %v1963_v47  ;;  %v1785_v8 = vor.u32 %v1783_v43, %v1782_v45  ;;  %v1787_v34 = vrot.slane %v1782_v45, 4  ;;  %v2455_v23 = vshrl.u32 %v6710_v31, 16  ;;  %v1970_v4 = vld [vmem:[#allocation2 + $0xb4] sm:$0xf] }
 0x21e   : > { %1965 = vst [vmem:[#allocation2 + $0xa8] sm:$0xf] %v1964_v51  ;;  %v7046_v33 = vpack.c.bf16 %v1339_v46, %v1339_v46  ;;  %v1340_v38 = vmax.f32 %v1300_v35, 0.0  ;;  %v2459_v59 = vrot.slane %v2457_v44, 1  ;;  %v9474_v52 = vcombine.low %v2070_v15, %v2071_v53  ;;  %v2073_v29 = vld [vmem:[#allocation2 + $0xa0] sm:$0xf] }
 0x21f   : > { %v1786_v62 = vsel %vm9067_vm10, %v1778_v36, %v1785_v8  ;;  %v1968_v19 = vsel %vm8925_vm2, %v1787_v34, %v1967_v26  ;;  %v6742_v57 = vcombine.low %v2043_v5, %v2007_v28  ;;  %v1144_v56 = vadd.f32 %v9315_v7, %v9024_v60  ;;  %v9493_v36 = vpop.f32.mrb[48].mxu0  ;;  %v2072_v46 = vld [vmem:[#allocation2 + $0x9c] sm:$0xf] }
 0x220   : > { %1966 = vst [vmem:[#allocation2 + $0xac] sm:$0xf] %v1786_v62  ;;  %1969 = vst [vmem:[#allocation2 + $0xb0] sm:$0x1] %v1968_v19  ;;  %v1789_v13 = vshrl.u32 %v7046_v33, 16  ;;  %v7047_v48 = vpack.c.bf16 %v1340_v38, %v1340_v38  ;;  %v2460_v21 = vor.u32 %v2459_v59, %v2455_v23  ;;  %v2464_v11 = vrot.slane %v2462_v9, 1  ;;  %4435 = vmatprep.mubr.bf16.mxu1 %v9474_v52 }
 0x221   : > { %v2612_v61 = vrot.slane %v6742_v57, 1  ;;  %v2613_v39 = vrot.slane %v9465_v6, 1  ;;  %v7335_v28 = vadd.f32 %v9441_v27, %v9434_v17  ;;  %v1147_v60 = vadd.f32 %v9315_v7, %v9026_v0  ;;  %v2008_v7 = vld [vmem:[#allocation2 + $0x90] sm:$0xf]  ;;  %v1974_v44 = vld [vmem:[#allocation2 + $0xbc] sm:$0x1] }
 0x222   : > { %v1791_v47 = vrot.slane %v1789_v13, 7  ;;  %v1792_v10 = vshll.u32 %v7046_v33, 16  ;;  %v1797_v16 = vshrl.u32 %v7047_v48, 16  ;;  %v2465_v22 = vsel %vm2321_vm5, %v2460_v21, %v2464_v11  ;;  %v2044_v33 = vld [vmem:[#allocation2 + $0x90] sm:$0xe]  ;;  %v9507_v59 = vpop.f32.mrb[49].mxu0 }
 0x223   : > { %4274 = vmatprep.mubr.bf16.mxu0 %v2465_v22  ;;  %v2614_v45 = vsel %vm2578_vm6, %v2612_v61, %v2613_v39  ;;  %v1305_v6 = vadd.f32 %v7335_v28, %v1144_v56  ;;  %v7338_v17 = vadd.f32 %v9446_v55, %v9443_v32  ;;  %v1450_v0 = vsel %vm8934_vm4, 0, %v1449_v50  ;;  %v2011_v38 = vld [vmem:[#allocation2 + $0xa0] sm:$0xf]  ;;  %v9513_v19 = vld [vmem:[#allocation2 + $0xa4] ss:$0 sps:$4 sm:$0x11]  }
 0x224   : > { %v1794_v27 = vor.u32 %v1792_v10, %v1791_v47  ;;  %v1799_v43 = vrot.slane %v1797_v16, 7  ;;  %v1800_v53 = vshll.u32 %v7047_v48, 16  ;;  %4275 = vmatmul.mubr.bf16.gmra.mrb[92].mxu0 %v6710_v31  ;;  %4436 = vmatmul.mubr.bf16.gmra.mrb[124].mxu1 %v2614_v45  ;;  %1451 = vst [vmem:[#allocation2 + $0xc8] sm:$0x1] %v1450_v0  ;;  %v6711_v26 = vcombine.low %v2008_v7, %v9483_v40  ;;  %v9515_v57 = vpop.f32.mrb[50].mxu0 }
 0x225   : > { %v1795_v35 = vrot.slane %v1791_v47, 4  ;;  %v1341_v9 = vmax.f32 %v1305_v6, 0.0  ;;  %v1308_v51 = vadd.f32 %v7338_v17, %v1147_v60  ;;  %v9501_v8 = vcombine.low %v2072_v46, %v2073_v29  ;;  %v2010_v11 = vld [vmem:[#allocation2 + $0x9c] sm:$0xf]  ;;  %v1977_v50 = vld [vmem:[#allocation2 + $0xc0] sm:$0xf] }
 0x226   : > { %v1971_v42 = vsel %vm9057_vm9, %v1794_v27, %v1970_v4  ;;  %v1802_v32 = vor.u32 %v1800_v53, %v1799_v43  ;;  %v1804_v55 = vrot.slane %v1799_v43, 4  ;;  %v2474_v34 = vshll.u32 %v9490_v12, 16  ;;  %v9521_v60 = vpop.f32.mrb[51].mxu0  ;;  %v2074_v29 = vld [vmem:[#allocation2 + $0xa8] sm:$0xf] }
 0x227   : > { %1972 = vst [vmem:[#allocation2 + $0xb4] sm:$0xf] %v1971_v42  ;;  %v7048_v31 = vpack.c.bf16 %v1341_v9, %v1341_v9  ;;  %v1342_v23 = vmax.f32 %v1308_v51, 0.0  ;;  %v2469_v15 = vshll.u32 %v6711_v26, 16  ;;  %4443 = vmatprep.mubr.bf16.mxu1 %v9501_v8  ;;  %v2467_v48 = vshrl.u32 %v6711_v26, 16 }
 0x228   : > { %v1803_v5 = vsel %vm9067_vm10, %v1795_v35, %v1802_v32  ;;  %v1975_v62 = vsel %vm8925_vm2, %v1804_v55, %v1974_v44  ;;  %v2476_v4 = vrot.slane %v2474_v34, 1  ;;  %v6743_v61 = vcombine.low %v2044_v33, %v9483_v40  ;;  %v2075_v45 = vld [vmem:[#allocation2 + $0xac] sm:$0xf]  ;;  %v9525_v40 = vld [vmem:[#allocation2 + $0xb0] ss:$0 sps:$4 sm:$0x11]  }
 0x229   : > { %1973 = vst [vmem:[#allocation2 + $0xb8] sm:$0xf] %v1803_v5  ;;  %1976 = vst [vmem:[#allocation2 + $0xbc] sm:$0x1] %v1975_v62  ;;  %v1806_v56 = vshrl.u32 %v7048_v31, 16  ;;  %v7049_v13 = vpack.c.bf16 %v1342_v23, %v1342_v23  ;;  %v2471_v21 = vrot.slane %v2469_v15, 1  ;;  %v9519_v28 = vcombine.low %v2010_v11, %v2011_v38 }
 0x22a   : > { %v2616_v39 = vrot.slane %v9490_v12, 1  ;;  %v1809_v10 = vshll.u32 %v7048_v31, 16  ;;  %v2615_v17 = vrot.slane %v6743_v61, 1  ;;  %v2486_v7 = vshll.u32 %v9513_v19, 16  ;;  %v2013_v27 = vld [vmem:[#allocation2 + $0xac] sm:$0xf] }
 0x22b   : > { %v1808_v47 = vrot.slane %v1806_v56, 7  ;;  %v1814_v16 = vshrl.u32 %v7049_v13, 16  ;;  %v2472_v22 = vor.u32 %v2471_v21, %v2467_v48  ;;  %v1817_v6 = vshll.u32 %v7049_v13, 16  ;;  %v1981_v44 = vld [vmem:[#allocation2 + $0xc8] sm:$0x1] }
 0x22c   : > { %v2481_v0 = vshll.u32 %v9519_v28, 16  ;;  %v2479_v46 = vshrl.u32 %v9519_v28, 16  ;;  %v2617_v9 = vsel %vm2578_vm6, %v2615_v17, %v2616_v39  ;;  %v9530_v42 = vcombine.low %v2074_v29, %v2075_v45  ;;  %v2045_v32 = vld [vmem:[#allocation2 + $0x9c] sm:$0xe]  ;;  %v2012_v15 = vld [vmem:[#allocation2 + $0xa8] sm:$0xf] }
 0x22d   : > { %v1811_v12 = vor.u32 %v1809_v10, %v1808_v47  ;;  %v1816_v43 = vrot.slane %v1814_v16, 7  ;;  %v2477_v53 = vsel %vm2321_vm5, %v2472_v22, %v2476_v4  ;;  %v1812_v35 = vrot.slane %v1808_v47, 4  ;;  %4444 = vmatmul.mubr.bf16.gmra.mrb[128].mxu1 %v2617_v9  ;;  %v2114_v16 = vld [vmem:[#allocation2 + $0x1c] sm:$0xf]  ;;  %v2046_v22 = vld [vmem:[#allocation2 + $0xa8] sm:$0xe] }
 0x22e   : > { %4282 = vmatprep.mubr.bf16.mxu0 %v2477_v53  ;;  %v2483_v51 = vrot.slane %v2481_v0, 1  ;;  %v6744_v23 = vcombine.low %v2045_v32, %v2011_v38  ;;  %v2488_v5 = vrot.slane %v2486_v7, 1  ;;  %4451 = vmatprep.mubr.bf16.mxu1 %v9530_v42  ;;  %v6713_v62 = vcombine.low %v2012_v15, %v2013_v27  ;;  %v2076_v4 = vld [vmem:[#allocation2 + $0xb4] sm:$0xf]  ;;  %v2113_v0 = vld [vmem:[#allocation2 + $0x18] sm:$0xf] }
 0x22f   : > { %v1978_v55 = vsel %vm9057_vm9, %v1811_v12, %v1977_v50  ;;  %v1819_v34 = vor.u32 %v1817_v6, %v1816_v43  ;;  %v1821_v31 = vrot.slane %v1816_v43, 4  ;;  %4283 = vmatmul.mubr.bf16.gmra.mrb[96].mxu0 %v6711_v26  ;;  %v2619_v21 = vrot.slane %v9513_v19, 1  ;;  %v2014_v61 = vld [vmem:[#allocation2 + $0xb4] sm:$0xf]  ;;  %v2116_v15 = vld [vmem:[#allocation2 + $0x28] sm:$0xf] }
 0x230   : > { %1979 = vst [vmem:[#allocation2 + $0xc0] sm:$0xf] %v1978_v55  ;;  %v2484_v33 = vor.u32 %v2483_v51, %v2479_v46  ;;  %v2077_v56 = vld [vmem:[#allocation2 + $0xb8] sm:$0xf]  ;;  %v2618_v48 = vrot.slane %v6744_v23, 1  ;;  %v2493_v11 = vshll.u32 %v6713_v62, 16  ;;  %v6745_v6 = vcombine.low %v2046_v22, %v2013_v27 }
 0x231   : > { %v1820_v13 = vsel %vm9067_vm10, %v1812_v35, %v1819_v34  ;;  %v1982_v1 = vsel %vm8925_vm2, %v1821_v31, %v1981_v44  ;;  %v2015_v26 = vld [vmem:[#allocation2 + $0xb8] sm:$0xf]  ;;  %v2498_v50 = vshll.u32 %v9525_v40, 16  ;;  %v9542_v39 = vld [vmem:[#allocation2 + $0xbc] ss:$0 sps:$4 sm:$0x11]   ;;  %v9544_v37 = vcombine.low %v2076_v4, %v2077_v56 }
 0x232   : > { %1980 = vst [vmem:[#allocation2 + $0xc4] sm:$0xf] %v1820_v13  ;;  %1983 = vst [vmem:[#allocation2 + $0xc8] sm:$0x1] %v1982_v1  ;;  %v2489_v38 = vsel %vm2321_vm5, %v2484_v33, %v2488_v5  ;;  %v2491_v20 = vshrl.u32 %v6713_v62, 16  ;;  %v2495_v47 = vrot.slane %v2493_v11, 1  ;;  %v6714_v10 = vcombine.low %v2014_v61, %v2015_v26 }
 0x233   : > { %4290 = vmatprep.mubr.bf16.mxu0 %v2489_v38  ;;  %v2620_v19 = vsel %vm2578_vm6, %v2618_v48, %v2619_v21  ;;  %v2500_v45 = vrot.slane %v2498_v50, 1  ;;  %v2510_v7 = vshll.u32 %v9542_v39, 16  ;;  %v9549_v12 = vcombine.low %v2113_v0, %v2114_v16  ;;  %v8199_v34 = vld [vmem:[#allocation2 + $0x20] ss:$0 sps:$4 sm:$0x11]  }
 0x234   : > { %v2496_v29 = vor.u32 %v2495_v47, %v2491_v20  ;;  %v2505_v17 = vshll.u32 %v6714_v10, 16  ;;  %v2503_v53 = vshrl.u32 %v6714_v10, 16  ;;  %v2621_v44 = vrot.slane %v6745_v6, 1  ;;  %v2047_v23 = vld [vmem:[#allocation2 + $0xb4] sm:$0xe] }
 0x235   : > { %4452 = vmatmul.mubr.bf16.gmra.mrb[132].mxu1 %v2620_v19  ;;  %v2622_v27 = vrot.slane %v9525_v40, 1  ;;  %v2512_v51 = vrot.slane %v2510_v7, 1  ;;  %v2096_v33 = vld [vmem:[#allocation2 + $0xc] sm:$0xe]  ;;  %v6746_v56 = vcombine.low %v2047_v23, %v2015_v26  ;;  %v8320_v13 = vld [vmem:[#allocation2 + $0x10] sm:$0xf] }
 0x236   : > { %v2501_v43 = vsel %vm2321_vm5, %v2496_v29, %v2500_v45  ;;  %4459 = vmatprep.mubr.bf16.mxu1 %v9544_v37  ;;  %v2507_v46 = vrot.slane %v2505_v17, 1  ;;  %v6779_v1 = vcombine.low %v2096_v33, %v8320_v13  ;;  %v8195_v40 = vld [vmem:[#allocation2 + $0x14] ss:$0 sps:$4 sm:$0x11]   ;;  %v2115_v21 = vld [vmem:[#allocation2 + $0x24] sm:$0xf] }
 0x237   : > { %4291 = vmatmul.mubr.bf16.gmra.mrb[100].mxu0 %v9519_v28  ;;  %v2078_v32 = vld [vmem:[#allocation2 + $0xc0] sm:$0xf]  ;;  %v3254_v28 = vshll.u32 %v9549_v12, 16  ;;  %v2623_v5 = vsel %vm2578_vm6, %v2621_v44, %v2622_v27  ;;  %v2790_v38 = vshll.u32 %v9107_v58, 16  ;;  %v9561_v11 = vcombine.low %v2115_v21, %v2116_v15  ;;  %v9566_v22 = vld [vmem:[#allocation2 + $0x34] sm:$0xf] }
 0x238   : > { %4298 = vmatprep.mubr.bf16.mxu0 %v2501_v43  ;;  %v2508_v9 = vor.u32 %v2507_v46, %v2503_v53  ;;  %v3252_v50 = vshrl.u32 %v9549_v12, 16  ;;  %v3259_v4 = vshll.u32 %v8199_v34, 16  ;;  %v2624_v61 = vrot.slane %v6746_v56, 1  ;;  %v2097_v29 = vld [vmem:[#allocation2 + $0x18] sm:$0xe] }
 0x239   : > { %v2079_v35 = vld [vmem:[#allocation2 + $0xc4] sm:$0xf]  ;;  %v3256_v48 = vrot.slane %v3254_v28, 1  ;;  %v2625_v26 = vrot.slane %v9542_v39, 1  ;;  %v3043_v20 = vrot.slane %v6779_v1, 1  ;;  %v3044_v47 = vrot.slane %v8195_v40, 1 }
 0x23a   : > { %v9555_v55 = vcombine.low %v2078_v32, %v2079_v35  ;;  %v2513_v31 = vsel %vm2321_vm5, %v2508_v9, %v2512_v51  ;;  %v2792_v16 = vrot.slane %v2790_v38, 1  ;;  %v3266_v19 = vshll.u32 %v9561_v11, 16  ;;  %v8205_v6 = vld [vmem:[#allocation2 + $0x2c] ss:$0 sps:$4 sm:$0x11]  }
 0x23b   : > { %v3261_v45 = vrot.slane %v3259_v4, 1  ;;  %v8321_v17 = vld [vmem:[#allocation2 + $0x1c] sm:$0xf]  ;;  %v2626_v7 = vsel %vm2578_vm6, %v2624_v61, %v2625_v26  ;;  %v2117_v43 = vld [vmem:[#allocation2 + $0x30] sm:$0xf]  ;;  %v3045_v39 = vsel %vm2578_vm6, %v3043_v20, %v3044_v47  ;;  %v2788_v44 = vshrl.u32 %v9107_v58, 16 }
 0x23c   : > { %v6780_v0 = vcombine.low %v2097_v29, %v8321_v17  ;;  %v8203_v46 = vld [vmem:[#allocation2 + $0x20] ss:$0 sps:$4 sm:$0x11]   ;;  %v9572_v35 = vcombine.low %v2117_v43, %v9566_v22  ;;  %v2795_v27 = vshll.u32 %v8195_v40, 16  ;;  %v3268_v9 = vrot.slane %v3266_v19, 1  ;;  %v8323_v47 = vld [vmem:[#allocation8 + $0x200] sm:$0xff]  }
 0x23d   : > { %4460 = vmatmul.mubr.bf16.gmra.mrb[136].mxu1 %v2623_v5  ;;  %v2802_v51 = vshll.u32 %v9143_v24, 16  ;;  %v2793_v32 = vor.u32 %v2792_v16, %v2788_v44  ;;  %v3271_v28 = vshll.u32 %v8205_v6, 16  ;;  %v9578_v5 = vld [vmem:[#allocation2 + $0x40] sm:$0xf]  ;;  %v2098_v13 = vld [vmem:[#allocation2 + $0x24] sm:$0xe] }
 0x23e   : > { %4467 = vmatprep.mubr.bf16.mxu1 %v9555_v55  ;;  %v3046_v34 = vrot.slane %v6780_v0, 1  ;;  %v3278_v23 = vshll.u32 %v9572_v35, 16  ;;  %v2797_v15 = vrot.slane %v2795_v27, 1  ;;  %v9580_v56 = vld [vmem:[#allocation2 + $0x38] ss:$0 sps:$4 sm:$0x11]  }
 0x23f   : > { %4299 = vmatmul.mubr.bf16.gmra.mrb[104].mxu0 %v6713_v62  ;;  %v3257_v62 = vor.u32 %v3256_v48, %v3252_v50  ;;  %v8209_v58 = vld [vmem:[#allocation8 + $0x208] sm:$0xff]   ;;  %v3273_v40 = vrot.slane %v3271_v28, 1  ;;  %v2804_v48 = vrot.slane %v2802_v51, 1  ;;  %v2119_v21 = vld [vmem:[#allocation2 + $0x3c] sm:$0xf]  ;;  %v2800_v16 = vshrl.u32 %v9143_v24, 16 }
 0x240   : > { %4306 = vmatprep.mubr.bf16.mxu0 %v2513_v31  ;;  %v3047_v31 = vrot.slane %v8203_v46, 1  ;;  %v2798_v1 = vsel %vm2321_vm5, %v2793_v32, %v2797_v15  ;;  %v8322_v38 = vld [vmem:[#allocation2 + $0x28] sm:$0xf]  ;;  %v8206_v61 = vld [vmem:[#allocation2 + $0x2c] ss:$0 sps:$4 sm:$0x11]   ;;  %v9586_v20 = vcombine.low %v2119_v21, %v9578_v5 }
 0x241   : > { %v3262_v53 = vsel %vm2321_vm5, %v3257_v62, %v3261_v45  ;;  %v6781_v50 = vcombine.low %v2098_v13, %v8322_v38  ;;  %v3280_v26 = vrot.slane %v3278_v23, 1  ;;  %v2807_v19 = vshll.u32 %v8203_v46, 16  ;;  %v9594_v44 = vld [vmem:[#allocation2 + $0x4c] sm:$0xf]  ;;  %v2099_v24 = vld [vmem:[#allocation2 + $0x30] sm:$0xe] }
 0x242   : > { %v3048_v4 = vsel %vm2578_vm6, %v3046_v34, %v3047_v31  ;;  %v3276_v29 = vshrl.u32 %v9572_v35, 16  ;;  %v3283_v45 = vshll.u32 %v9580_v56, 16  ;;  %v2814_v6 = vshll.u32 %v9182_v49, 16  ;;  %v9596_v27 = vld [vmem:[#allocation2 + $0x44] ss:$0 sps:$4 sm:$0x11]  }
 0x243   : > { %v2805_v17 = vor.u32 %v2804_v48, %v2800_v16  ;;  %v3049_v0 = vrot.slane %v6781_v50, 1  ;;  %v2121_v28 = vld [vmem:[#allocation2 + $0x48] sm:$0xf]  ;;  %v8223_v34 = vld [vmem:[#allocation8 + $0x218] sm:$0xff]   ;;  %v2812_v13 = vshrl.u32 %v9182_v49, 16  ;;  %v3295_v48 = vshll.u32 %v9596_v27, 16 }
 0x244   : > { %v3281_v43 = vor.u32 %v3280_v26, %v3276_v29  ;;  %v3285_v46 = vrot.slane %v3283_v45, 1  ;;  %v8210_v15 = vld [vmem:[#allocation2 + $0x38] ss:$0 sps:$4 sm:$0x11]   ;;  %v2826_v21 = vshll.u32 %v9226_v63, 16 }
 0x245   : > { %4468 = vmatmul.mubr.bf16.gmra.mrb[140].mxu1 %v2626_v7  ;;  %v3050_v7 = vrot.slane %v8206_v61, 1  ;;  %v8230_v38 = vld [vmem:[#allocation8 + $0x220] sm:$0xff]   ;;  %v9610_v16 = vld [vmem:[#allocation2 + $0x44] ss:$0 sps:$4 sm:$0x11]  }
 0x246   : > { %4669 = vmatprep.mubr.bf16.mxu1 %v3262_v53  ;;  %v2809_v53 = vrot.slane %v2807_v19, 1  ;;  %v3286_v23 = vsel %vm2321_vm5, %v3281_v43, %v3285_v46  ;;  %v9612_v49 = vld [vmem:[#allocation2 + $0x58] sm:$0xf]  ;;  %v3297_v19 = vrot.slane %v3295_v48, 1  ;;  %v8325_v45 = vld [vmem:[#allocation2 + $0x40] sm:$0xf] }
 0x247   : > { %4307 = vmatmul.mubr.bf16.gmra.mrb[108].mxu0 %v6714_v10  ;;  %v3264_v10 = vshrl.u32 %v9561_v11, 16  ;;  %v3051_v31 = vsel %vm2578_vm6, %v3049_v0, %v3050_v7  ;;  %v9614_v29 = vld [vmem:[#allocation2 + $0x50] ss:$0 sps:$4 sm:$0x11]   ;;  %v2123_v0 = vld [vmem:[#allocation2 + $0x54] sm:$0xf] }
 0x248   : > { %4508 = vmatprep.mubr.bf16.mxu0 %v3045_v39  ;;  %v3290_v39 = vshll.u32 %v9586_v20, 16  ;;  %v2810_v32 = vsel %vm2321_vm5, %v2805_v17, %v2809_v53  ;;  %v2828_v17 = vrot.slane %v2826_v21, 1  ;;  %v8237_v7 = vld [vmem:[#allocation8 + $0x228] sm:$0xff]   ;;  %v2824_v46 = vshrl.u32 %v9226_v63, 16 }
 0x249   : > { %v3269_v33 = vor.u32 %v3268_v9, %v3264_v10  ;;  %v8324_v9 = vld [vmem:[#allocation2 + $0x34] sm:$0xf]  ;;  %v2816_v10 = vrot.slane %v2814_v6, 1  ;;  %v9629_v63 = vld [vmem:[#allocation2 + $0x50] ss:$0 sps:$4 sm:$0x11]  }
 0x24a   : > { %v6782_v51 = vcombine.low %v2099_v24, %v8324_v9  ;;  %v9621_v24 = vcombine.low %v2123_v0, %v9612_v49  ;;  %v2831_v9 = vshll.u32 %v8210_v15, 16  ;;  %v9634_v21 = vld [vmem:[#allocation2 + $0x5c] ss:$0 sps:$4 sm:$0x11]   ;;  %v9651_v0 = vadd.f32 %v9521_v60, %v9515_v57 }
 0x24b   : > { %v3274_v62 = vsel %vm2321_vm5, %v3269_v33, %v3273_v40  ;;  %v3292_v33 = vrot.slane %v3290_v39, 1  ;;  %v3288_v40 = vshrl.u32 %v9586_v20, 16 }
 0x24c   : > { %v3052_v50 = vrot.slane %v6782_v51, 1 }
 0x24d   : > { %4670 = vmatmul.mubr.bf16.vlgmr.msra.gmra.mrb[144].mxu1 %v9549_v12  ;;  %v8216_v12 = vld [vmem:[#allocation8 + $0x210] sm:$0xff]   ;;  %v3293_v26 = vor.u32 %v3292_v33, %v3288_v40  ;;  %v2850_v40 = vshll.u32 %v9286_v30, 16 }
 0x24e   : > { %4677 = vmatprep.mubr.bf16.mxu1 %v3274_v62 }
 0x24f   : > { %4509 = vmatmul.mubr.bf16.vlgmr.msra.gmra.mrb[112].mxu0 %v2798_v1  ;;  %v2819_v1 = vshll.u32 %v8206_v61, 16  ;;  %v2100_v61 = vld [vmem:[#allocation2 + $0x3c] sm:$0xe]  ;;  %v3298_v39 = vsel %vm2321_vm5, %v3293_v26, %v3297_v19  ;;  %v2852_v60 = vrot.slane %v2850_v40, 1 }
 0x250   : > { %4516 = vmatprep.mubr.bf16.mxu0 %v3048_v4  ;;  %7812 = vmatpush3.bf16.msra.mxu0 %v8323_v47  ;;  %v3053_v4 = vrot.slane %v8210_v15, 1  ;;  %v9631_v15 = vld [vmem:[#allocation2 + $0x64] sm:$0xf] }
 0x251   : > { %7813 = vmatprep.subr.bf16.mxu0 %v8209_v58  ;;  %v2821_v62 = vrot.slane %v2819_v1, 1  ;;  %v2833_v1 = vrot.slane %v2831_v9, 1  ;;  %v8220_v9 = vld [vmem:[#allocation2 + $0x5c] ss:$0 sps:$4 sm:$0x11]  }
 0x252   : > { %v3054_v43 = vsel %vm2578_vm6, %v3052_v50, %v3053_v4 }
 0x254   : > { %7814 = vmatpush3.bf16.msra.mxu0 %v8209_v58  ;;  %v9603_v58 = vcombine.low %v2121_v28, %v9594_v44  ;;  %v2829_v28 = vor.u32 %v2828_v17, %v2824_v46  ;;  %v2843_v17 = vshll.u32 %v9610_v16, 16  ;;  %v9661_v46 = vld [vmem:[#allocation2 + $0x70] sm:$0xf] }
 0x255   : > { %7815 = vmatprep.subr.bf16.mxu0 %v8216_v12  ;;  %4678 = vmatmul.mubr.bf16.gmra.mrb[148].mxu1 %v9561_v11  ;;  %v2817_v11 = vor.u32 %v2816_v10, %v2812_v13  ;;  %v2838_v10 = vshll.u32 %v9268_v41, 16  ;;  %v3314_v13 = vshll.u32 %v9621_v24, 16 }
 0x256   : > { %4685 = vmatprep.mubr.bf16.mxu1 %v3286_v23  ;;  %v3302_v47 = vshll.u32 %v9603_v58, 16  ;;  %v3300_v51 = vshrl.u32 %v9603_v58, 16  ;;  %v2101_v23 = vld [vmem:[#allocation2 + $0x48] sm:$0xe]  ;;  %v2834_v50 = vsel %vm2321_vm5, %v2829_v28, %v2833_v1  ;;  %v2874_v28 = vshll.u32 %v9356_v2, 16 }
 0x257   : > { %4517 = vmatmul.mubr.bf16.gmra.mrb[116].mxu0 %v2810_v32  ;;  %v2822_v6 = vsel %vm2321_vm5, %v2817_v11, %v2821_v62  ;;  %v3307_v32 = vshll.u32 %v9614_v29, 16  ;;  %v8326_v11 = vld [vmem:[#allocation2 + $0x4c] sm:$0xf]  ;;  %v2840_v26 = vrot.slane %v2838_v10, 1  ;;  %v8251_v62 = vld [vmem:[#allocation8 + $0x238] sm:$0xff]   ;;  %v3316_v19 = vrot.slane %v3314_v13, 1 }
 0x258   : > { %4524 = vmatprep.mubr.bf16.mxu0 %v3051_v31  ;;  %7816 = vmatpush3.bf16.msra.mxu0 %v8216_v12  ;;  %v6783_v12 = vcombine.low %v2100_v61, %v8325_v45  ;;  %v3304_v53 = vrot.slane %v3302_v47, 1  ;;  %v8244_v31 = vld [vmem:[#allocation8 + $0x230] sm:$0xff]   ;;  %v2125_v47 = vld [vmem:[#allocation2 + $0x60] sm:$0xf]  ;;  %v9668_v13 = vld [vmem:[#allocation2 + $0x70] sm:$0xf] }
 0x259   : > { %7817 = vmatprep.subr.bf16.mxu0 %v8223_v34  ;;  %v3309_v48 = vrot.slane %v3307_v32, 1  ;;  %v9641_v45 = vcombine.low %v2125_v47, %v9631_v15  ;;  %v8327_v32 = vld [vmem:[#allocation2 + $0x58] sm:$0xf] }
 0x25a   : > { %v3305_v33 = vor.u32 %v3304_v53, %v3300_v51 }
 0x25b   : > { %v3326_v51 = vshll.u32 %v9641_v45, 16 }
 0x25c   : > { %7818 = vmatpush3.bf16.msra.mxu0 %v8223_v34  ;;  %v3056_v34 = vrot.slane %v9610_v16, 1  ;;  %v3310_v61 = vsel %vm2321_vm5, %v3305_v33, %v3309_v48  ;;  %v3059_v16 = vrot.slane %v9629_v63, 1  ;;  %v9666_v33 = vld [vmem:[#allocation2 + $0x7c] sm:$0xf]  ;;  %v2848_v48 = vshrl.u32 %v9286_v30, 16 }
 0x25d   : > { %7819 = vmatprep.subr.bf16.mxu0 %v8230_v38  ;;  %4686 = vmatmul.mubr.bf16.gmra.mrb[152].mxu1 %v9572_v35  ;;  %v3055_v35 = vrot.slane %v6783_v12, 1  ;;  %v9645_v12 = vadd.f32 %v9507_v59, %v9493_v36  ;;  %v3319_v36 = vshll.u32 %v9634_v21, 16  ;;  %v9658_v59 = vld [vmem:[#allocation2 + $0x6c] sm:$0xe] }
 0x25e   : > { %4693 = vmatprep.mubr.bf16.mxu1 %v3298_v39  ;;  %v3312_v39 = vshrl.u32 %v9621_v24, 16  ;;  %v6787_v1 = vcombine.low %v9658_v59, %v9668_v13 }
 0x25f   : > { %4525 = vmatmul.mubr.bf16.gmra.mrb[120].mxu0 %v2822_v6  ;;  %v3057_v4 = vsel %vm2578_vm6, %v3055_v35, %v3056_v34  ;;  %v2836_v6 = vshrl.u32 %v9268_v41, 16  ;;  %v8328_v35 = vld [vmem:[#allocation2 + $0x64] sm:$0xf]  ;;  %v3321_v40 = vrot.slane %v3319_v36, 1 }
 0x260   : > { %4532 = vmatprep.mubr.bf16.mxu0 %v3054_v43  ;;  %7820 = vmatpush3.bf16.msra.mxu0 %v8230_v38  ;;  %v6784_v38 = vcombine.low %v2101_v23, %v8326_v11  ;;  %v9654_v43 = vld [vmem:[#allocation2 + $0x60] sm:$0xe]  ;;  %v3317_v57 = vor.u32 %v3316_v19, %v3312_v39  ;;  %v2127_v23 = vld [vmem:[#allocation2 + $0x6c] sm:$0xf]  ;;  %v9681_v19 = vld [vmem:[#allocation2 + $0x78] sm:$0xe] }
 0x261   : > { %7821 = vmatprep.subr.bf16.mxu0 %v8237_v7  ;;  %v2841_v53 = vor.u32 %v2840_v26, %v2836_v6  ;;  %v6786_v34 = vcombine.low %v9654_v43, %v8328_v35  ;;  %v9673_v11 = vld [vmem:[#allocation2 + $0x68] ss:$0 sps:$4 sm:$0x11]   ;;  %v2855_v26 = vshll.u32 %v9629_v63, 16  ;;  %v2853_v6 = vor.u32 %v2852_v60, %v2848_v48 }
 0x262   : > { %v3058_v41 = vrot.slane %v6784_v38, 1  ;;  %v9676_v38 = vcombine.low %v2127_v23, %v9661_v46  ;;  %v3322_v30 = vsel %vm2321_vm5, %v3317_v57, %v3321_v40  ;;  %v3062_v63 = vrot.slane %v8220_v9, 1  ;;  %v8224_v36 = vld [vmem:[#allocation2 + $0x68] ss:$0 sps:$4 sm:$0x11]  }
 0x263   : > { %v2867_v39 = vshll.u32 %v8220_v9, 16  ;;  %v9697_v60 = vld [vmem:[#allocation2 + $0x88] sm:$0xf]  ;;  %v8227_v35 = vld [vmem:[#allocation2 + $0x74] ss:$0 sps:$4 sm:$0x11]  }
 0x264   : > { %7822 = vmatpush3.bf16.msra.mxu0 %v8237_v7  ;;  %v2862_v7 = vshll.u32 %v9329_v54, 16  ;;  %v3338_v57 = vshll.u32 %v9676_v38, 16  ;;  %v2876_v40 = vrot.slane %v2874_v28, 1 }
 0x265   : > { %7823 = vmatprep.subr.bf16.mxu0 %v8244_v31  ;;  %4694 = vmatmul.mubr.bf16.gmra.mrb[156].mxu1 %v9586_v20  ;;  %v2102_v20 = vld [vmem:[#allocation2 + $0x54] sm:$0xe] }
 0x266   : > { %4701 = vmatprep.mubr.bf16.mxu1 %v3310_v61  ;;  %v6785_v10 = vcombine.low %v2102_v20, %v8327_v32  ;;  %v2864_v47 = vrot.slane %v2862_v7, 1  ;;  %v2129_v61 = vld [vmem:[#allocation2 + $0x78] sm:$0xf]  ;;  %v2860_v7 = vshrl.u32 %v9329_v54, 16  ;;  %v8330_v32 = vld [vmem:[#allocation2 + $0x7c] sm:$0xf] }
 0x267   : > { %4533 = vmatmul.mubr.bf16.gmra.mrb[124].mxu0 %v2834_v50  ;;  %v9686_v20 = vcombine.low %v2129_v61, %v9666_v33  ;;  %v2857_v54 = vrot.slane %v2855_v26, 1 }
 0x268   : > { %4540 = vmatprep.mubr.bf16.mxu0 %v3057_v4  ;;  %7824 = vmatpush3.bf16.msra.mxu0 %v8244_v31  ;;  %v2845_v31 = vrot.slane %v2843_v17, 1  ;;  %v3060_v4 = vsel %vm2578_vm6, %v3058_v41, %v3059_v16  ;;  %v3328_v17 = vrot.slane %v3326_v51, 1  ;;  %v3061_v43 = vrot.slane %v6785_v10, 1  ;;  %v9706_v51 = vld [vmem:[#allocation2 + $0x80] ss:$0 sps:$4 sm:$0x11]  }
 0x269   : > { %7825 = vmatprep.subr.bf16.mxu0 %v8251_v62  ;;  %v3324_v41 = vshrl.u32 %v9641_v45, 16  ;;  %v3331_v16 = vshll.u32 %v9673_v11, 16  ;;  %v6788_v10 = vcombine.low %v9681_v19, %v8330_v32  ;;  %v2865_v9 = vor.u32 %v2864_v47, %v2860_v7 }
 0x26a   : > { %v2846_v50 = vsel %vm2321_vm5, %v2841_v53, %v2845_v31  ;;  %v9691_v53 = vld [vmem:[#allocation2 + $0x74] ss:$0 sps:$4 sm:$0x11]   ;;  %v3350_v48 = vshll.u32 %v9686_v20, 16  ;;  %v3063_v61 = vsel %vm2578_vm6, %v3061_v43, %v3062_v63  ;;  %v3064_v47 = vrot.slane %v6786_v34, 1 }
 0x26b   : > { %v3329_v23 = vor.u32 %v3328_v17, %v3324_v41  ;;  %v3333_v26 = vrot.slane %v3331_v16, 1  ;;  %v3340_v7 = vrot.slane %v3338_v57, 1  ;;  %v2872_v32 = vshrl.u32 %v9356_v2, 16  ;;  %v9719_v16 = vld [vmem:[#allocation2 + $0x8c] ss:$0 sps:$4 sm:$0x11]  }
 0x26c   : > { %7826 = vmatpush3.bf16.msra.mxu0 %v8251_v62  ;;  %v9688_v62 = vld [vmem:[#allocation2 + $0x84] sm:$0xe]  ;;  %v3065_v17 = vrot.slane %v8224_v36, 1  ;;  %v3343_v41 = vshll.u32 %v9691_v53, 16  ;;  %v2879_v31 = vshll.u32 %v8224_v36, 16  ;;  %v3336_v63 = vshrl.u32 %v9676_v38, 16 }
 0x26d   : > { %4702 = vmatmul.mubr.bf16.gmra.mrb[160].mxu1 %v9603_v58  ;;  %v2886_v58 = vshll.u32 %v9384_v18, 16  ;;  %v3334_v43 = vsel %vm2321_vm5, %v3329_v23, %v3333_v26  ;;  %v3352_v34 = vrot.slane %v3350_v48, 1  ;;  %v3067_v2 = vrot.slane %v6787_v1, 1 }
 0x26e   : > { %4709 = vmatprep.mubr.bf16.mxu1 %v3322_v30  ;;  %v2869_v30 = vrot.slane %v2867_v39, 1  ;;  %v2877_v39 = vor.u32 %v2876_v40, %v2872_v32  ;;  %v3068_v36 = vrot.slane %v8227_v35, 1  ;;  %v3355_v57 = vshll.u32 %v9706_v51, 16 }
 0x26f   : > { %4541 = vmatmul.mubr.bf16.gmra.mrb[128].mxu0 %v2846_v50  ;;  %v2131_v50 = vld [vmem:[#allocation2 + $0x84] sm:$0xf]  ;;  %v2888_v23 = vrot.slane %v2886_v58, 1  ;;  %v3066_v40 = vsel %vm2578_vm6, %v3064_v47, %v3065_v17  ;;  %v2881_v48 = vrot.slane %v2879_v31, 1  ;;  %v3345_v59 = vrot.slane %v3343_v41, 1 }
 0x270   : > { %4548 = vmatprep.mubr.bf16.mxu0 %v3060_v4  ;;  %v2858_v4 = vsel %vm2321_vm5, %v2853_v6, %v2857_v54  ;;  %v9709_v19 = vcombine.low %v2131_v50, %v9697_v60  ;;  %v2870_v28 = vsel %vm2321_vm5, %v2865_v9, %v2869_v30  ;;  %v9714_v6 = vld [vmem:[#allocation2 + $0x80] ss:$0 sps:$4 sm:$0x11]   ;;  %v3348_v9 = vshrl.u32 %v9686_v20, 16  ;;  %v9729_v30 = vld [vmem:[#allocation2 + $0x94] sm:$0xf] }
 0x271   : > { %v2891_v50 = vshll.u32 %v8227_v35, 16  ;;  %v2884_v1 = vshrl.u32 %v9384_v18, 16  ;;  %v3367_v26 = vshll.u32 %v9719_v16, 16  ;;  %v9737_v58 = vsel %vm2578_vm6, %v3067_v2, %v3068_v36  ;;  %v2133_v31 = vld [vmem:[#allocation2 + $0x90] sm:$0xf] }
 0x272   : > { %v3362_v54 = vshll.u32 %v9709_v19, 16  ;;  %v3353_v13 = vor.u32 %v3352_v34, %v3348_v9  ;;  %v3357_v35 = vrot.slane %v3355_v57, 1  ;;  %v9745_v41 = vcombine.low %v2133_v31, %v9729_v30  ;;  %v2163_v18 = vld [vmem:[#allocation2 + $0x30] sm:$0xe]  ;;  %v2164_v36 = vld [vmem:[#allocation2 + $0x3c] sm:$0xe] }
 0x273   : > { %v9740_v32 = vor.u32 %v2888_v23, %v2884_v1  ;;  %v9742_v17 = vrot.slane %v2891_v50, 1  ;;  %v6829_v2 = vcombine.low %v2163_v18, %v9566_v22  ;;  %v3514_v9 = vrot.slane %v9580_v56, 1  ;;  %v2165_v50 = vld [vmem:[#allocation2 + $0x48] sm:$0xe]  ;;  %v9780_v1 = vld [vmem:[#allocation2 + $0xa0] sm:$0xf] }
 0x274   : > { %v3364_v47 = vrot.slane %v3362_v54, 1  ;;  %v3358_v57 = vsel %vm2321_vm5, %v3353_v13, %v3357_v35  ;;  %v9758_v54 = vrot.slane %v3367_v26, 1  ;;  %v6830_v23 = vcombine.low %v2164_v36, %v9578_v5  ;;  %v9782_v26 = vld [vmem:[#allocation2 + $0xa4] ss:$0 sps:$4 sm:$0x11]  }
 0x275   : > { %4710 = vmatmul.mubr.bf16.gmra.mrb[164].mxu1 %v9621_v24  ;;  %v3341_v24 = vor.u32 %v3340_v7, %v3336_v63  ;;  %v9734_v7 = vsel %vm2321_vm5, %v2877_v39, %v2881_v48  ;;  %v3360_v63 = vshrl.u32 %v9709_v19, 16  ;;  %v11105_v39 = vshll.u32 %v9417_v14, 16  ;;  %v9788_v31 = vld [vmem:[#allocation2 + $0xb0] ss:$0 sps:$4 sm:$0x11]  }
 0x276   : > { %4717 = vmatprep.mubr.bf16.mxu1 %v3334_v43  ;;  %v6831_v48 = vcombine.low %v2165_v50, %v9594_v44  ;;  %v3516_v13 = vrot.slane %v6830_v23, 1  ;;  %v3520_v56 = vrot.slane %v9614_v29, 1  ;;  %v3523_v35 = vrot.slane %v9634_v21, 1  ;;  %v2168_v18 = vld [vmem:[#allocation2 + $0x6c] sm:$0xe] }
 0x277   : > { %4549 = vmatmul.mubr.bf16.gmra.mrb[132].mxu0 %v2858_v4  ;;  %v3070_v4 = vrot.slane %v6788_v10, 1  ;;  %v3346_v10 = vsel %vm2321_vm5, %v3341_v24, %v3345_v59  ;;  %v9753_v34 = vrot.slane %v11105_v39, 1  ;;  %v9763_v24 = vld [vmem:[%s11073_s5] ss:$0 sm:$0xff]  ;;  %v9767_v22 = vor.u32 %v3364_v47, %v3360_v63  ;;  %v2167_v47 = vld [vmem:[#allocation2 + $0x60] sm:$0xe] }
 0x278   : > { %4556 = vmatprep.mubr.bf16.mxu0 %v3063_v61  ;;  %v3071_v61 = vrot.slane %v9714_v6, 1  ;;  %v3374_v59 = vshll.u32 %v9745_v41, 16  ;;  %v2169_v63 = vld [vmem:[#allocation2 + $0x78] sm:$0xe]  ;;  %v9795_v39 = vld [vmem:[#allocation2 + $0xac] sm:$0xf]  ;;  %v6834_v21 = vcombine.low %v2168_v18, %v9661_v46 }
 0x279   : > { %v6835_v23 = vcombine.low %v2169_v63, %v9666_v33  ;;  %v2170_v50 = vld [vmem:[#allocation2 + $0x84] sm:$0xe] }
 0x27a   : > { %v9748_v43 = vsel %vm2578_vm6, %v3070_v4, %v3071_v61  ;;  %v2166_v4 = vld [vmem:[#allocation2 + $0x54] sm:$0xe]  ;;  %v9771_v61 = vld [vmem:[#allocation2 + $0x98] ss:$0 sps:$4 sm:$0x11]  }
 0x27b   : > { %v6832_v5 = vcombine.low %v2166_v4, %v9612_v49  ;;  %v6836_v4 = vcombine.low %v2170_v50, %v9697_v60  ;;  %v3531_v46 = vrot.slane %v6835_v23, 1  ;;  %v3538_v60 = vrot.slane %v9771_v61, 1  ;;  %v9840_v23 = vld [vmem:[#allocation2 + $0xd4] ss:$0 sps:$4 sm:$0x11]  }
 0x27d   : > { %4718 = vmatmul.mubr.bf16.gmra.mrb[168].mxu1 %v9641_v45  ;;  %v3517_v45 = vrot.slane %v9596_v27, 1  ;;  %v3519_v27 = vrot.slane %v6831_v48, 1  ;;  %v3522_v49 = vrot.slane %v6832_v5, 1  ;;  %v3532_v48 = vrot.slane %v9706_v51, 1  ;;  %v2172_v5 = vld [vmem:[#allocation2 + $0x9c] sm:$0xe] }
 0x27e   : > { %4725 = vmatprep.mubr.bf16.mxu1 %v3346_v10  ;;  %v3526_v10 = vrot.slane %v9673_v11, 1  ;;  %v3534_v51 = vrot.slane %v6836_v4, 1  ;;  %v2176_v4 = vld [vmem:[#allocation2 + $0xcc] sm:$0xe] }
 0x27f   : > { %4557 = vmatmul.mubr.bf16.gmra.mrb[136].mxu0 %v2870_v28  ;;  %v3513_v28 = vrot.slane %v6829_v2, 1  ;;  %v9791_v29 = vsel %vm2578_vm6, %v3516_v13, %v3517_v45  ;;  %v9797_v2 = vld [vmem:[#allocation2 + $0xbc] ss:$0 sps:$4 sm:$0x11]   ;;  %v9800_v36 = vsel %vm2578_vm6, %v3519_v27, %v3520_v56  ;;  %v9810_v11 = vsel %vm2578_vm6, %v3522_v49, %v3523_v35  ;;  %v2171_v13 = vld [vmem:[#allocation2 + $0x90] sm:$0xe] }
 0x280   : > { %4564 = vmatprep.mubr.bf16.mxu0 %v3066_v40  ;;  %v9778_v40 = vadd.f32 %v9645_v12, %v9763_v24  ;;  %v6833_v12 = vcombine.low %v2167_v47, %v9631_v15  ;;  %v9807_v15 = vld [vmem:[#allocation2 + $0xc4] sm:$0xf]  ;;  %v3528_v56 = vrot.slane %v6834_v21, 1  ;;  %v6837_v33 = vcombine.low %v2171_v13, %v9729_v30  ;;  %v9818_v27 = vld [vmem:[#allocation2 + $0xc8] ss:$0 sps:$4 sm:$0x11]  }
 0x281   : > { %v9785_v44 = vsel %vm2578_vm6, %v3513_v28, %v3514_v9  ;;  %v3529_v9 = vrot.slane %v9691_v53, 1  ;;  %v9805_v28 = vld [vmem:[#allocation2 + $0xb8] sm:$0xf]  ;;  %v3535_v53 = vrot.slane %v9719_v16, 1  ;;  %v6838_v47 = vcombine.low %v2172_v5, %v9780_v1  ;;  %v9826_v16 = vld [vmem:[#allocation2 + $0xd0] sm:$0xf] }
 0x282   : > { %v3525_v45 = vrot.slane %v6833_v12, 1  ;;  %v3541_v49 = vrot.slane %v9782_v26, 1  ;;  %v2173_v12 = vld [vmem:[#allocation2 + $0xa8] sm:$0xe]  ;;  %v2175_v21 = vld [vmem:[#allocation2 + $0xc0] sm:$0xe]  ;;  %v2894_v5 = vsel %vm2321_vm5, %v9740_v32, %v9742_v17  ;;  %v4192_v32 = vadd.f32 %v9651_v0, %v9763_v24 }
 0x283   : > { %v9829_v30 = vsel %vm2578_vm6, %v3528_v56, %v3529_v9  ;;  %v3540_v18 = vrot.slane %v6838_v47, 1  ;;  %v6839_v63 = vcombine.low %v2173_v12, %v9795_v39  ;;  %v3370_v12 = vsel %vm2321_vm5, %v9767_v22, %v9758_v54  ;;  %v8234_v54 = vld [vmem:[#allocation2 + $0x8c] ss:$0 sps:$4 sm:$0x11]  }
 0x284   : > { %v9821_v35 = vsel %vm2578_vm6, %v3525_v45, %v3526_v10  ;;  %v9836_v10 = vsel %vm2578_vm6, %v3534_v51, %v3535_v53  ;;  %v3547_v45 = vrot.slane %v9797_v2, 1  ;;  %v3550_v53 = vrot.slane %v9818_v27, 1 }
 0x285   : > { %4726 = vmatmul.mubr.bf16.gmra.mrb[172].mxu1 %v9676_v38  ;;  %v9832_v38 = vsel %vm2578_vm6, %v3531_v46, %v3532_v48  ;;  %v6841_v48 = vcombine.low %v2175_v21, %v9807_v15  ;;  %v9849_v56 = vsel %vm2578_vm6, %v3540_v18, %v3541_v49  ;;  %v3543_v46 = vrot.slane %v6839_v63, 1  ;;  %v2135_v49 = vld [vmem:[#allocation2 + $0x9c] sm:$0xf] }
 0x286   : > { %4733 = vmatprep.mubr.bf16.mxu1 %v3358_v57  ;;  %v2174_v57 = vld [vmem:[#allocation2 + $0xb4] sm:$0xe]  ;;  %v3376_v22 = vrot.slane %v3374_v59, 1  ;;  %v2910_v59 = vshll.u32 %v9451_v25, 16 }
 0x287   : > { %4565 = vmatmul.mubr.bf16.gmra.mrb[140].mxu0 %v9734_v7  ;;  %v3537_v7 = vrot.slane %v6837_v33, 1  ;;  %v6840_v50 = vcombine.low %v2174_v57, %v9805_v28  ;;  %v6842_v33 = vcombine.low %v2176_v4, %v9826_v16  ;;  %v3549_v47 = vrot.slane %v6841_v48, 1 }
 0x288   : > { %4572 = vmatprep.mubr.bf16.mxu0 %v9737_v58  ;;  %v3544_v58 = vrot.slane %v9788_v31, 1  ;;  %v9864_v4 = vcombine.low %v2135_v49, %v9780_v1 }
 0x289   : > { %v9843_v9 = vsel %vm2578_vm6, %v3537_v7, %v3538_v60  ;;  %v3546_v60 = vrot.slane %v6840_v50, 1  ;;  %v3553_v7 = vrot.slane %v9840_v23, 1  ;;  %v3552_v21 = vrot.slane %v6842_v33, 1 }
 0x28a   : > { %v9861_v57 = vsel %vm2578_vm6, %v3543_v46, %v3544_v58  ;;  %v9872_v48 = vsel %vm2578_vm6, %v3549_v47, %v3550_v53  ;;  %v3379_v46 = vshll.u32 %v9771_v61, 16  ;;  %v11106_v33 = vcombine.low %v9688_v62, %v9439_v3  ;;  %v2107_v47 = vld [vmem:[#allocation2 + $0x90] sm:$0xe]  ;;  %v8331_v61 = vld [vmem:[#allocation2 + $0x94] sm:$0xf] }
 0x28b   : > { %v7467_v13 = vpop.f32.mrb[80].mxu1  ;;  %v9869_v50 = vsel %vm2578_vm6, %v3546_v60, %v3547_v45  ;;  %v9881_v0 = vsel %vm2578_vm6, %v3552_v21, %v3553_v7  ;;  %v2896_v45 = vshrl.u32 %v9417_v14, 16  ;;  %v3386_v14 = vshll.u32 %v9864_v4, 16  ;;  %v2137_v21 = vld [vmem:[#allocation2 + $0xa8] sm:$0xf] }
 0x28c   : > { %v7468_v51 = vpop.f32.mrb[81].mxu1  ;;  %v3381_v7 = vrot.slane %v3379_v46, 1  ;;  %v6790_v49 = vcombine.low %v2107_v47, %v8331_v61 }
 0x28d   : > { %v7469_v18 = vadd.f32 %v7468_v51, %v7467_v13  ;;  %v7470_v63 = vpop.f32.mrb[82].mxu1  ;;  %4734 = vmatmul.mubr.bf16.gmra.mrb[176].mxu1 %v9686_v20  ;;  %v2903_v13 = vshll.u32 %v9714_v6, 16  ;;  %v3372_v20 = vshrl.u32 %v9745_v41, 16 }
 0x28e   : > { %v7471_v17 = vpop.f32.mrb[83].mxu1  ;;  %4741 = vmatprep.mubr.bf16.mxu1 %v3370_v12 }
 0x28f   : > { %4573 = vmatmul.mubr.bf16.gmra.mrb[144].mxu0 %v2894_v5  ;;  %v9878_v1 = vadd.f32 %v7469_v18, %v9778_v40  ;;  %v7472_v58 = vadd.f32 %v7471_v17, %v7470_v63  ;;  %v2901_v40 = vor.u32 %v9753_v34, %v2896_v45  ;;  %v3073_v5 = vrot.slane %v11106_v33, 1  ;;  %v9900_v17 = vld [vmem:[#allocation2 + $0x98] ss:$0 sps:$4 sm:$0x11]  }
 0x290   : > { %4580 = vmatprep.mubr.bf16.mxu0 %v9748_v43  ;;  %v3074_v43 = vrot.slane %v8234_v54, 1  ;;  %v3377_v51 = vor.u32 %v3376_v22, %v3372_v20  ;;  %v2905_v60 = vrot.slane %v2903_v13, 1  ;;  %v2912_v63 = vrot.slane %v2910_v59, 1 }
 0x291   : > { %v9888_v53 = vadd.f32 %v7472_v58, %v4192_v32  ;;  %v3388_v22 = vrot.slane %v3386_v14, 1  ;;  %v9903_v58 = vcombine.low %v2137_v21, %v9795_v39  ;;  %v2908_v13 = vshrl.u32 %v9451_v25, 16 }
 0x292   : > { %v2906_v18 = vsel %vm2321_vm5, %v2901_v40, %v2905_v60  ;;  %v3075_v3 = vsel %vm2578_vm6, %v3073_v5, %v3074_v43  ;;  %v3382_v62 = vsel %vm2321_vm5, %v3377_v51, %v3381_v7  ;;  %v2915_v20 = vshll.u32 %v8234_v54, 16 }
 0x293   : > { %v3391_v33 = vshll.u32 %v9782_v26, 16  ;;  %v2922_v43 = vshll.u32 %v9474_v52, 16  ;;  %v2913_v51 = vor.u32 %v2912_v63, %v2908_v13  ;;  %v3077_v25 = vrot.slane %v9900_v17, 1  ;;  %v2108_v26 = vld [vmem:[#allocation2 + $0x9c] sm:$0xe] }
 0x294   : > { %v3398_v47 = vshll.u32 %v9903_v58, 16  ;;  %v8241_v13 = vld [vmem:[#allocation2 + $0xa4] ss:$0 sps:$4 sm:$0x11]  }
 0x295   : > { %4742 = vmatmul.mubr.bf16.gmra.mrb[180].mxu1 %v9709_v19  ;;  %v3384_v19 = vshrl.u32 %v9864_v4, 16  ;;  %v3393_v21 = vrot.slane %v3391_v33, 1  ;;  %v3396_v33 = vshrl.u32 %v9903_v58, 16 }
 0x296   : > { %v7361_v6 = vpop.f32.mrb[52].mxu0  ;;  %4749 = vmatprep.mubr.bf16.mxu1 %v3382_v62 }
 0x297   : > { %v7362_v12 = vpop.f32.mrb[53].mxu0  ;;  %4581 = vmatmul.mubr.bf16.gmra.mrb[148].mxu0 %v2906_v18  ;;  %v3389_v54 = vor.u32 %v3388_v22, %v3384_v19 }
 0x298   : > { %v7363_v34 = vadd.f32 %v7362_v12, %v7361_v6  ;;  %v7364_v32 = vpop.f32.mrb[54].mxu0  ;;  %4588 = vmatprep.mubr.bf16.mxu0 %v3075_v3  ;;  %v3076_v6 = vrot.slane %v6790_v49, 1  ;;  %v2917_v12 = vrot.slane %v2915_v20, 1  ;;  %v2924_v3 = vrot.slane %v2922_v43, 1  ;;  %v2139_v49 = vld [vmem:[#allocation2 + $0xb4] sm:$0xf] }
 0x299   : > { %v7365_v45 = vpop.f32.mrb[55].mxu0  ;;  %v3400_v20 = vrot.slane %v3398_v47, 1 }
 0x29a   : > { %v4197_v46 = vadd.f32 %v7363_v34, %v9763_v24  ;;  %v7473_v59 = vpop.f32.mrb[84].mxu1  ;;  %v7366_v40 = vadd.f32 %v7365_v45, %v7364_v32  ;;  %v8332_v34 = vld [vmem:[#allocation2 + $0xa0] sm:$0xf]  ;;  %v2918_v63 = vsel %vm2321_vm5, %v2913_v51, %v2917_v12  ;;  %v3078_v22 = vsel %vm2578_vm6, %v3076_v6, %v3077_v25  ;;  %v2109_v12 = vld [vmem:[#allocation2 + $0xa8] sm:$0xe] }
 0x29b   : > { %v7474_v5 = vpop.f32.mrb[85].mxu1  ;;  %v6791_v32 = vcombine.low %v2108_v26, %v8332_v34  ;;  %v3394_v45 = vsel %vm2321_vm5, %v3389_v54, %v3393_v21  ;;  %v2934_v51 = vshll.u32 %v9501_v8, 16  ;;  %v3080_v25 = vrot.slane %v8241_v13, 1  ;;  %v8333_v34 = vld [vmem:[#allocation2 + $0xac] sm:$0xf] }
 0x29c   : > { %v7475_v39 = vadd.f32 %v7474_v5, %v7473_v59  ;;  %v4200_v14 = vadd.f32 %v7366_v40, %v9763_v24  ;;  %v7476_v60 = vpop.f32.mrb[86].mxu1  ;;  %v2920_v59 = vshrl.u32 %v9474_v52, 16  ;;  %v2927_v40 = vshll.u32 %v9900_v17, 16 }
 0x29d   : > { %v7477_v7 = vpop.f32.mrb[87].mxu1  ;;  %4750 = vmatmul.mubr.bf16.gmra.mrb[184].mxu1 %v9745_v41  ;;  %v3403_v5 = vshll.u32 %v9788_v31, 16  ;;  %v3401_v54 = vor.u32 %v3400_v20, %v3396_v33  ;;  %v9938_v33 = vld [vmem:[#allocation2 + $0xb0] ss:$0 sps:$4 sm:$0x11]  }
 0x29e   : > { %v9913_v61 = vadd.f32 %v7475_v39, %v4197_v46  ;;  %v7478_v18 = vadd.f32 %v7477_v7, %v7476_v60  ;;  %v9922_v46 = vcombine.low %v2139_v49, %v9805_v28  ;;  %4757 = vmatprep.mubr.bf16.mxu1 %v3394_v45  ;;  %v2925_v39 = vor.u32 %v2924_v3, %v2920_v59  ;;  %v2141_v59 = vld [vmem:[#allocation2 + $0xc0] sm:$0xf] }
 0x29f   : > { %4589 = vmatmul.mubr.bf16.gmra.mrb[152].mxu0 %v2918_v63  ;;  %v6792_v63 = vcombine.low %v2109_v12, %v8333_v34  ;;  %v3405_v3 = vrot.slane %v3403_v5, 1  ;;  %v9941_v5 = vcombine.low %v2141_v59, %v9807_v15  ;;  %v3083_v15 = vrot.slane %v9938_v33, 1  ;;  %v8271_v59 = vld [vmem:[#allocation9] ss:$16 sps:$4 sm:$0xff]  }
 0x2a0   : > { %v9916_v62 = vadd.f32 %v7478_v18, %v4200_v14  ;;  %4596 = vmatprep.mubr.bf16.mxu0 %v3078_v22  ;;  %v3079_v14 = vrot.slane %v6791_v32, 1  ;;  %v3410_v52 = vshll.u32 %v9922_v46, 16  ;;  %v2929_v18 = vrot.slane %v2927_v40, 1 }
 0x2a1   : > { %v2936_v22 = vrot.slane %v2934_v51, 1  ;;  %v3406_v40 = vsel %vm2321_vm5, %v3401_v54, %v3405_v3  ;;  %v2939_v51 = vshll.u32 %v8241_v13, 16  ;;  %v3082_v54 = vrot.slane %v6792_v63, 1 }
 0x2a2   : > { %v7367_v19 = vpop.f32.mrb[56].mxu0  ;;  %v2930_v49 = vsel %vm2321_vm5, %v2925_v39, %v2929_v18  ;;  %v8334_v18 = vld [vmem:[#allocation2 + $0xb8] sm:$0xf] }
 0x2a3   : > { %v7368_v43 = vpop.f32.mrb[57].mxu0  ;;  %v7479_v41 = vpop.f32.mrb[88].mxu1  ;;  %v2941_v13 = vrot.slane %v2939_v51, 1 }
 0x2a4   : > { %v7369_v60 = vadd.f32 %v7368_v43, %v7367_v19  ;;  %v7370_v28 = vpop.f32.mrb[58].mxu0  ;;  %v7480_v6 = vpop.f32.mrb[89].mxu1  ;;  %v3081_v19 = vsel %vm2578_vm6, %v3079_v14, %v3080_v25  ;;  %v3412_v43 = vrot.slane %v3410_v52, 1  ;;  %v3415_v14 = vshll.u32 %v9797_v2, 16  ;;  %v2143_v25 = vld [vmem:[#allocation2 + $0xcc] sm:$0xf] }
 0x2a5   : > { %v7481_v47 = vadd.f32 %v7480_v6, %v7479_v41  ;;  %v7371_v17 = vpop.f32.mrb[59].mxu0  ;;  %v7482_v7 = vpop.f32.mrb[90].mxu1  ;;  %4758 = vmatmul.mubr.bf16.gmra.mrb[188].mxu1 %v9864_v4  ;;  %v2932_v41 = vshrl.u32 %v9501_v8, 16  ;;  %v2946_v4 = vshll.u32 %v9530_v42, 16  ;;  %v2110_v8 = vld [vmem:[#allocation2 + $0xb4] sm:$0xe]  ;;  %v9954_v3 = vcombine.low %v2143_v25, %v9826_v16 }
 0x2a6   : > { %v4205_v31 = vadd.f32 %v7369_v60, %v9763_v24  ;;  %v7372_v26 = vadd.f32 %v7371_v17, %v7370_v28  ;;  %v7483_v21 = vpop.f32.mrb[91].mxu1  ;;  %4765 = vmatprep.mubr.bf16.mxu1 %v3406_v40  ;;  %v3408_v60 = vshrl.u32 %v9922_v46, 16  ;;  %v9951_v2 = vld [vmem:[#allocation2 + $0xbc] ss:$0 sps:$4 sm:$0x11]   ;;  %v3084_v40 = vsel %vm2578_vm6, %v3082_v54, %v3083_v15 }
 0x2a7   : > { %v7484_v32 = vadd.f32 %v7483_v21, %v7482_v7  ;;  %4597 = vmatmul.mubr.bf16.gmra.mrb[156].mxu0 %v2930_v49  ;;  %v2937_v28 = vor.u32 %v2936_v22, %v2932_v41  ;;  %v3420_v25 = vshrl.u32 %v9941_v5, 16  ;;  %v3434_v15 = vshll.u32 %v9954_v3, 16 }
 0x2a8   : > { %v9932_v45 = vadd.f32 %v7481_v47, %v4205_v31  ;;  %v4208_v20 = vadd.f32 %v7372_v26, %v9763_v24  ;;  %4604 = vmatprep.mubr.bf16.mxu0 %v3081_v19  ;;  %v3413_v52 = vor.u32 %v3412_v43, %v3408_v60  ;;  %v3422_v47 = vshll.u32 %v9941_v5, 16  ;;  %v8273_v19 = vld [vmem:[#allocation9 + $0x4] ss:$16 sps:$4 sm:$0xff]  }
 0x2a9   : > { %v6793_v31 = vcombine.low %v2110_v8, %v8334_v18  ;;  %v3417_v26 = vrot.slane %v3415_v14, 1  ;;  %v2942_v63 = vsel %vm2321_vm5, %v2937_v28, %v2941_v13  ;;  %v2944_v60 = vshrl.u32 %v9530_v42, 16  ;;  %5221 = vmatprep.subr.bf16.mxu1 %v8273_v19  ;;  %v2111_v8 = vld [vmem:[#allocation2 + $0xc0] sm:$0xe] }
 0x2aa   : > { %v9944_v39 = vadd.f32 %v7484_v32, %v4208_v20  ;;  %v2948_v32 = vrot.slane %v2946_v4, 1  ;;  %v3424_v41 = vrot.slane %v3422_v47, 1  ;;  %v2951_v14 = vshll.u32 %v9938_v33, 16  ;;  %5222 = vmatpush1.bf16.msra.mxu1 %v8271_v59  ;;  %v8252_v19 = vld [vmem:[#allocation2 + $0xc8] ss:$0 sps:$4 sm:$0x11]  }
 0x2ab   : > { %v3418_v43 = vsel %vm2321_vm5, %v3413_v52, %v3417_v26  ;;  %v3427_v4 = vshll.u32 %v9818_v27, 16  ;;  %v2958_v52 = vshll.u32 %v9544_v37, 16  ;;  %v3086_v42 = vrot.slane %v9951_v2, 1 }
 0x2ac   : > { %v7373_v6 = vpop.f32.mrb[60].mxu0  ;;  %v2949_v47 = vor.u32 %v2948_v32, %v2944_v60  ;;  %v3425_v33 = vor.u32 %v3424_v41, %v3420_v25  ;;  %v2953_v13 = vrot.slane %v2951_v14, 1  ;;  %v2963_v60 = vshll.u32 %v9951_v2, 16 }
 0x2ad   : > { %v7374_v17 = vpop.f32.mrb[61].mxu0  ;;  %4766 = vmatmul.mubr.bf16.gmra.mrb[192].mxu1 %v9903_v58 }
 0x2ae   : > { %v7375_v7 = vadd.f32 %v7374_v17, %v7373_v6  ;;  %v7376_v12 = vpop.f32.mrb[62].mxu0  ;;  %v7485_v21 = vpop.f32.mrb[92].mxu1  ;;  %4773 = vmatprep.mubr.bf16.mxu1 %v3418_v43  ;;  %v3085_v17 = vrot.slane %v6793_v31, 1  ;;  %v2954_v31 = vsel %vm2321_vm5, %v2949_v47, %v2953_v13  ;;  %v2161_v13 = vld [vmem:[#allocation2 + $0x18] sm:$0xe] }
 0x2af   : > { %v7377_v34 = vpop.f32.mrb[63].mxu0  ;;  %v7486_v22 = vpop.f32.mrb[93].mxu1  ;;  %4605 = vmatmul.mubr.bf16.gmra.mrb[160].mxu0 %v2942_v63  ;;  %v8335_v63 = vld [vmem:[#allocation2 + $0xc4] sm:$0xf] }
 0x2b0   : > { %v4213_v49 = vadd.f32 %v7375_v7, %v9763_v24  ;;  %v7378_v20 = vadd.f32 %v7377_v34, %v7376_v12  ;;  %v7487_v51 = vadd.f32 %v7486_v22, %v7485_v21  ;;  %v7488_v16 = vpop.f32.mrb[94].mxu1  ;;  %4612 = vmatprep.mubr.bf16.mxu0 %v3084_v40  ;;  %v3439_v7 = vshll.u32 %v9840_v23, 16 }
 0x2b1   : > { %v7489_v6 = vpop.f32.mrb[95].mxu1  ;;  %v3429_v12 = vrot.slane %v3427_v4, 1  ;;  %v3432_v21 = vshrl.u32 %v9954_v3, 16  ;;  %v3436_v34 = vrot.slane %v3434_v15, 1  ;;  %v3087_v32 = vsel %vm2578_vm6, %v3085_v17, %v3086_v42 }
 0x2b2   : > { %v4216_v28 = vadd.f32 %v7378_v20, %v9763_v24  ;;  %v9966_v54 = vadd.f32 %v7487_v51, %v4213_v49  ;;  %v7490_v58 = vadd.f32 %v7489_v6, %v7488_v16  ;;  %v6794_v49 = vcombine.low %v2111_v8, %v8335_v63 }
 0x2b3   : > { %v2960_v22 = vrot.slane %v2958_v52, 1  ;;  %v3430_v23 = vsel %vm2321_vm5, %v3425_v33, %v3429_v12  ;;  %v2956_v16 = vshrl.u32 %v9544_v37, 16  ;;  %v2970_v15 = vshll.u32 %v9555_v55, 16 }
 0x2b4   : > { %v9971_v27 = vadd.f32 %v7490_v58, %v4216_v28  ;;  %v3441_v28 = vrot.slane %v3439_v7, 1  ;;  %v3437_v58 = vor.u32 %v3436_v34, %v3432_v21  ;;  %v3088_v47 = vrot.slane %v6794_v49, 1  ;;  %v8274_v21 = vld [vmem:[#allocation9 + $0x20] ss:$16 sps:$4 sm:$0xff]   ;;  %v8276_v34 = vld [vmem:[#allocation9 + $0x24] ss:$16 sps:$4 sm:$0xff]  }
 0x2b5   : > { %4774 = vmatmul.mubr.bf16.gmra.mrb[196].mxu1 %v9922_v46  ;;  %v2961_v52 = vor.u32 %v2960_v22, %v2956_v16  ;;  %v3089_v17 = vrot.slane %v8252_v19, 1  ;;  %v2965_v37 = vrot.slane %v2963_v60, 1  ;;  %v2972_v12 = vrot.slane %v2970_v15, 1  ;;  %5223 = vmatprep.subr.bf16.mxu1 %v8276_v34 }
 0x2b6   : > { %v7379_v18 = vpop.f32.mrb[64].mxu0  ;;  %v7491_v26 = vpop.f32.mrb[96].mxu1  ;;  %4781 = vmatprep.mubr.bf16.mxu1 %v3430_v23  ;;  %v3442_v2 = vsel %vm2321_vm5, %v3437_v58, %v3441_v28  ;;  %v2975_v22 = vshll.u32 %v8252_v19, 16  ;;  %5224 = vmatpush1.bf16.msra.mxu1 %v8274_v21  ;;  %v2162_v58 = vld [vmem:[#allocation2 + $0x24] sm:$0xe] }
 0x2b7   : > { %v7380_v20 = vpop.f32.mrb[65].mxu0  ;;  %v7492_v59 = vpop.f32.mrb[97].mxu1  ;;  %4613 = vmatmul.mubr.bf16.gmra.mrb[164].mxu0 %v2954_v31  ;;  %v2966_v7 = vsel %vm2321_vm5, %v2961_v52, %v2965_v37  ;;  %v3090_v63 = vsel %vm2578_vm6, %v3088_v47, %v3089_v17  ;;  %v8338_v52 = vld [vmem:[#allocation2 + $0x28] sm:$0xf] }
 0x2b8   : > { %v7381_v40 = vadd.f32 %v7380_v20, %v7379_v18  ;;  %v7382_v43 = vpop.f32.mrb[66].mxu0  ;;  %v7493_v41 = vadd.f32 %v7492_v59, %v7491_v26  ;;  %v7494_v51 = vpop.f32.mrb[98].mxu1  ;;  %4620 = vmatprep.mubr.bf16.mxu0 %v3087_v32  ;;  %v8336_v18 = vld [vmem:[#allocation2 + $0x1c] sm:$0xf]  ;;  %v2968_v32 = vshrl.u32 %v9555_v55, 16  ;;  %v2977_v19 = vrot.slane %v2975_v22, 1 }
 0x2b9   : > { %v7383_v14 = vpop.f32.mrb[67].mxu0  ;;  %v7495_v4 = vpop.f32.mrb[99].mxu1  ;;  %v6827_v26 = vcombine.low %v2161_v13, %v8336_v18  ;;  %v6828_v47 = vcombine.low %v2162_v58, %v8338_v52 }
 0x2ba   : > { %v4221_v6 = vadd.f32 %v7381_v40, %v9763_v24  ;;  %v7384_v25 = vadd.f32 %v7383_v14, %v7382_v43  ;;  %v7496_v46 = vadd.f32 %v7495_v4, %v7494_v51  ;;  %v2973_v51 = vor.u32 %v2972_v12, %v2968_v32  ;;  %v8339_v12 = vld [vmem:[#allocation2 + $0x2c] ss:$0 sps:$4 sm:$0x11]  }
 0x2bb   : > { %v3507_v16 = vrot.slane %v6827_v26, 1  ;;  %v3511_v18 = vrot.slane %v8339_v12, 1 }
 0x2bc   : > { %v9983_v42 = vadd.f32 %v7493_v41, %v4221_v6  ;;  %v4224_v33 = vadd.f32 %v7384_v25, %v9763_v24  ;;  %v2978_v15 = vsel %vm2321_vm5, %v2973_v51, %v2977_v19  ;;  %v8279_v51 = vld [vmem:[#allocation9 + $0x44] ss:$16 sps:$4 sm:$0xff]  }
 0x2bd   : > { %4782 = vmatmul.mubr.bf16.gmra.mrb[200].mxu1 %v9941_v5  ;;  %v8337_v5 = vld [vmem:[#allocation2 + $0x20] ss:$0 sps:$4 sm:$0x11]   ;;  %5225 = vmatprep.subr.bf16.mxu1 %v8279_v51 }
 0x2be   : > { %v9986_v8 = vadd.f32 %v7496_v46, %v4224_v33  ;;  %4789 = vmatprep.mubr.bf16.mxu1 %v3442_v2  ;;  %v3508_v4 = vrot.slane %v8337_v5, 1  ;;  %v11107_v2 = vmov 0  }
 0x2bf   : > { %4621 = vmatmul.mubr.bf16.gmra.mrb[168].mxu0 %v2966_v7  ;;  %v3510_v7 = vrot.slane %v6828_v47, 1 }
 0x2c0   : > { %v7385_v49 = vpop.f32.mrb[68].mxu0  ;;  %v7497_v31 = vpop.f32.mrb[100].mxu1  ;;  %4628 = vmatprep.mubr.bf16.mxu0 %v3090_v63  ;;  %v3509_v17 = vsel %vm2578_vm6, %v3507_v16, %v3508_v4 }
 0x2c1   : > { %v7386_v20 = vpop.f32.mrb[69].mxu0  ;;  %v7498_v59 = vpop.f32.mrb[101].mxu1 }
 0x2c2   : > { %v7387_v23 = vadd.f32 %v7386_v20, %v7385_v49  ;;  %v7388_v40 = vpop.f32.mrb[70].mxu0  ;;  %v7499_v43 = vadd.f32 %v7498_v59, %v7497_v31  ;;  %v7500_v41 = vpop.f32.mrb[102].mxu1  ;;  %v3512_v59 = vsel %vm2578_vm6, %v3510_v7, %v3511_v18 }
 0x2c3   : > { %v7389_v60 = vpop.f32.mrb[71].mxu0  ;;  %v7501_v14 = vpop.f32.mrb[103].mxu1 }
 0x2c4   : > { %v4229_v28 = vadd.f32 %v7387_v23, %v9763_v24  ;;  %v7390_v6 = vadd.f32 %v7389_v60, %v7388_v40  ;;  %v7502_v55 = vadd.f32 %v7501_v14, %v7500_v41  ;;  %v8277_v41 = vld [vmem:[#allocation9 + $0x40] ss:$16 sps:$4 sm:$0xff]  }
 0x2c5   : > { %4790 = vmatmul.mubr.bf16.gmra.mrb[204].mxu1 %v9954_v3 }
 0x2c6   : > { %v9994_v25 = vadd.f32 %v7499_v43, %v4229_v28  ;;  %v4232_v46 = vadd.f32 %v7390_v6, %v9763_v24  ;;  %5253 = vmatprep.mubr.bf16.mxu1 %v11107_v2  ;;  %5226 = vmatpush1.bf16.msra.mxu1 %v8277_v41 }
 0x2c7   : > { %4629 = vmatmul.mubr.bf16.gmra.mrb[172].mxu0 %v2978_v15 }
 0x2c8   : > { %v10000_v33 = vadd.f32 %v7502_v55, %v4232_v46  ;;  %7827 = vmatprep.mubr.bf16.mxu0 %v3509_v17 }
 0x2c9   : > { %v7391_v37 = vpop.f32.mrb[72].mxu0 }
 0x2ca   : > { %v7392_v13 = vpop.f32.mrb[73].mxu0  ;;  %v7503_v21 = vpop.f32.mrb[104].mxu1 }
 0x2cb   : > { %v7393_v26 = vadd.f32 %v7392_v13, %v7391_v37  ;;  %v7394_v34 = vpop.f32.mrb[74].mxu0  ;;  %v7504_v63 = vpop.f32.mrb[105].mxu1 }
 0x2cc   : > { %v7395_v49 = vpop.f32.mrb[75].mxu0  ;;  %v7505_v32 = vadd.f32 %v7504_v63, %v7503_v21  ;;  %v7506_v3 = vpop.f32.mrb[106].mxu1  ;;  %v8280_v63 = vld [vmem:[#allocation9 + $0x60] ss:$16 sps:$4 sm:$0xff]  }
 0x2cd   : > { %v4237_v31 = vadd.f32 %v7393_v26, %v9763_v24  ;;  %v7396_v22 = vadd.f32 %v7395_v49, %v7394_v34  ;;  %v7507_v20 = vpop.f32.mrb[107].mxu1  ;;  %v8282_v49 = vld [vmem:[#allocation9 + $0x64] ss:$16 sps:$4 sm:$0xff]  }
 0x2ce   : > { %v7508_v43 = vadd.f32 %v7507_v20, %v7506_v3  ;;  %5227 = vmatprep.subr.bf16.mxu1 %v8282_v49 }
 0x2cf   : > { %v10005_v23 = vadd.f32 %v7505_v32, %v4237_v31  ;;  %v4240_v40 = vadd.f32 %v7396_v22, %v9763_v24  ;;  %7828 = vmatmul.mubr.bf16.vlgmr.msra.gmra.mrb[176].mxu0 %v3512_v59  ;;  %5228 = vmatpush1.bf16.msra.mxu1 %v8280_v63 }
 0x2d0   : > { %7831 = vmatprep.mubr.bf16.mxu0 %v9785_v44 }
 0x2d1   : > { %v10009_v16 = vadd.f32 %v7508_v43, %v4240_v40 }
 0x2d2   : > { %v7509_v14 = vpop.f32.mrb[108].mxu1 }
 0x2d3   : > { %v7510_v4 = vpop.f32.mrb[109].mxu1 }
 0x2d4   : > { %v7397_v60 = vpop.f32.mrb[76].mxu0  ;;  %v7511_v55 = vadd.f32 %v7510_v4, %v7509_v14  ;;  %v7512_v19 = vpop.f32.mrb[110].mxu1 }
 0x2d5   : > { %v7398_v5 = vpop.f32.mrb[77].mxu0  ;;  %v7513_v58 = vpop.f32.mrb[111].mxu1 }
 0x2d6   : > { %v7399_v28 = vadd.f32 %v7398_v5, %v7397_v60  ;;  %v7400_v6 = vpop.f32.mrb[78].mxu0  ;;  %v7514_v44 = vadd.f32 %v7513_v58, %v7512_v19 }
 0x2d7   : > { %v7401_v46 = vpop.f32.mrb[79].mxu0  ;;  %7832 = vmatmul.mubr.bf16.gmra.mrb[180].mxu0 %v9791_v29 }
 0x2d8   : > { %v4245_v15 = vadd.f32 %v7399_v28, %v9763_v24  ;;  %v7402_v52 = vadd.f32 %v7401_v46, %v7400_v6  ;;  %7835 = vmatprep.mubr.bf16.mxu0 %v9800_v36 }
 0x2da   : > { %v10014_v47 = vadd.f32 %v7511_v55, %v4245_v15  ;;  %v4248_v17 = vadd.f32 %v7402_v52, %v9763_v24 }
 0x2dc   : > { %v10017_v37 = vadd.f32 %v7514_v44, %v4248_v17  ;;  %v7515_v7 = vpop.f32.mrb[112].mxu1  ;;  %v8283_v44 = vld [vmem:[#allocation9 + $0x80] ss:$16 sps:$4 sm:$0xff]   ;;  %v8285_v17 = vld [vmem:[#allocation9 + $0x84] ss:$16 sps:$4 sm:$0xff]  }
 0x2dd   : > { %v7403_v13 = vpop.f32.mrb[80].mxu0  ;;  %v7516_v18 = vpop.f32.mrb[113].mxu1  ;;  %5229 = vmatprep.subr.bf16.mxu1 %v8285_v17 }
 0x2de   : > { %v7404_v12 = vpop.f32.mrb[81].mxu0  ;;  %v7517_v34 = vadd.f32 %v7516_v18, %v7515_v7  ;;  %v7518_v29 = vpop.f32.mrb[114].mxu1  ;;  %v8286_v7 = vld [vmem:[#allocation9 + $0x8] ss:$16 sps:$4 sm:$0xff]   ;;  %5230 = vmatpush1.bf16.msra.mxu1 %v8283_v44  ;;  %v8297_v44 = vld [vmem:[#allocation9 + $0x4c] ss:$16 sps:$4 sm:$0xff]  }
 0x2df   : > { %v7405_v26 = vadd.f32 %v7404_v12, %v7403_v13  ;;  %v7406_v21 = vpop.f32.mrb[82].mxu0  ;;  %7836 = vmatmul.mubr.bf16.gmra.mrb[184].mxu0 %v9810_v11  ;;  %v7519_v36 = vpop.f32.mrb[115].mxu1  ;;  %v8288_v12 = vld [vmem:[#allocation9 + $0xc] ss:$16 sps:$4 sm:$0xff]  }
 0x2e0   : > { %v7407_v31 = vpop.f32.mrb[83].mxu0  ;;  %7839 = vmatprep.mubr.bf16.mxu0 %v9821_v35  ;;  %v7520_v3 = vadd.f32 %v7519_v36, %v7518_v29  ;;  %5414 = vmatprep.subr.bf16.mxu0 %v8288_v12 }
 0x2e1   : > { %v4253_v32 = vadd.f32 %v7405_v26, %v9763_v24  ;;  %v7408_v22 = vadd.f32 %v7407_v31, %v7406_v21  ;;  %5415 = vmatpush1.bf16.msra.mxu0 %v8286_v7 }
 0x2e3   : > { %v10022_v20 = vadd.f32 %v7517_v34, %v4253_v32  ;;  %v4256_v59 = vadd.f32 %v7408_v22, %v9763_v24 }
 0x2e5   : > { %v10025_v40 = vadd.f32 %v7520_v3, %v4256_v59  ;;  %v7409_v43 = vpop.f32.mrb[84].mxu0  ;;  %v7521_v41 = vpop.f32.mrb[116].mxu1  ;;  %v8291_v3 = vld [vmem:[#allocation9 + $0x2c] ss:$16 sps:$4 sm:$0xff]  }
 0x2e6   : > { %v7410_v51 = vpop.f32.mrb[85].mxu0  ;;  %v7522_v11 = vpop.f32.mrb[117].mxu1  ;;  %5416 = vmatprep.subr.bf16.mxu0 %v8291_v3 }
 0x2e7   : > { %7840 = vmatmul.mubr.bf16.gmra.mrb[188].mxu0 %v9829_v30  ;;  %v7411_v60 = vadd.f32 %v7410_v51, %v7409_v43  ;;  %v7412_v35 = vpop.f32.mrb[86].mxu0  ;;  %v7523_v14 = vadd.f32 %v7522_v11, %v7521_v41  ;;  %v7524_v5 = vpop.f32.mrb[118].mxu1 }
 0x2e8   : > { %7843 = vmatprep.mubr.bf16.mxu0 %v9832_v38  ;;  %v7413_v4 = vpop.f32.mrb[87].mxu0  ;;  %v7525_v28 = vpop.f32.mrb[119].mxu1 }
 0x2e9   : > { %v4261_v6 = vadd.f32 %v7411_v60, %v9763_v24  ;;  %v7414_v55 = vadd.f32 %v7413_v4, %v7412_v35  ;;  %v7526_v19 = vadd.f32 %v7525_v28, %v7524_v5 }
 0x2eb   : > { %v10030_v46 = vadd.f32 %v7523_v14, %v4261_v6  ;;  %v4264_v58 = vadd.f32 %v7414_v55, %v9763_v24 }
 0x2ed   : > { %v10033_v15 = vadd.f32 %v7526_v19, %v4264_v58  ;;  %v8292_v58 = vld [vmem:[#allocation9 + $0xa0] ss:$16 sps:$4 sm:$0xff]  }
 0x2ee   : > { %v7415_v52 = vpop.f32.mrb[88].mxu0  ;;  %v7527_v30 = vpop.f32.mrb[120].mxu1 }
 0x2ef   : > { %7844 = vmatmul.mubr.bf16.gmra.mrb[192].mxu0 %v9836_v10  ;;  %v7416_v13 = vpop.f32.mrb[89].mxu0  ;;  %v7528_v38 = vpop.f32.mrb[121].mxu1 }
 0x2f0   : > { %7847 = vmatprep.mubr.bf16.mxu0 %v9843_v9  ;;  %v7417_v18 = vadd.f32 %v7416_v13, %v7415_v52  ;;  %v7418_v26 = vpop.f32.mrb[90].mxu0  ;;  %v7529_v21 = vadd.f32 %v7528_v38, %v7527_v30  ;;  %v7530_v34 = vpop.f32.mrb[122].mxu1  ;;  %v8289_v9 = vld [vmem:[#allocation9 + $0x28] ss:$16 sps:$4 sm:$0xff]  }
 0x2f1   : > { %v7419_v29 = vpop.f32.mrb[91].mxu0  ;;  %v7531_v63 = vpop.f32.mrb[123].mxu1  ;;  %5417 = vmatpush1.bf16.msra.mxu0 %v8289_v9  ;;  %v8295_v52 = vld [vmem:[#allocation9 + $0x48] ss:$16 sps:$4 sm:$0xff]  }
 0x2f2   : > { %v4269_v49 = vadd.f32 %v7417_v18, %v9763_v24  ;;  %v7420_v31 = vadd.f32 %v7419_v29, %v7418_v26  ;;  %v7532_v36 = vadd.f32 %v7531_v63, %v7530_v34  ;;  %5418 = vmatprep.subr.bf16.mxu0 %v8297_v44 }
 0x2f4   : > { %v10038_v10 = vadd.f32 %v7529_v21, %v4269_v49  ;;  %v4272_v32 = vadd.f32 %v7420_v31, %v9763_v24  ;;  %v8298_v31 = vld [vmem:[#allocation9 + $0x68] ss:$16 sps:$4 sm:$0xff]  }
 0x2f5   : > { %5419 = vmatpush1.bf16.msra.mxu0 %v8295_v52 }
 0x2f6   : > { %v10041_v22 = vadd.f32 %v7532_v36, %v4272_v32  ;;  %v10060_v32 = vld [vmem:[%s11073_s5] ss:$0 sm:$0xff] }
 0x2f7   : > { %7848 = vmatmul.mubr.bf16.gmra.mrb[196].mxu0 %v9849_v56  ;;  %v7421_v59 = vpop.f32.mrb[92].mxu0  ;;  %v7533_v43 = vpop.f32.mrb[124].mxu1 }
 0x2f8   : > { %7851 = vmatprep.mubr.bf16.mxu0 %v9861_v57  ;;  %v7422_v41 = vpop.f32.mrb[93].mxu0  ;;  %v7534_v51 = vpop.f32.mrb[125].mxu1  ;;  %v8294_v57 = vld [vmem:[#allocation9 + $0xa4] ss:$16 sps:$4 sm:$0xff]  }
 0x2f9   : > { %v7423_v11 = vadd.f32 %v7422_v41, %v7421_v59  ;;  %v7424_v60 = vpop.f32.mrb[94].mxu0  ;;  %v7535_v35 = vadd.f32 %v7534_v51, %v7533_v43  ;;  %v7536_v14 = vpop.f32.mrb[126].mxu1  ;;  %5231 = vmatprep.subr.bf16.mxu1 %v8294_v57 }
 0x2fa   : > { %v7425_v5 = vpop.f32.mrb[95].mxu0  ;;  %v7537_v4 = vpop.f32.mrb[127].mxu1  ;;  %5232 = vmatpush1.bf16.msra.mxu1 %v8292_v58  ;;  %v8306_v58 = vld [vmem:[#allocation9 + $0x8c] ss:$16 sps:$4 sm:$0xff]  }
 0x2fb   : > { %v4277_v28 = vadd.f32 %v7423_v11, %v9763_v24  ;;  %v7426_v6 = vadd.f32 %v7425_v5, %v7424_v60  ;;  %v7538_v55 = vadd.f32 %v7537_v4, %v7536_v14 }
 0x2fd   : > { %v10046_v19 = vadd.f32 %v7535_v35, %v4277_v28  ;;  %v4280_v56 = vadd.f32 %v7426_v6, %v9763_v24  ;;  %v8301_v6 = vld [vmem:[#allocation9 + $0xc0] ss:$16 sps:$4 sm:$0xff]  }
 0x2ff   : > { %v10049_v30 = vadd.f32 %v7538_v55, %v4280_v56  ;;  %7852 = vmatmul.mubr.bf16.gmra.mrb[200].mxu0 %v9869_v50  ;;  %v8303_v55 = vld [vmem:[#allocation9 + $0xc4] ss:$16 sps:$4 sm:$0xff]   ;;  %v8304_v56 = vld [vmem:[#allocation9 + $0x88] ss:$16 sps:$4 sm:$0xff]  }
 0x300   : > { %7855 = vmatprep.mubr.bf16.mxu0 %v9872_v48  ;;  %v7539_v13 = vpop.f32.mrb[128].mxu1  ;;  %v8300_v48 = vld [vmem:[#allocation9 + $0x6c] ss:$16 sps:$4 sm:$0xff]   ;;  %5233 = vmatprep.subr.bf16.mxu1 %v8303_v55 }
 0x301   : > { %v7540_v7 = vpop.f32.mrb[129].mxu1  ;;  %5420 = vmatprep.subr.bf16.mxu0 %v8300_v48  ;;  %5234 = vmatpush1.bf16.msra.mxu1 %v8301_v6  ;;  %v8309_v48 = vld [vmem:[#allocation9 + $0xac] ss:$16 sps:$4 sm:$0xff]  }
 0x302   : > { %v7427_v17 = vpop.f32.mrb[96].mxu0  ;;  %v7541_v26 = vadd.f32 %v7540_v7, %v7539_v13  ;;  %v7542_v21 = vpop.f32.mrb[130].mxu1  ;;  %5421 = vmatpush1.bf16.msra.mxu0 %v8298_v31  ;;  %v8307_v31 = vld [vmem:[#allocation9 + $0xa8] ss:$16 sps:$4 sm:$0xff]  }
 0x303   : > { %v7428_v38 = vpop.f32.mrb[97].mxu0  ;;  %v7543_v29 = vpop.f32.mrb[131].mxu1  ;;  %5422 = vmatprep.subr.bf16.mxu0 %v8306_v58  ;;  %v8312_v58 = vld [vmem:[#allocation9 + $0xe4] ss:$16 sps:$4 sm:$0xff]  }
 0x304   : > { %v7429_v12 = vadd.f32 %v7428_v38, %v7427_v17  ;;  %v7430_v18 = vpop.f32.mrb[98].mxu0  ;;  %v7544_v49 = vadd.f32 %v7543_v29, %v7542_v21  ;;  %5235 = vmatprep.subr.bf16.mxu1 %v8312_v58 }
 0x305   : > { %v7431_v34 = vpop.f32.mrb[99].mxu0 }
 0x306   : > { %v4285_v63 = vadd.f32 %v7429_v12, %v9763_v24  ;;  %v7432_v50 = vadd.f32 %v7431_v34, %v7430_v18  ;;  %5423 = vmatpush1.bf16.msra.mxu0 %v8304_v56  ;;  %v8310_v56 = vld [vmem:[#allocation9 + $0xe0] ss:$16 sps:$4 sm:$0xff]  }
 0x307   : > { %7856 = vmatmul.mubr.bf16.gmra.mrb[204].mxu0 %v9881_v0  ;;  %5424 = vmatprep.subr.bf16.mxu0 %v8309_v48 }
 0x308   : > { %v10055_v36 = vadd.f32 %v7541_v26, %v4285_v63  ;;  %v4288_v9 = vadd.f32 %v10060_v32, %v7432_v50  ;;  %5446 = vmatprep.mubr.bf16.mxu0 %v11107_v2  ;;  %v7545_v59 = vpop.f32.mrb[132].mxu1  ;;  %5236 = vmatpush1.bf16.msra.mxu1 %v8310_v56 }
 0x309   : > { %v7546_v41 = vpop.f32.mrb[133].mxu1 }
 0x30a   : > { %v10064_v24 = vadd.f32 %v7544_v49, %v4288_v9  ;;  %v7433_v3 = vpop.f32.mrb[100].mxu0  ;;  %v7547_v11 = vadd.f32 %v7546_v41, %v7545_v59  ;;  %v7548_v60 = vpop.f32.mrb[134].mxu1  ;;  %5425 = vmatpush1.bf16.msra.mxu0 %v8307_v31 }
 0x30b   : > { %v7434_v43 = vpop.f32.mrb[101].mxu0  ;;  %v7549_v14 = vpop.f32.mrb[135].mxu1 }
 0x30c   : > { %v7435_v0 = vadd.f32 %v7434_v43, %v7433_v3  ;;  %v7436_v51 = vpop.f32.mrb[102].mxu0  ;;  %v7550_v28 = vadd.f32 %v7549_v14, %v7548_v60 }
 0x30d   : > { %v7437_v35 = vpop.f32.mrb[103].mxu0 }
 0x30e   : > { %v4293_v5 = vadd.f32 %v10060_v32, %v7435_v0  ;;  %v7438_v4 = vadd.f32 %v7437_v35, %v7436_v51 }
 0x310   : > { %v10067_v57 = vadd.f32 %v7547_v11, %v4293_v5  ;;  %v4296_v52 = vadd.f32 %v10060_v32, %v7438_v4  ;;  %v7551_v13 = vpop.f32.mrb[136].mxu1 }
 0x311   : > { %v7552_v7 = vpop.f32.mrb[137].mxu1 }
 0x312   : > { %v10070_v44 = vadd.f32 %v7550_v28, %v4296_v52  ;;  %v7439_v17 = vpop.f32.mrb[104].mxu0  ;;  %v7553_v26 = vadd.f32 %v7552_v7, %v7551_v13  ;;  %v7554_v21 = vpop.f32.mrb[138].mxu1  ;;  %v8313_v52 = vld [vmem:[#allocation9 + $0xc8] ss:$16 sps:$4 sm:$0xff]  }
 0x313   : > { %v7440_v38 = vpop.f32.mrb[105].mxu0  ;;  %v7555_v29 = vpop.f32.mrb[139].mxu1 }
 0x314   : > { %v7441_v12 = vadd.f32 %v7440_v38, %v7439_v17  ;;  %v7442_v18 = vpop.f32.mrb[106].mxu0  ;;  %v7556_v49 = vadd.f32 %v7555_v29, %v7554_v21  ;;  %v8315_v17 = vld [vmem:[#allocation9 + $0xcc] ss:$16 sps:$4 sm:$0xff]  }
 0x315   : > { %v7443_v34 = vpop.f32.mrb[107].mxu0  ;;  %5426 = vmatprep.subr.bf16.mxu0 %v8315_v17 }
 0x316   : > { %v4301_v63 = vadd.f32 %v10060_v32, %v7441_v12  ;;  %v7444_v50 = vadd.f32 %v7443_v34, %v7442_v18  ;;  %5427 = vmatpush1.bf16.msra.mxu0 %v8313_v52 }
 0x318   : > { %v10073_v9 = vadd.f32 %v7553_v26, %v4301_v63  ;;  %v4304_v3 = vadd.f32 %v10060_v32, %v7444_v50  ;;  %v7557_v41 = vpop.f32.mrb[140].mxu1 }
 0x319   : > { %v7558_v51 = vpop.f32.mrb[141].mxu1 }
 0x31a   : > { %v10076_v59 = vadd.f32 %v7556_v49, %v4304_v3  ;;  %v7445_v43 = vpop.f32.mrb[108].mxu0  ;;  %v7559_v35 = vadd.f32 %v7558_v51, %v7557_v41  ;;  %v7560_v14 = vpop.f32.mrb[142].mxu1  ;;  %v8318_v51 = vld [vmem:[#allocation9 + $0xec] ss:$16 sps:$4 sm:$0xff]  }
 0x31b   : > { %v7446_v0 = vpop.f32.mrb[109].mxu0  ;;  %v7561_v4 = vpop.f32.mrb[143].mxu1  ;;  %5428 = vmatprep.subr.bf16.mxu0 %v8318_v51 }
 0x31c   : > { %v7447_v11 = vadd.f32 %v7446_v0, %v7445_v43  ;;  %v7448_v60 = vpop.f32.mrb[110].mxu0  ;;  %v7562_v55 = vadd.f32 %v7561_v4, %v7560_v14  ;;  %v8316_v0 = vld [vmem:[#allocation9 + $0xe8] ss:$16 sps:$4 sm:$0xff]  }
 0x31d   : > { %v7449_v5 = vpop.f32.mrb[111].mxu0  ;;  %5429 = vmatpush1.bf16.msra.mxu0 %v8316_v0 }
 0x31e   : > { %v4309_v28 = vadd.f32 %v10060_v32, %v7447_v11  ;;  %v7450_v6 = vadd.f32 %v7449_v5, %v7448_v60 }
 0x320   : > { %v10079_v13 = vadd.f32 %v7559_v35, %v4309_v28  ;;  %v4312_v38 = vadd.f32 %v10060_v32, %v7450_v6  ;;  %v7691_v18 = vpop.f32.mrb[144].mxu1 }
 0x321   : > { %v7692_v21 = vpop.f32.mrb[145].mxu1 }
 0x322   : > { %v10082_v7 = vadd.f32 %v7562_v55, %v4312_v38  ;;  %v7579_v12 = vpop.f32.mrb[112].mxu0  ;;  %v7693_v63 = vadd.f32 %v7692_v21, %v7691_v18  ;;  %v7694_v50 = vpop.f32.mrb[146].mxu1 }
 0x323   : > { %v7580_v26 = vpop.f32.mrb[113].mxu0  ;;  %v7695_v31 = vpop.f32.mrb[147].mxu1 }
 0x324   : > { %v7581_v34 = vadd.f32 %v7580_v26, %v7579_v12  ;;  %v7582_v29 = vpop.f32.mrb[114].mxu0  ;;  %v7696_v32 = vadd.f32 %v7695_v31, %v7694_v50 }
 0x325   : > { %v7583_v49 = vpop.f32.mrb[115].mxu0 }
 0x326   : > { %v4511_v48 = vadd.f32 %v7581_v34, %v9878_v1  ;;  %v7584_v3 = vadd.f32 %v7583_v49, %v7582_v29 }
 0x328   : > { %v4514_v43 = vadd.f32 %v7584_v3, %v9888_v53  ;;  %v10086_v41 = vadd.f32 %v7693_v63, %v4511_v48  ;;  %v7697_v60 = vpop.f32.mrb[148].mxu1 }
 0x329   : > { %v7698_v5 = vpop.f32.mrb[149].mxu1 }
 0x32a   : > { %v7585_v11 = vpop.f32.mrb[116].mxu0  ;;  %v10088_v35 = vadd.f32 %v7696_v32, %v4514_v43  ;;  %v7699_v6 = vadd.f32 %v7698_v5, %v7697_v60  ;;  %v7700_v55 = vpop.f32.mrb[150].mxu1 }
 0x32b   : > { %v7586_v14 = vpop.f32.mrb[117].mxu0  ;;  %v7701_v56 = vpop.f32.mrb[151].mxu1 }
 0x32c   : > { %v7587_v4 = vadd.f32 %v7586_v14, %v7585_v11  ;;  %v7588_v28 = vpop.f32.mrb[118].mxu0  ;;  %v7702_v52 = vadd.f32 %v7701_v56, %v7700_v55 }
 0x32d   : > { %v7589_v1 = vpop.f32.mrb[119].mxu0 }
 0x32e   : > { %v4519_v53 = vadd.f32 %v7587_v4, %v9913_v61  ;;  %v7590_v58 = vadd.f32 %v7589_v1, %v7588_v28 }
 0x330   : > { %v4522_v17 = vadd.f32 %v7590_v58, %v9916_v62  ;;  %v10092_v38 = vadd.f32 %v7699_v6, %v4519_v53  ;;  %v7703_v18 = vpop.f32.mrb[152].mxu1 }
 0x331   : > { %v7704_v34 = vpop.f32.mrb[153].mxu1 }
 0x332   : > { %v7591_v12 = vpop.f32.mrb[120].mxu0  ;;  %v10094_v26 = vadd.f32 %v7702_v52, %v4522_v17  ;;  %v7705_v50 = vadd.f32 %v7704_v34, %v7703_v18  ;;  %v7706_v49 = vpop.f32.mrb[154].mxu1 }
 0x333   : > { %v7592_v21 = vpop.f32.mrb[121].mxu0  ;;  %v7707_v48 = vpop.f32.mrb[155].mxu1 }
 0x334   : > { %v7593_v29 = vadd.f32 %v7592_v21, %v7591_v12  ;;  %v7594_v63 = vpop.f32.mrb[122].mxu0  ;;  %v7708_v32 = vadd.f32 %v7707_v48, %v7706_v49 }
 0x335   : > { %v7595_v31 = vpop.f32.mrb[123].mxu0 }
 0x336   : > { %v4527_v61 = vadd.f32 %v7593_v29, %v9932_v45  ;;  %v7596_v3 = vadd.f32 %v7595_v31, %v7594_v63 }
 0x338   : > { %v4530_v62 = vadd.f32 %v7596_v3, %v9944_v39  ;;  %v10098_v43 = vadd.f32 %v7705_v50, %v4527_v61  ;;  %v7709_v51 = vpop.f32.mrb[156].mxu1 }
 0x339   : > { %v7710_v14 = vpop.f32.mrb[157].mxu1 }
 0x33a   : > { %v7597_v0 = vpop.f32.mrb[124].mxu0  ;;  %v10100_v11 = vadd.f32 %v7708_v32, %v4530_v62  ;;  %v7711_v28 = vadd.f32 %v7710_v14, %v7709_v51  ;;  %v7712_v6 = vpop.f32.mrb[158].mxu1 }
 0x33b   : > { %v7598_v60 = vpop.f32.mrb[125].mxu0  ;;  %v7713_v1 = vpop.f32.mrb[159].mxu1 }
 0x33c   : > { %v7599_v5 = vadd.f32 %v7598_v60, %v7597_v0  ;;  %v7600_v4 = vpop.f32.mrb[126].mxu0  ;;  %v7714_v53 = vadd.f32 %v7713_v1, %v7712_v6 }
 0x33d   : > { %v7601_v55 = vpop.f32.mrb[127].mxu0 }
 0x33e   : > { %v4535_v45 = vadd.f32 %v7599_v5, %v9966_v54  ;;  %v7602_v56 = vadd.f32 %v7601_v55, %v7600_v4 }
 0x340   : > { %v4538_v39 = vadd.f32 %v7602_v56, %v9971_v27  ;;  %v10104_v58 = vadd.f32 %v7711_v28, %v4535_v45  ;;  %v7715_v17 = vpop.f32.mrb[160].mxu1 }
 0x341   : > { %v7716_v21 = vpop.f32.mrb[161].mxu1 }
 0x342   : > { %v7603_v52 = vpop.f32.mrb[128].mxu0  ;;  %v10106_v12 = vadd.f32 %v7714_v53, %v4538_v39  ;;  %v7717_v63 = vadd.f32 %v7716_v21, %v7715_v17  ;;  %v7718_v50 = vpop.f32.mrb[162].mxu1 }
 0x343   : > { %v7604_v18 = vpop.f32.mrb[129].mxu0  ;;  %v7719_v31 = vpop.f32.mrb[163].mxu1 }
 0x344   : > { %v7605_v34 = vadd.f32 %v7604_v18, %v7603_v52  ;;  %v7606_v29 = vpop.f32.mrb[130].mxu0  ;;  %v7720_v61 = vadd.f32 %v7719_v31, %v7718_v50 }
 0x345   : > { %v7607_v49 = vpop.f32.mrb[131].mxu0 }
 0x346   : > { %v4543_v54 = vadd.f32 %v7605_v34, %v9983_v42  ;;  %v7608_v48 = vadd.f32 %v7607_v49, %v7606_v29 }
 0x348   : > { %v4546_v27 = vadd.f32 %v7608_v48, %v9986_v8  ;;  %v10110_v3 = vadd.f32 %v7717_v63, %v4543_v54  ;;  %v7721_v62 = vpop.f32.mrb[164].mxu1 }
 0x349   : > { %v7722_v60 = vpop.f32.mrb[165].mxu1 }
 0x34a   : > { %v7609_v32 = vpop.f32.mrb[132].mxu0  ;;  %v10112_v0 = vadd.f32 %v7720_v61, %v4546_v27  ;;  %v7723_v4 = vadd.f32 %v7722_v60, %v7721_v62  ;;  %v7724_v28 = vpop.f32.mrb[166].mxu1 }
 0x34b   : > { %v7610_v51 = vpop.f32.mrb[133].mxu0  ;;  %v7725_v55 = vpop.f32.mrb[167].mxu1 }
 0x34c   : > { %v7611_v14 = vadd.f32 %v7610_v51, %v7609_v32  ;;  %v7612_v5 = vpop.f32.mrb[134].mxu0  ;;  %v7726_v45 = vadd.f32 %v7725_v55, %v7724_v28 }
 0x34d   : > { %v7613_v6 = vpop.f32.mrb[135].mxu0 }
 0x34e   : > { %v4551_v42 = vadd.f32 %v7611_v14, %v9994_v25  ;;  %v7614_v1 = vadd.f32 %v7613_v6, %v7612_v5 }
 0x350   : > { %v4554_v8 = vadd.f32 %v7614_v1, %v10000_v33  ;;  %v10116_v56 = vadd.f32 %v7723_v4, %v4551_v42  ;;  %v7727_v39 = vpop.f32.mrb[168].mxu1 }
 0x351   : > { %v7728_v18 = vpop.f32.mrb[169].mxu1 }
 0x352   : > { %v7615_v53 = vpop.f32.mrb[136].mxu0  ;;  %v10118_v52 = vadd.f32 %v7726_v45, %v4554_v8  ;;  %v7729_v29 = vadd.f32 %v7728_v18, %v7727_v39  ;;  %v7730_v63 = vpop.f32.mrb[170].mxu1 }
 0x353   : > { %v7616_v17 = vpop.f32.mrb[137].mxu0  ;;  %v7731_v49 = vpop.f32.mrb[171].mxu1 }
 0x354   : > { %v7617_v21 = vadd.f32 %v7616_v17, %v7615_v53  ;;  %v7618_v34 = vpop.f32.mrb[138].mxu0  ;;  %v7732_v54 = vadd.f32 %v7731_v49, %v7730_v63 }
 0x355   : > { %v7619_v50 = vpop.f32.mrb[139].mxu0 }
 0x356   : > { %v4559_v25 = vadd.f32 %v7617_v21, %v10005_v23  ;;  %v7620_v31 = vadd.f32 %v7619_v50, %v7618_v34 }
 0x358   : > { %v4562_v33 = vadd.f32 %v7620_v31, %v10009_v16  ;;  %v10122_v48 = vadd.f32 %v7729_v29, %v4559_v25  ;;  %v7733_v27 = vpop.f32.mrb[172].mxu1 }
 0x359   : > { %v7734_v51 = vpop.f32.mrb[173].mxu1 }
 0x35a   : > { %v7621_v61 = vpop.f32.mrb[140].mxu0  ;;  %v10124_v32 = vadd.f32 %v7732_v54, %v4562_v33  ;;  %v7735_v5 = vadd.f32 %v7734_v51, %v7733_v27  ;;  %v7736_v4 = vpop.f32.mrb[174].mxu1 }
 0x35b   : > { %v7622_v62 = vpop.f32.mrb[141].mxu0  ;;  %v7737_v6 = vpop.f32.mrb[175].mxu1 }
 0x35c   : > { %v7623_v60 = vadd.f32 %v7622_v62, %v7621_v61  ;;  %v7624_v14 = vpop.f32.mrb[142].mxu0  ;;  %v7738_v42 = vadd.f32 %v7737_v6, %v7736_v4 }
 0x35d   : > { %v7625_v28 = vpop.f32.mrb[143].mxu0 }
 0x35e   : > { %v4567_v23 = vadd.f32 %v7623_v60, %v10014_v47  ;;  %v7626_v55 = vadd.f32 %v7625_v28, %v7624_v14 }
 0x360   : > { %v4570_v16 = vadd.f32 %v7626_v55, %v10017_v37  ;;  %v10128_v1 = vadd.f32 %v7735_v5, %v4567_v23  ;;  %v7739_v8 = vpop.f32.mrb[176].mxu1 }
 0x361   : > { %v7740_v17 = vpop.f32.mrb[177].mxu1 }
 0x362   : > { %v7627_v45 = vpop.f32.mrb[144].mxu0  ;;  %v10130_v53 = vadd.f32 %v7738_v42, %v4570_v16  ;;  %v7741_v34 = vadd.f32 %v7740_v17, %v7739_v8  ;;  %v7742_v29 = vpop.f32.mrb[178].mxu1 }
 0x363   : > { %v7628_v39 = vpop.f32.mrb[145].mxu0  ;;  %v7743_v50 = vpop.f32.mrb[179].mxu1 }
 0x364   : > { %v7629_v18 = vadd.f32 %v7628_v39, %v7627_v45  ;;  %v7630_v21 = vpop.f32.mrb[146].mxu0  ;;  %v7744_v25 = vadd.f32 %v7743_v50, %v7742_v29 }
 0x365   : > { %v7631_v63 = vpop.f32.mrb[147].mxu0 }
 0x366   : > { %v4575_v47 = vadd.f32 %v7629_v18, %v10022_v20  ;;  %v7632_v49 = vadd.f32 %v7631_v63, %v7630_v21 }
 0x368   : > { %v4578_v37 = vadd.f32 %v7632_v49, %v10025_v40  ;;  %v10134_v31 = vadd.f32 %v7741_v34, %v4575_v47  ;;  %v7745_v33 = vpop.f32.mrb[180].mxu1 }
 0x369   : > { %v7746_v62 = vpop.f32.mrb[181].mxu1 }
 0x36a   : > { %v7633_v54 = vpop.f32.mrb[148].mxu0  ;;  %v10136_v61 = vadd.f32 %v7744_v25, %v4578_v37  ;;  %v7747_v14 = vadd.f32 %v7746_v62, %v7745_v33  ;;  %v7748_v5 = vpop.f32.mrb[182].mxu1 }
 0x36b   : > { %v7634_v27 = vpop.f32.mrb[149].mxu0  ;;  %v7749_v28 = vpop.f32.mrb[183].mxu1 }
 0x36c   : > { %v7635_v51 = vadd.f32 %v7634_v27, %v7633_v54  ;;  %v7636_v60 = vpop.f32.mrb[150].mxu0  ;;  %v7750_v23 = vadd.f32 %v7749_v28, %v7748_v5 }
 0x36d   : > { %v7637_v4 = vpop.f32.mrb[151].mxu0 }
 0x36e   : > { %v4583_v20 = vadd.f32 %v7635_v51, %v10030_v46  ;;  %v7638_v6 = vadd.f32 %v7637_v4, %v7636_v60 }
 0x370   : > { %v4586_v40 = vadd.f32 %v7638_v6, %v10033_v15  ;;  %v10140_v55 = vadd.f32 %v7747_v14, %v4583_v20  ;;  %v7751_v16 = vpop.f32.mrb[184].mxu1 }
 0x371   : > { %v7752_v39 = vpop.f32.mrb[185].mxu1 }
 0x372   : > { %v7639_v42 = vpop.f32.mrb[152].mxu0  ;;  %v10142_v45 = vadd.f32 %v7750_v23, %v4586_v40  ;;  %v7753_v21 = vadd.f32 %v7752_v39, %v7751_v16  ;;  %v7754_v34 = vpop.f32.mrb[186].mxu1 }
 0x373   : > { %v7640_v8 = vpop.f32.mrb[153].mxu0  ;;  %v7755_v63 = vpop.f32.mrb[187].mxu1 }
 0x374   : > { %v7641_v17 = vadd.f32 %v7640_v8, %v7639_v42  ;;  %v7642_v18 = vpop.f32.mrb[154].mxu0  ;;  %v7756_v47 = vadd.f32 %v7755_v63, %v7754_v34 }
 0x375   : > { %v7643_v29 = vpop.f32.mrb[155].mxu0 }
 0x376   : > { %v4591_v46 = vadd.f32 %v7641_v17, %v10038_v10  ;;  %v7644_v50 = vadd.f32 %v7643_v29, %v7642_v18 }
 0x378   : > { %v4594_v15 = vadd.f32 %v7644_v50, %v10041_v22  ;;  %v10146_v49 = vadd.f32 %v7753_v21, %v4591_v46  ;;  %v7757_v37 = vpop.f32.mrb[188].mxu1 }
 0x379   : > { %v7758_v27 = vpop.f32.mrb[189].mxu1 }
 0x37a   : > { %v7645_v25 = vpop.f32.mrb[156].mxu0  ;;  %v10148_v54 = vadd.f32 %v7756_v47, %v4594_v15  ;;  %v7759_v60 = vadd.f32 %v7758_v27, %v7757_v37  ;;  %v7760_v14 = vpop.f32.mrb[190].mxu1 }
 0x37b   : > { %v7646_v33 = vpop.f32.mrb[157].mxu0  ;;  %v7761_v4 = vpop.f32.mrb[191].mxu1 }
 0x37c   : > { %v7647_v62 = vadd.f32 %v7646_v33, %v7645_v25  ;;  %v7648_v51 = vpop.f32.mrb[158].mxu0  ;;  %v7762_v20 = vadd.f32 %v7761_v4, %v7760_v14 }
 0x37d   : > { %v7649_v5 = vpop.f32.mrb[159].mxu0 }
 0x37e   : > { %v4599_v10 = vadd.f32 %v7647_v62, %v10046_v19  ;;  %v7650_v28 = vadd.f32 %v7649_v5, %v7648_v51 }
 0x380   : > { %v4602_v22 = vadd.f32 %v7650_v28, %v10049_v30  ;;  %v10152_v6 = vadd.f32 %v7759_v60, %v4599_v10  ;;  %v7763_v40 = vpop.f32.mrb[192].mxu1 }
 0x381   : > { %v7764_v8 = vpop.f32.mrb[193].mxu1 }
 0x382   : > { %v7651_v23 = vpop.f32.mrb[160].mxu0  ;;  %v10154_v42 = vadd.f32 %v7762_v20, %v4602_v22  ;;  %v7765_v18 = vadd.f32 %v7764_v8, %v7763_v40  ;;  %v7766_v21 = vpop.f32.mrb[194].mxu1 }
 0x383   : > { %v7652_v16 = vpop.f32.mrb[161].mxu0  ;;  %v7767_v29 = vpop.f32.mrb[195].mxu1 }
 0x384   : > { %v7653_v39 = vadd.f32 %v7652_v16, %v7651_v23  ;;  %v7654_v17 = vpop.f32.mrb[162].mxu0  ;;  %v7768_v46 = vadd.f32 %v7767_v29, %v7766_v21 }
 0x385   : > { %v7655_v34 = vpop.f32.mrb[163].mxu0 }
 0x386   : > { %v4607_v19 = vadd.f32 %v7653_v39, %v10055_v36  ;;  %v7656_v63 = vadd.f32 %v7655_v34, %v7654_v17 }
 0x388   : > { %v4610_v30 = vadd.f32 %v7656_v63, %v10064_v24  ;;  %v10158_v50 = vadd.f32 %v7765_v18, %v4607_v19  ;;  %v7769_v15 = vpop.f32.mrb[196].mxu1 }
 0x389   : > { %v7770_v33 = vpop.f32.mrb[197].mxu1 }
 0x38a   : > { %v7657_v47 = vpop.f32.mrb[164].mxu0  ;;  %v10160_v25 = vadd.f32 %v7768_v46, %v4610_v30  ;;  %v7771_v51 = vadd.f32 %v7770_v33, %v7769_v15  ;;  %v7772_v60 = vpop.f32.mrb[198].mxu1 }
 0x38b   : > { %v7658_v37 = vpop.f32.mrb[165].mxu0  ;;  %v7773_v5 = vpop.f32.mrb[199].mxu1 }
 0x38c   : > { %v7659_v27 = vadd.f32 %v7658_v37, %v7657_v47  ;;  %v7660_v62 = vpop.f32.mrb[166].mxu0  ;;  %v7774_v10 = vadd.f32 %v7773_v5, %v7772_v60 }
 0x38d   : > { %v7661_v14 = vpop.f32.mrb[167].mxu0 }
 0x38e   : > { %v4615_v36 = vadd.f32 %v7659_v27, %v10067_v57  ;;  %v7662_v4 = vadd.f32 %v7661_v14, %v7660_v62 }
 0x390   : > { %v4618_v24 = vadd.f32 %v7662_v4, %v10070_v44  ;;  %v10164_v28 = vadd.f32 %v7771_v51, %v4615_v36  ;;  %v7775_v22 = vpop.f32.mrb[200].mxu1 }
 0x391   : > { %v7776_v16 = vpop.f32.mrb[201].mxu1 }
 0x392   : > { %v7663_v20 = vpop.f32.mrb[168].mxu0  ;;  %v10166_v23 = vadd.f32 %v7774_v10, %v4618_v24  ;;  %v7777_v17 = vadd.f32 %v7776_v16, %v7775_v22  ;;  %v7778_v18 = vpop.f32.mrb[202].mxu1 }
 0x393   : > { %v7664_v40 = vpop.f32.mrb[169].mxu0  ;;  %v7779_v34 = vpop.f32.mrb[203].mxu1 }
 0x394   : > { %v7665_v8 = vadd.f32 %v7664_v40, %v7663_v20  ;;  %v7666_v39 = vpop.f32.mrb[170].mxu0  ;;  %v7780_v19 = vadd.f32 %v7779_v34, %v7778_v18 }
 0x395   : > { %v7667_v21 = vpop.f32.mrb[171].mxu0 }
 0x396   : > { %v4623_v57 = vadd.f32 %v7665_v8, %v10073_v9  ;;  %v7668_v29 = vadd.f32 %v7667_v21, %v7666_v39 }
 0x398   : > { %v4626_v44 = vadd.f32 %v7668_v29, %v10076_v59  ;;  %v10170_v63 = vadd.f32 %v7777_v17, %v4623_v57  ;;  %v7781_v30 = vpop.f32.mrb[204].mxu1 }
 0x399   : > { %v7782_v37 = vpop.f32.mrb[205].mxu1 }
 0x39a   : > { %v7669_v46 = vpop.f32.mrb[172].mxu0  ;;  %v10172_v47 = vadd.f32 %v7780_v19, %v4626_v44  ;;  %v7783_v62 = vadd.f32 %v7782_v37, %v7781_v30  ;;  %v7784_v51 = vpop.f32.mrb[206].mxu1 }
 0x39b   : > { %v7670_v15 = vpop.f32.mrb[173].mxu0  ;;  %v7785_v14 = vpop.f32.mrb[207].mxu1 }
 0x39c   : > { %v7671_v33 = vadd.f32 %v7670_v15, %v7669_v46  ;;  %v7672_v27 = vpop.f32.mrb[174].mxu0  ;;  %v7786_v36 = vadd.f32 %v7785_v14, %v7784_v51 }
 0x39d   : > { %v7673_v60 = vpop.f32.mrb[175].mxu0 }
 0x39e   : > { %v4631_v9 = vadd.f32 %v7671_v33, %v10079_v13  ;;  %v7674_v5 = vadd.f32 %v7673_v60, %v7672_v27 }
 0x3a0   : > { %v4634_v59 = vadd.f32 %v7674_v5, %v10082_v7  ;;  %v10176_v4 = vadd.f32 %v7783_v62, %v4631_v9 }
 0x3a2   : > { %v7829_v10 = vpop.f32.mrb[176].mxu0  ;;  %v10178_v24 = vadd.f32 %v7786_v36, %v4634_v59 }
 0x3a3   : > { %v4841_v20 = vadd.f32 %v7829_v10, %v10092_v38  ;;  %v4832_v22 = vpop.f32.mrb[177].mxu0 }
 0x3a4   : > { %v4833_v40 = vadd.f32 %v4832_v22, %v10086_v41  ;;  %v7830_v16 = vpop.f32.mrb[178].mxu0 }
 0x3a5   : > { %v4844_v8 = vadd.f32 %v7830_v16, %v10094_v26  ;;  %v4835_v39 = vpop.f32.mrb[179].mxu0  ;;  %v4961_v17 = vmax.f32 %v4841_v20, 0.0 }
 0x3a6   : > { %v4836_v13 = vadd.f32 %v4835_v39, %v10088_v35  ;;  %v4959_v21 = vmax.f32 %v4833_v40, 0.0 }
 0x3a7   : > { %v4962_v18 = vmax.f32 %v4844_v8, 0.0 }
 0x3a8   : > { %v4960_v7 = vmax.f32 %v4836_v13, 0.0 }
 0x3a9   : > { %v4992_v34 = vpack.c.bf16 %v4962_v18, %v4961_v17 }
 0x3aa   : > { %v4991_v57 = vpack.c.bf16 %v4960_v7, %v4959_v21  ;;  %v7833_v29 = vpop.f32.mrb[180].mxu0 }
 0x3ab   : > { %v4857_v19 = vadd.f32 %v7833_v29, %v10104_v58  ;;  %v4848_v44 = vpop.f32.mrb[181].mxu0 }
 0x3ac   : > { %v4849_v38 = vadd.f32 %v4848_v44, %v10098_v43  ;;  %v7834_v46 = vpop.f32.mrb[182].mxu0  ;;  %5254 = vmatmul.mubr.bf16.vlgmr.msra.gmra.mrb[208].mxu1 %v4991_v57  ;;  %5447 = vmatmul.mubr.bf16.vlgmr.msra.gmra.mrb[208].mxu0 %v4991_v57 }
 0x3ad   : > { %v4860_v41 = vadd.f32 %v7834_v46, %v10106_v12  ;;  %v4851_v26 = vpop.f32.mrb[183].mxu0  ;;  %5263 = vmatprep.mubr.bf16.mxu1 %v11107_v2  ;;  %5456 = vmatprep.mubr.bf16.mxu0 %v11107_v2  ;;  %v4965_v30 = vmax.f32 %v4857_v19, 0.0 }
 0x3ae   : > { %v4852_v35 = vadd.f32 %v4851_v26, %v10100_v11  ;;  %v4963_v37 = vmax.f32 %v4849_v38, 0.0 }
 0x3af   : > { %v4966_v15 = vmax.f32 %v4860_v41, 0.0 }
 0x3b0   : > { %v4964_v33 = vmax.f32 %v4852_v35, 0.0 }
 0x3b1   : > { %v4994_v58 = vpack.c.bf16 %v4966_v15, %v4965_v30 }
 0x3b2   : > { %v4993_v27 = vpack.c.bf16 %v4964_v33, %v4963_v37  ;;  %v7837_v62 = vpop.f32.mrb[184].mxu0 }
 0x3b3   : > { %v4873_v43 = vadd.f32 %v7837_v62, %v10116_v56  ;;  %v4864_v51 = vpop.f32.mrb[185].mxu0 }
 0x3b4   : > { %v4865_v60 = vadd.f32 %v4864_v51, %v10110_v3  ;;  %v7838_v12 = vpop.f32.mrb[186].mxu0  ;;  %5264 = vmatmul.mubr.bf16.gmra.mrb[212].mxu1 %v4992_v34  ;;  %5457 = vmatmul.mubr.bf16.gmra.mrb[212].mxu0 %v4992_v34 }
 0x3b5   : > { %v4876_v14 = vadd.f32 %v7838_v12, %v10118_v52  ;;  %v4867_v9 = vpop.f32.mrb[187].mxu0  ;;  %5273 = vmatprep.mubr.bf16.mxu1 %v11107_v2  ;;  %5466 = vmatprep.mubr.bf16.mxu0 %v11107_v2  ;;  %v4969_v5 = vmax.f32 %v4873_v43, 0.0 }
 0x3b6   : > { %v4868_v11 = vadd.f32 %v4867_v9, %v10112_v0  ;;  %v4967_v59 = vmax.f32 %v4865_v60, 0.0 }
 0x3b7   : > { %v4970_v36 = vmax.f32 %v4876_v14, 0.0 }
 0x3b8   : > { %v4968_v10 = vmax.f32 %v4868_v11, 0.0 }
 0x3b9   : > { %v4996_v56 = vpack.c.bf16 %v4970_v36, %v4969_v5 }
 0x3ba   : > { %v4995_v20 = vpack.c.bf16 %v4968_v10, %v4967_v59  ;;  %v7841_v22 = vpop.f32.mrb[188].mxu0 }
 0x3bb   : > { %v4889_v3 = vadd.f32 %v7841_v22, %v10128_v1  ;;  %v4880_v40 = vpop.f32.mrb[189].mxu0 }
 0x3bc   : > { %v4881_v16 = vadd.f32 %v4880_v40, %v10122_v48  ;;  %v7842_v52 = vpop.f32.mrb[190].mxu0  ;;  %5274 = vmatmul.mubr.bf16.gmra.mrb[216].mxu1 %v4993_v27  ;;  %5467 = vmatmul.mubr.bf16.gmra.mrb[216].mxu0 %v4993_v27 }
 0x3bd   : > { %v4892_v8 = vadd.f32 %v7842_v52, %v10130_v53  ;;  %v4883_v39 = vpop.f32.mrb[191].mxu0  ;;  %5283 = vmatprep.mubr.bf16.mxu1 %v11107_v2  ;;  %5476 = vmatprep.mubr.bf16.mxu0 %v11107_v2  ;;  %v4973_v13 = vmax.f32 %v4889_v3, 0.0 }
 0x3be   : > { %v4884_v0 = vadd.f32 %v4883_v39, %v10124_v32  ;;  %v4971_v18 = vmax.f32 %v4881_v16, 0.0 }
 0x3bf   : > { %v4974_v17 = vmax.f32 %v4892_v8, 0.0 }
 0x3c0   : > { %v4972_v21 = vmax.f32 %v4884_v0, 0.0 }
 0x3c1   : > { %v10202_v1 = vpack.c.bf16 %v4974_v17, %v4973_v13 }
 0x3c2   : > { %v4997_v7 = vpack.c.bf16 %v4972_v21, %v4971_v18  ;;  %v7845_v48 = vpop.f32.mrb[192].mxu0  ;;  %v5039_v18 = vld [vmem:[%s11074_s6] sm:$0xf] }
 0x3c3   : > { %v4905_v34 = vadd.f32 %v7845_v48, %v10140_v55  ;;  %v4896_v57 = vpop.f32.mrb[193].mxu0 }
 0x3c4   : > { %v4897_v53 = vadd.f32 %v4896_v57, %v10134_v31  ;;  %v7846_v29 = vpop.f32.mrb[194].mxu0  ;;  %5284 = vmatmul.mubr.bf16.gmra.mrb[220].mxu1 %v4994_v58  ;;  %5477 = vmatmul.mubr.bf16.gmra.mrb[220].mxu0 %v4994_v58  ;;  %v10260_v57 = vld [vmem:[%s8852_s15 + $0x8] sm:$0xff] }
 0x3c5   : > { %v4908_v19 = vadd.f32 %v7846_v29, %v10142_v45  ;;  %v4899_v44 = vpop.f32.mrb[195].mxu0  ;;  %5293 = vmatprep.mubr.bf16.mxu1 %v11107_v2  ;;  %5486 = vmatprep.mubr.bf16.mxu0 %v11107_v2  ;;  %v4977_v38 = vmax.f32 %v4905_v34, 0.0  ;;  %v10256_v34 = vld [vmem:[%s8852_s15] sm:$0xff] }
 0x3c6   : > { %v4900_v32 = vadd.f32 %v4899_v44, %v10136_v61  ;;  %v4975_v41 = vmax.f32 %v4897_v53, 0.0  ;;  %v5609_v53 = vunpack.c.l.bf16 %v10260_v57  ;;  %v5608_v29 = vunpack.c.h.bf16 %v10256_v34 }
 0x3c7   : > { %v4978_v46 = vmax.f32 %v4908_v19, 0.0 }
 0x3c8   : > { %v4976_v26 = vmax.f32 %v4900_v32, 0.0  ;;  %v5610_v32 = vunpack.c.h.bf16 %v10260_v57 }
 0x3c9   : > { %v10210_v55 = vpack.c.bf16 %v4978_v46, %v4977_v38  ;;  %v10270_v38 = vld [vmem:[%s8852_s15 + $0x10] sm:$0xff] }
 0x3ca   : > { %v4999_v35 = vpack.c.bf16 %v4976_v26, %v4975_v41  ;;  %v7849_v31 = vpop.f32.mrb[196].mxu0  ;;  %v5611_v46 = vunpack.c.l.bf16 %v10270_v38  ;;  %v10276_v26 = vld [vmem:[%s8852_s15 + $0x18] sm:$0xff] }
 0x3cb   : > { %v4921_v30 = vadd.f32 %v7849_v31, %v10152_v6  ;;  %v4912_v15 = vpop.f32.mrb[197].mxu0  ;;  %v5614_v31 = vunpack.c.h.bf16 %v10276_v26 }
 0x3cc   : > { %v4913_v45 = vadd.f32 %v4912_v15, %v10146_v49  ;;  %v7850_v37 = vpop.f32.mrb[198].mxu0  ;;  %5294 = vmatmul.mubr.bf16.gmra.mrb[224].mxu1 %v4995_v20  ;;  %5487 = vmatmul.mubr.bf16.gmra.mrb[224].mxu0 %v4995_v20 }
 0x3cd   : > { %v4924_v33 = vadd.f32 %v7850_v37, %v10154_v42  ;;  %v4915_v58 = vpop.f32.mrb[199].mxu0  ;;  %5303 = vmatprep.mubr.bf16.mxu1 %v11107_v2  ;;  %5496 = vmatprep.mubr.bf16.mxu0 %v11107_v2  ;;  %v4981_v27 = vmax.f32 %v4921_v30, 0.0  ;;  %v10282_v30 = vld [vmem:[%s8852_s15 + $0x20] sm:$0xff] }
 0x3ce   : > { %v4916_v61 = vadd.f32 %v4915_v58, %v10148_v54  ;;  %v4979_v43 = vmax.f32 %v4913_v45, 0.0  ;;  %v5615_v15 = vunpack.c.l.bf16 %v10282_v30  ;;  %v10286_v45 = vld [vmem:[%s8852_s15 + $0x28] sm:$0xff] }
 0x3cf   : > { %v4982_v62 = vmax.f32 %v4924_v33, 0.0  ;;  %v5617_v37 = vunpack.c.l.bf16 %v10286_v45 }
 0x3d0   : > { %v4980_v51 = vmax.f32 %v4916_v61, 0.0  ;;  %v10292_v61 = vld [vmem:[%s8852_s15 + $0x30] sm:$0xff] }
 0x3d1   : > { %v5002_v6 = vpack.c.bf16 %v4982_v62, %v4981_v27  ;;  %v10296_v62 = vld [vmem:[%s8852_s15 + $0x38] sm:$0xff] }
 0x3d2   : > { %v5001_v60 = vpack.c.bf16 %v4980_v51, %v4979_v43  ;;  %v7853_v12 = vpop.f32.mrb[200].mxu0 }
 0x3d3   : > { %v4937_v49 = vadd.f32 %v7853_v12, %v10164_v28  ;;  %v4928_v14 = vpop.f32.mrb[201].mxu0 }
 0x3d4   : > { %v4929_v9 = vadd.f32 %v4928_v14, %v10158_v50  ;;  %v7854_v42 = vpop.f32.mrb[202].mxu0  ;;  %5304 = vmatmul.mubr.bf16.gmra.mrb[228].mxu1 %v4996_v56  ;;  %5497 = vmatmul.mubr.bf16.gmra.mrb[228].mxu0 %v4996_v56  ;;  %v10424_v14 = vld [vmem:[%s8852_s15 + $0x100] sm:$0xff] }
 0x3d5   : > { %v4940_v11 = vadd.f32 %v7854_v42, %v10166_v23  ;;  %v4931_v5 = vpop.f32.mrb[203].mxu0  ;;  %5313 = vmatprep.mubr.bf16.mxu1 %v11107_v2  ;;  %5506 = vmatprep.mubr.bf16.mxu0 %v11107_v2  ;;  %v4985_v36 = vmax.f32 %v4937_v49, 0.0  ;;  %v10306_v49 = vld [vmem:[%s8852_s15 + $0x48] sm:$0xff] }
 0x3d6   : > { %v4932_v54 = vadd.f32 %v4931_v5, %v10160_v25  ;;  %v4983_v10 = vmax.f32 %v4929_v9, 0.0 }
 0x3d7   : > { %v4986_v59 = vmax.f32 %v4940_v11, 0.0  ;;  %v10312_v11 = vld [vmem:[%s8852_s15 + $0x50] sm:$0xff] }
 0x3d8   : > { %v4984_v20 = vmax.f32 %v4932_v54, 0.0  ;;  %v10316_v54 = vld [vmem:[%s8852_s15 + $0x58] sm:$0xff] }
 0x3d9   : > { %v5004_v28 = vpack.c.bf16 %v4986_v59, %v4985_v36  ;;  %v10412_v36 = vld [vmem:[%s8852_s15 + $0xf0] sm:$0xff] }
 0x3da   : > { %v5003_v22 = vpack.c.bf16 %v4984_v20, %v4983_v10  ;;  %v7857_v3 = vpop.f32.mrb[204].mxu0  ;;  %v10322_v20 = vld [vmem:[%s8852_s15 + $0x60] sm:$0xff] }
 0x3db   : > { %v4953_v50 = vadd.f32 %v7857_v3, %v10176_v4  ;;  %v4944_v40 = vpop.f32.mrb[205].mxu0 }
 0x3dc   : > { %v4945_v56 = vadd.f32 %v4944_v40, %v10170_v63  ;;  %v7858_v23 = vpop.f32.mrb[206].mxu0  ;;  %5314 = vmatmul.mubr.bf16.gmra.mrb[232].mxu1 %v4997_v7  ;;  %5507 = vmatmul.mubr.bf16.gmra.mrb[232].mxu0 %v4997_v7  ;;  %v5041_v63 = vlaneseq }
 0x3dd   : > { %v4956_v16 = vadd.f32 %v7858_v23, %v10178_v24  ;;  %v4947_v52 = vpop.f32.mrb[207].mxu0  ;;  %5323 = vmatprep.mubr.bf16.mxu1 %v11107_v2  ;;  %5516 = vmatprep.mubr.bf16.mxu0 %v11107_v2  ;;  %v4989_v8 = vmax.f32 %v4953_v50, 0.0  ;;  %v10386_v23 = vld [vmem:[%s8852_s15 + $0xc8] sm:$0xff]  ;;  %v10392_v50 = vld [vmem:[%s8852_s15 + $0xd0] sm:$0xff] }
 0x3de   : > { %v4948_v25 = vadd.f32 %v4947_v52, %v10172_v47  ;;  %v4987_v0 = vmax.f32 %v4945_v56, 0.0  ;;  %v5042_v47 = vshrl.u32 %v5041_v63, 7  ;;  %v10332_v56 = vld [vmem:[%s8852_s15 + $0x70] sm:$0xff]  ;;  %v10382_v63 = vld [vmem:[%s8852_s15 + $0xc0] sm:$0xff] }
 0x3df   : > { %v4990_v39 = vmax.f32 %v4956_v16, 0.0  ;;  %v10336_v16 = vld [vmem:[%s8852_s15 + $0x78] sm:$0xff] }
 0x3e0   : > { %v4988_v13 = vmax.f32 %v4948_v25, 0.0  ;;  %v5043_v24 = vsub.s32 0, %v5042_v47  ;;  %v5051_v21 = vsub.s32 2, %v5042_v47  ;;  %v5055_v7 = vsub.s32 3, %v5042_v47  ;;  %v10376_v25 = vld [vmem:[%s8852_s15 + $0xb8] sm:$0xff] }
 0x3e1   : > { %v5006_v4 = vpack.c.bf16 %v4990_v39, %v4989_v8  ;;  %v10342_v39 = vld [vmem:[%s8852_s15 + $0x80] sm:$0xff]  ;;  %v10406_v8 = vld [vmem:[%s8852_s15 + $0xe8] sm:$0xff] }
 0x3e2   : > { %v5005_v17 = vpack.c.bf16 %v4988_v13, %v4987_v0  ;;  %v10253_v48 = vrot.slane %v5039_v18, %v5043_v24  ;;  %v10264_v19 = vrot.slane %v5039_v18, %v5051_v21  ;;  %v10273_v41 = vrot.slane %v5039_v18, %v5055_v7  ;;  %v10346_v13 = vld [vmem:[%s8852_s15 + $0x88] sm:$0xff]  ;;  %v10372_v21 = vld [vmem:[%s8852_s15 + $0xb0] sm:$0xff]  ;;  %v10396_v7 = vld [vmem:[%s8852_s15 + $0xd8] sm:$0xff] }
 0x3e3   : > { %v10366_v0 = vld [vmem:[%s8852_s15 + $0xa8] sm:$0xff]  ;;  %v10416_v24 = vld [vmem:[%s8852_s15 + $0xf8] sm:$0xff] }
 0x3e4   : > { %5324 = vmatmul.mubr.bf16.gmra.mrb[236].mxu1 %v10202_v1  ;;  %5517 = vmatmul.mubr.bf16.gmra.mrb[236].mxu0 %v10202_v1  ;;  %v5047_v1 = vsub.s32 1, %v5042_v47  ;;  %v10352_v47 = vld [vmem:[%s8852_s15 + $0x90] sm:$0xff] }
 0x3e5   : > { %5333 = vmatprep.mubr.bf16.mxu1 %v11107_v2  ;;  %5526 = vmatprep.mubr.bf16.mxu0 %v11107_v2 }
 0x3e6   : > { %v10266_v44 = vrot.slane %v5039_v18, %v5047_v1  ;;  %v10356_v18 = vld [vmem:[%s8852_s15 + $0x98] sm:$0xff] }
 0x3ec   : > { %5334 = vmatmul.mubr.bf16.gmra.mrb[240].mxu1 %v4999_v35  ;;  %5527 = vmatmul.mubr.bf16.gmra.mrb[240].mxu0 %v4999_v35  ;;  %v5612_v35 = vunpack.c.h.bf16 %v10270_v38 }
 0x3ed   : > { %5343 = vmatprep.mubr.bf16.mxu1 %v11107_v2  ;;  %5536 = vmatprep.mubr.bf16.mxu0 %v11107_v2 }
 0x3f4   : > { %5344 = vmatmul.mubr.bf16.gmra.mrb[244].mxu1 %v10210_v55  ;;  %5537 = vmatmul.mubr.bf16.gmra.mrb[244].mxu0 %v10210_v55  ;;  %v5613_v55 = vunpack.c.l.bf16 %v10276_v26 }
 0x3f5   : > { %5353 = vmatprep.mubr.bf16.mxu1 %v11107_v2  ;;  %5546 = vmatprep.mubr.bf16.mxu0 %v11107_v2 }
 0x3fc   : > { %5354 = vmatmul.mubr.bf16.gmra.mrb[248].mxu1 %v5001_v60  ;;  %5547 = vmatmul.mubr.bf16.gmra.mrb[248].mxu0 %v5001_v60  ;;  %v10302_v60 = vld [vmem:[%s8852_s15 + $0x40] sm:$0xff] }
 0x3fd   : > { %5363 = vmatprep.mubr.bf16.mxu1 %v11107_v2  ;;  %5556 = vmatprep.mubr.bf16.mxu0 %v11107_v2 }
 0x404   : > { %5364 = vmatmul.mubr.bf16.gmra.mrb[252].mxu1 %v5002_v6  ;;  %5557 = vmatmul.mubr.bf16.gmra.mrb[252].mxu0 %v5002_v6  ;;  %v10428_v6 = vld [vmem:[%s8852_s15 + $0x108] sm:$0xff] }
 0x405   : > { %5373 = vmatprep.mubr.bf16.mxu1 %v11107_v2  ;;  %5566 = vmatprep.mubr.bf16.mxu0 %v11107_v2 }
 0x40c   : > { %5374 = vmatmul.mubr.bf16.gmra.mrb[0].mxu1 %v5003_v22  ;;  %5567 = vmatmul.mubr.bf16.gmra.mrb[0].mxu0 %v5003_v22  ;;  %v10326_v22 = vld [vmem:[%s8852_s15 + $0x68] sm:$0xff] }
 0x40d   : > { %5383 = vmatprep.mubr.bf16.mxu1 %v11107_v2  ;;  %5576 = vmatprep.mubr.bf16.mxu0 %v11107_v2 }
 0x414   : > { %5384 = vmatmul.mubr.bf16.gmra.mrb[4].mxu1 %v5004_v28  ;;  %5577 = vmatmul.mubr.bf16.gmra.mrb[4].mxu0 %v5004_v28  ;;  %v10402_v28 = vld [vmem:[%s8852_s15 + $0xe0] sm:$0xff] }
 0x415   : > { %5393 = vmatprep.mubr.bf16.mxu1 %v11107_v2  ;;  %5586 = vmatprep.mubr.bf16.mxu0 %v11107_v2 }
 0x41c   : > { %5394 = vmatmul.mubr.bf16.gmra.mrb[8].mxu1 %v5005_v17  ;;  %5587 = vmatmul.mubr.bf16.gmra.mrb[8].mxu0 %v5005_v17 }
 0x41d   : > { %5403 = vmatprep.mubr.bf16.mxu1 %v11107_v2  ;;  %5596 = vmatprep.mubr.bf16.mxu0 %v11107_v2  ;;  %v5607_v2 = vunpack.c.l.bf16 %v10256_v34 }
 0x424   : > { %5404 = vmatmul.mubr.bf16.gmra.mrb[12].mxu1 %v5006_v4  ;;  %5597 = vmatmul.mubr.bf16.gmra.mrb[12].mxu0 %v5006_v4  ;;  %v10362_v4 = vld [vmem:[%s8852_s15 + $0xa0] sm:$0xff] }
 0x47f   : > { %v5255_v59 = vpop.f32.mrb[208].mxu1  ;;  %v5448_v52 = vpop.f32.mrb[208].mxu0 }
 0x480   : > { %v5256_v40 = vadd.f32 %v5255_v59, %v10253_v48  ;;  %v5449_v10 = vadd.f32 %v5448_v52, %v10264_v19  ;;  %v5257_v9 = vpop.f32.mrb[209].mxu1  ;;  %v5450_v17 = vpop.f32.mrb[209].mxu0 }
 0x481   : > { %v5258_v1 = vadd.f32 %v5257_v9, %v10266_v44  ;;  %v5451_v5 = vadd.f32 %v5450_v17, %v10273_v41  ;;  %v5259_v51 = vpop.f32.mrb[210].mxu1  ;;  %v5452_v42 = vpop.f32.mrb[210].mxu0 }
 0x482   : > { %v5735_v43 = vadd.f32 %v5607_v2, %v5256_v40  ;;  %v5737_v12 = vadd.f32 %v5609_v53, %v5449_v10  ;;  %v5260_v27 = vadd.f32 %v5259_v51, %v10253_v48  ;;  %v5453_v3 = vadd.f32 %v5452_v42, %v10264_v19  ;;  %v5261_v58 = vpop.f32.mrb[211].mxu1  ;;  %v5454_v9 = vpop.f32.mrb[211].mxu0 }
 0x483   : > { %v5736_v17 = vadd.f32 %v5608_v29, %v5258_v1  ;;  %v5738_v52 = vadd.f32 %v5610_v32, %v5451_v5  ;;  %v5262_v59 = vadd.f32 %v5261_v58, %v10266_v44  ;;  %v5455_v2 = vadd.f32 %v5454_v9, %v10273_v41  ;;  %v10456_v58 = vld [vmem:[%s8852_s15 + $0x110] sm:$0xff] }
 0x484   : > { %v5863_v40 = vmax.f32 %v5735_v43, 0.0  ;;  %v5865_v53 = vmax.f32 %v5737_v12, 0.0  ;;  %v5739_v51 = vadd.f32 %v5611_v46, %v5260_v27  ;;  %v5741_v42 = vadd.f32 %v5613_v55, %v5453_v3  ;;  %v10460_v12 = vld [vmem:[%s8852_s15 + $0x118] sm:$0xff] }
 0x485   : > { %v5864_v10 = vmax.f32 %v5736_v17, 0.0  ;;  %v5866_v33 = vmax.f32 %v5738_v52, 0.0  ;;  %v5740_v34 = vadd.f32 %v5612_v35, %v5262_v59  ;;  %v5742_v57 = vadd.f32 %v5614_v31, %v5455_v2 }
 0x486   : > { %v5867_v29 = vmax.f32 %v5739_v51, 0.0  ;;  %v5869_v32 = vmax.f32 %v5741_v42, 0.0  ;;  %v5675_v43 = vunpack.c.l.bf16 %v10456_v58  ;;  %v5677_v46 = vunpack.c.l.bf16 %v10460_v12 }
 0x487   : > { %v7050_v55 = vpack.c.bf16 %v5864_v10, %v5863_v40  ;;  %v7051_v27 = vpack.c.bf16 %v5866_v33, %v5865_v53  ;;  %v5868_v5 = vmax.f32 %v5740_v34, 0.0  ;;  %v5870_v3 = vmax.f32 %v5742_v57, 0.0  ;;  %v5265_v38 = vpop.f32.mrb[212].mxu1  ;;  %v5458_v35 = vpop.f32.mrb[212].mxu0 }
 0x488   : > { %v5266_v26 = vadd.f32 %v5265_v38, %v10253_v48  ;;  %v5459_v31 = vadd.f32 %v5458_v35, %v10264_v19  ;;  %v5267_v1 = vpop.f32.mrb[213].mxu1  ;;  %v5460_v59 = vpop.f32.mrb[213].mxu0  ;;  %v5676_v52 = vunpack.c.h.bf16 %v10456_v58  ;;  %v5678_v9 = vunpack.c.h.bf16 %v10460_v12 }
 0x489   : > { %6375 = vst [vmem:[%s10469_s29] sm:$0xff] %v7050_v55  ;;  %6376 = vst [vmem:[%s10469_s29 + $0x8] sm:$0xff] %v7051_v27  ;;  %v7052_v33 = vpack.c.bf16 %v5868_v5, %v5867_v29  ;;  %v7053_v17 = vpack.c.bf16 %v5870_v3, %v5869_v32  ;;  %v5268_v2 = vadd.f32 %v5267_v1, %v10266_v44  ;;  %v5269_v53 = vpop.f32.mrb[214].mxu1  ;;  %v5462_v51 = vpop.f32.mrb[214].mxu0  ;;  %v11108_v29 = vunpack.c.h.bf16 %v10282_v30 }
 0x48a   : > { %v5461_v40 = vadd.f32 %v5460_v59, %v10273_v41  ;;  %v5743_v42 = vadd.f32 %v5615_v15, %v5266_v26  ;;  %v5745_v10 = vadd.f32 %v5617_v37, %v5459_v31  ;;  %v5270_v34 = vadd.f32 %v5269_v53, %v10253_v48  ;;  %v5271_v55 = vpop.f32.mrb[215].mxu1  ;;  %v5464_v27 = vpop.f32.mrb[215].mxu0 }
 0x48b   : > { %v5463_v57 = vadd.f32 %v5462_v51, %v10264_v19  ;;  %6377 = vst [vmem:[%s10469_s29 + $0x10] sm:$0xff] %v7052_v33  ;;  %6378 = vst [vmem:[%s10469_s29 + $0x18] sm:$0xff] %v7053_v17  ;;  %v5744_v32 = vadd.f32 %v11108_v29, %v5268_v2  ;;  %v11109_v5 = vunpack.c.h.bf16 %v10286_v45  ;;  %v5272_v15 = vadd.f32 %v5271_v55, %v10266_v44  ;;  %v10498_v55 = vld [vmem:[%s8852_s15 + $0x120] sm:$0xff] }
 0x48c   : > { %v5465_v37 = vadd.f32 %v5464_v27, %v10273_v41  ;;  %v5871_v38 = vmax.f32 %v5743_v42, 0.0  ;;  %v5873_v35 = vmax.f32 %v5745_v10, 0.0  ;;  %v11110_v26 = vunpack.c.l.bf16 %v10292_v61  ;;  %v10502_v10 = vld [vmem:[%s8852_s15 + $0x128] sm:$0xff] }
 0x48d   : > { %v5746_v3 = vadd.f32 %v11109_v5, %v5461_v40  ;;  %v11111_v1 = vunpack.c.l.bf16 %v10296_v62  ;;  %v5872_v33 = vmax.f32 %v5744_v32, 0.0  ;;  %v11112_v30 = vunpack.c.h.bf16 %v10292_v61 }
 0x48e   : > { %v5747_v31 = vadd.f32 %v11110_v26, %v5270_v34  ;;  %v11113_v45 = vunpack.c.h.bf16 %v10296_v62  ;;  %v5679_v42 = vunpack.c.l.bf16 %v10498_v55  ;;  %v5681_v34 = vunpack.c.l.bf16 %v10502_v10 }
 0x48f   : > { %v5749_v59 = vadd.f32 %v11111_v1, %v5463_v57  ;;  %v5874_v17 = vmax.f32 %v5746_v3, 0.0  ;;  %v5748_v2 = vadd.f32 %v11112_v30, %v5272_v15  ;;  %v7054_v57 = vpack.c.bf16 %v5872_v33, %v5871_v38  ;;  %v5275_v32 = vpop.f32.mrb[216].mxu1  ;;  %v5468_v5 = vpop.f32.mrb[216].mxu0 }
 0x490   : > { %v5750_v40 = vadd.f32 %v11113_v45, %v5465_v37  ;;  %v5875_v53 = vmax.f32 %v5747_v31, 0.0  ;;  %v5276_v62 = vadd.f32 %v5275_v32, %v10253_v48  ;;  %v5469_v3 = vadd.f32 %v5468_v5, %v10264_v19  ;;  %v5277_v15 = vpop.f32.mrb[217].mxu1  ;;  %v5470_v37 = vpop.f32.mrb[217].mxu0 }
 0x491   : > { %v5877_v51 = vmax.f32 %v5749_v59, 0.0  ;;  %v7055_v27 = vpack.c.bf16 %v5874_v17, %v5873_v35  ;;  %v5876_v29 = vmax.f32 %v5748_v2, 0.0  ;;  %v5680_v26 = vunpack.c.h.bf16 %v10498_v55  ;;  %6379 = vst [vmem:[%s10469_s29 + $0x20] sm:$0xff] %v7054_v57  ;;  %v5279_v33 = vpop.f32.mrb[218].mxu1  ;;  %v5472_v17 = vpop.f32.mrb[218].mxu0 }
 0x492   : > { %v5878_v61 = vmax.f32 %v5750_v40, 0.0  ;;  %v5682_v31 = vunpack.c.h.bf16 %v10502_v10  ;;  %v5278_v1 = vadd.f32 %v5277_v15, %v10266_v44  ;;  %v5471_v59 = vadd.f32 %v5470_v37, %v10273_v41  ;;  %v5281_v57 = vpop.f32.mrb[219].mxu1 }
 0x493   : > { %6380 = vst [vmem:[%s10469_s29 + $0x28] sm:$0xff] %v7055_v27  ;;  %v7056_v38 = vpack.c.bf16 %v5876_v29, %v5875_v53  ;;  %v11114_v30 = vunpack.c.l.bf16 %v10302_v60  ;;  %v11115_v45 = vunpack.c.l.bf16 %v10306_v49  ;;  %v5280_v32 = vadd.f32 %v5279_v33, %v10253_v48  ;;  %v5474_v27 = vpop.f32.mrb[219].mxu0 }
 0x494   : > { %v7057_v35 = vpack.c.bf16 %v5878_v61, %v5877_v51  ;;  %v5473_v5 = vadd.f32 %v5472_v17, %v10264_v19  ;;  %v11116_v53 = vunpack.c.h.bf16 %v10302_v60  ;;  %v11117_v29 = vunpack.c.h.bf16 %v10306_v49 }
 0x495   : > { %v5751_v2 = vadd.f32 %v11114_v30, %v5276_v62  ;;  %v5753_v40 = vadd.f32 %v11115_v45, %v5469_v3  ;;  %6381 = vst [vmem:[%s10469_s29 + $0x30] sm:$0xff] %v7056_v38  ;;  %v5282_v62 = vadd.f32 %v5281_v57, %v10266_v44  ;;  %v5475_v3 = vadd.f32 %v5474_v27, %v10273_v41 }
 0x496   : > { %6382 = vst [vmem:[%s10469_s29 + $0x38] sm:$0xff] %v7057_v35  ;;  %v5752_v51 = vadd.f32 %v11116_v53, %v5278_v1  ;;  %v5754_v61 = vadd.f32 %v11117_v29, %v5471_v59  ;;  %v11118_v33 = vunpack.c.l.bf16 %v10312_v11  ;;  %v11119_v38 = vunpack.c.l.bf16 %v10316_v54  ;;  %v10536_v29 = vld [vmem:[%s8852_s15 + $0x130] sm:$0xff] }
 0x497   : > { %v5879_v15 = vmax.f32 %v5751_v2, 0.0  ;;  %v5881_v37 = vmax.f32 %v5753_v40, 0.0  ;;  %v11120_v60 = vunpack.c.h.bf16 %v10312_v11  ;;  %v11121_v49 = vunpack.c.h.bf16 %v10316_v54  ;;  %v10540_v40 = vld [vmem:[%s8852_s15 + $0x138] sm:$0xff] }
 0x498   : > { %v5755_v17 = vadd.f32 %v11118_v33, %v5280_v32  ;;  %v5757_v30 = vadd.f32 %v11119_v38, %v5473_v5  ;;  %v5880_v35 = vmax.f32 %v5752_v51, 0.0  ;;  %v5882_v45 = vmax.f32 %v5754_v61, 0.0  ;;  %v5285_v61 = vpop.f32.mrb[220].mxu1 }
 0x499   : > { %v5756_v1 = vadd.f32 %v11120_v60, %v5282_v62  ;;  %v5758_v59 = vadd.f32 %v11121_v49, %v5475_v3  ;;  %v5683_v2 = vunpack.c.l.bf16 %v10536_v29  ;;  %v5685_v32 = vunpack.c.l.bf16 %v10540_v40  ;;  %v5478_v62 = vpop.f32.mrb[220].mxu0  ;;  %v5287_v33 = vpop.f32.mrb[221].mxu1 }
 0x49a   : > { %v5883_v53 = vmax.f32 %v5755_v17, 0.0  ;;  %v5885_v57 = vmax.f32 %v5757_v30, 0.0  ;;  %v7058_v5 = vpack.c.bf16 %v5880_v35, %v5879_v15  ;;  %v7059_v27 = vpack.c.bf16 %v5882_v45, %v5881_v37  ;;  %v5480_v17 = vpop.f32.mrb[221].mxu0  ;;  %v5289_v60 = vpop.f32.mrb[222].mxu1 }
 0x49b   : > { %v5884_v51 = vmax.f32 %v5756_v1, 0.0  ;;  %v5886_v11 = vmax.f32 %v5758_v59, 0.0  ;;  %v5286_v54 = vadd.f32 %v5285_v61, %v10253_v48  ;;  %v5479_v3 = vadd.f32 %v5478_v62, %v10264_v19  ;;  %v5482_v1 = vpop.f32.mrb[222].mxu0 }
 0x49c   : > { %6383 = vst [vmem:[%s10469_s29 + $0x40] sm:$0xff] %v7058_v5  ;;  %6384 = vst [vmem:[%s10469_s29 + $0x48] sm:$0xff] %v7059_v27  ;;  %v5288_v35 = vadd.f32 %v5287_v33, %v10266_v44  ;;  %v5481_v45 = vadd.f32 %v5480_v17, %v10273_v41  ;;  %v11122_v49 = vunpack.c.l.bf16 %v10322_v20  ;;  %v11123_v61 = vunpack.c.l.bf16 %v10326_v22  ;;  %v5291_v5 = vpop.f32.mrb[223].mxu1  ;;  %v5484_v27 = vpop.f32.mrb[223].mxu0 }
 0x49d   : > { %v7060_v15 = vpack.c.bf16 %v5884_v51, %v5883_v53  ;;  %v7061_v37 = vpack.c.bf16 %v5886_v11, %v5885_v57  ;;  %v5290_v38 = vadd.f32 %v5289_v60, %v10253_v48  ;;  %v5483_v30 = vadd.f32 %v5482_v1, %v10264_v19 }
 0x49e   : > { %v5759_v59 = vadd.f32 %v11122_v49, %v5286_v54  ;;  %v5761_v62 = vadd.f32 %v11123_v61, %v5479_v3  ;;  %v11124_v53 = vunpack.c.h.bf16 %v10322_v20  ;;  %v11125_v51 = vunpack.c.h.bf16 %v10326_v22 }
 0x49f   : > { %6385 = vst [vmem:[%s10469_s29 + $0x50] sm:$0xff] %v7060_v15  ;;  %6386 = vst [vmem:[%s10469_s29 + $0x58] sm:$0xff] %v7061_v37  ;;  %v5292_v54 = vadd.f32 %v5291_v5, %v10266_v44  ;;  %v5485_v3 = vadd.f32 %v5484_v27, %v10273_v41  ;;  %v11126_v60 = vunpack.c.l.bf16 %v10332_v56  ;;  %v11127_v15 = vunpack.c.l.bf16 %v10336_v16 }
 0x4a0   : > { %v5760_v57 = vadd.f32 %v11124_v53, %v5288_v35  ;;  %v5762_v11 = vadd.f32 %v11125_v51, %v5481_v45  ;;  %v5887_v33 = vmax.f32 %v5759_v59, 0.0  ;;  %v5889_v17 = vmax.f32 %v5761_v62, 0.0  ;;  %v10574_v51 = vld [vmem:[%s8852_s15 + $0x140] sm:$0xff] }
 0x4a1   : > { %v5763_v1 = vadd.f32 %v11126_v60, %v5290_v38  ;;  %v5765_v49 = vadd.f32 %v11127_v15, %v5483_v30  ;;  %v11128_v20 = vunpack.c.h.bf16 %v10332_v56  ;;  %v11129_v22 = vunpack.c.h.bf16 %v10336_v16  ;;  %v10578_v38 = vld [vmem:[%s8852_s15 + $0x148] sm:$0xff] }
 0x4a2   : > { %v5888_v37 = vmax.f32 %v5760_v57, 0.0  ;;  %v5890_v61 = vmax.f32 %v5762_v11, 0.0  ;;  %v5687_v59 = vunpack.c.l.bf16 %v10574_v51  ;;  %v5689_v30 = vunpack.c.l.bf16 %v10578_v38  ;;  %v5295_v11 = vpop.f32.mrb[224].mxu1 }
 0x4a3   : > { %v5764_v35 = vadd.f32 %v11128_v20, %v5292_v54  ;;  %v5766_v45 = vadd.f32 %v11129_v22, %v5485_v3  ;;  %v5891_v53 = vmax.f32 %v5763_v1, 0.0  ;;  %v5893_v5 = vmax.f32 %v5765_v49, 0.0  ;;  %v5488_v54 = vpop.f32.mrb[224].mxu0  ;;  %v5297_v60 = vpop.f32.mrb[225].mxu1 }
 0x4a4   : > { %v7062_v62 = vpack.c.bf16 %v5888_v37, %v5887_v33  ;;  %v7063_v27 = vpack.c.bf16 %v5890_v61, %v5889_v17  ;;  %v5296_v16 = vadd.f32 %v5295_v11, %v10253_v48  ;;  %v5489_v3 = vadd.f32 %v5488_v54, %v10264_v19  ;;  %v5490_v1 = vpop.f32.mrb[225].mxu0  ;;  %v5299_v20 = vpop.f32.mrb[226].mxu1 }
 0x4a5   : > { %v5892_v57 = vmax.f32 %v5764_v35, 0.0  ;;  %v5894_v56 = vmax.f32 %v5766_v45, 0.0  ;;  %v5298_v37 = vadd.f32 %v5297_v60, %v10266_v44  ;;  %v5491_v61 = vadd.f32 %v5490_v1, %v10273_v41  ;;  %v5492_v35 = vpop.f32.mrb[226].mxu0 }
 0x4a6   : > { %6387 = vst [vmem:[%s10469_s29 + $0x60] sm:$0xff] %v7062_v62  ;;  %6388 = vst [vmem:[%s10469_s29 + $0x68] sm:$0xff] %v7063_v27  ;;  %v11130_v22 = vunpack.c.l.bf16 %v10342_v39  ;;  %v11131_v11 = vunpack.c.l.bf16 %v10346_v13  ;;  %v5300_v15 = vadd.f32 %v5299_v20, %v10253_v48  ;;  %v5493_v49 = vadd.f32 %v5492_v35, %v10264_v19  ;;  %v5301_v62 = vpop.f32.mrb[227].mxu1  ;;  %v5494_v27 = vpop.f32.mrb[227].mxu0 }
 0x4a7   : > { %v7064_v33 = vpack.c.bf16 %v5892_v57, %v5891_v53  ;;  %v7065_v17 = vpack.c.bf16 %v5894_v56, %v5893_v5  ;;  %v11132_v53 = vunpack.c.h.bf16 %v10342_v39  ;;  %v11133_v57 = vunpack.c.h.bf16 %v10346_v13 }
 0x4a8   : > { %v5767_v45 = vadd.f32 %v11130_v22, %v5296_v16  ;;  %v5769_v54 = vadd.f32 %v11131_v11, %v5489_v3  ;;  %v5302_v16 = vadd.f32 %v5301_v62, %v10266_v44  ;;  %v5495_v3 = vadd.f32 %v5494_v27, %v10273_v41 }
 0x4a9   : > { %6389 = vst [vmem:[%s10469_s29 + $0x70] sm:$0xff] %v7064_v33  ;;  %6390 = vst [vmem:[%s10469_s29 + $0x78] sm:$0xff] %v7065_v17  ;;  %v5768_v5 = vadd.f32 %v11132_v53, %v5298_v37  ;;  %v5770_v56 = vadd.f32 %v11133_v57, %v5491_v61  ;;  %v11134_v20 = vunpack.c.l.bf16 %v10352_v47  ;;  %v11135_v33 = vunpack.c.l.bf16 %v10356_v18  ;;  %v10612_v57 = vld [vmem:[%s8852_s15 + $0x150] sm:$0xff] }
 0x4aa   : > { %v5895_v60 = vmax.f32 %v5767_v45, 0.0  ;;  %v5897_v1 = vmax.f32 %v5769_v54, 0.0  ;;  %v11136_v39 = vunpack.c.h.bf16 %v10352_v47  ;;  %v11137_v13 = vunpack.c.h.bf16 %v10356_v18 }
 0x4ab   : > { %v5771_v35 = vadd.f32 %v11134_v20, %v5300_v15  ;;  %v5773_v22 = vadd.f32 %v11135_v33, %v5493_v49  ;;  %v5896_v17 = vmax.f32 %v5768_v5, 0.0  ;;  %v5898_v11 = vmax.f32 %v5770_v56, 0.0  ;;  %v10616_v15 = vld [vmem:[%s8852_s15 + $0x158] sm:$0xff]  ;;  %v5305_v56 = vpop.f32.mrb[228].mxu1 }
 0x4ac   : > { %v5772_v37 = vadd.f32 %v11136_v39, %v5302_v16  ;;  %v5774_v61 = vadd.f32 %v11137_v13, %v5495_v3  ;;  %v5691_v45 = vunpack.c.l.bf16 %v10612_v57  ;;  %v5693_v49 = vunpack.c.l.bf16 %v10616_v15  ;;  %v5498_v16 = vpop.f32.mrb[228].mxu0  ;;  %v5307_v20 = vpop.f32.mrb[229].mxu1 }
 0x4ad   : > { %v5899_v53 = vmax.f32 %v5771_v35, 0.0  ;;  %v5901_v62 = vmax.f32 %v5773_v22, 0.0  ;;  %v7066_v54 = vpack.c.bf16 %v5896_v17, %v5895_v60  ;;  %v7067_v27 = vpack.c.bf16 %v5898_v11, %v5897_v1  ;;  %v5500_v35 = vpop.f32.mrb[229].mxu0  ;;  %v5309_v39 = vpop.f32.mrb[230].mxu1 }
 0x4ae   : > { %v5900_v5 = vmax.f32 %v5772_v37, 0.0  ;;  %v5902_v47 = vmax.f32 %v5774_v61, 0.0  ;;  %v5306_v18 = vadd.f32 %v5305_v56, %v10253_v48  ;;  %v5499_v3 = vadd.f32 %v5498_v16, %v10264_v19  ;;  %v5502_v37 = vpop.f32.mrb[230].mxu0 }
 0x4af   : > { %6391 = vst [vmem:[%s10469_s29 + $0x80] sm:$0xff] %v7066_v54  ;;  %6392 = vst [vmem:[%s10469_s29 + $0x88] sm:$0xff] %v7067_v27  ;;  %v5308_v17 = vadd.f32 %v5307_v20, %v10266_v44  ;;  %v5501_v11 = vadd.f32 %v5500_v35, %v10273_v41  ;;  %v11138_v13 = vunpack.c.l.bf16 %v10362_v4  ;;  %v11139_v56 = vunpack.c.l.bf16 %v10366_v0  ;;  %v5311_v54 = vpop.f32.mrb[231].mxu1  ;;  %v5504_v27 = vpop.f32.mrb[231].mxu0 }
 0x4b0   : > { %v7068_v60 = vpack.c.bf16 %v5900_v5, %v5899_v53  ;;  %v7069_v1 = vpack.c.bf16 %v5902_v47, %v5901_v62  ;;  %v5310_v33 = vadd.f32 %v5309_v39, %v10253_v48  ;;  %v5503_v22 = vadd.f32 %v5502_v37, %v10264_v19 }
 0x4b1   : > { %v5775_v61 = vadd.f32 %v11138_v13, %v5306_v18  ;;  %v5777_v16 = vadd.f32 %v11139_v56, %v5499_v3  ;;  %v11140_v53 = vunpack.c.h.bf16 %v10362_v4  ;;  %v11141_v5 = vunpack.c.h.bf16 %v10366_v0 }
 0x4b2   : > { %6393 = vst [vmem:[%s10469_s29 + $0x90] sm:$0xff] %v7068_v60  ;;  %6394 = vst [vmem:[%s10469_s29 + $0x98] sm:$0xff] %v7069_v1  ;;  %v5312_v18 = vadd.f32 %v5311_v54, %v10266_v44  ;;  %v5505_v3 = vadd.f32 %v5504_v27, %v10273_v41  ;;  %v11142_v39 = vunpack.c.l.bf16 %v10372_v21  ;;  %v11143_v60 = vunpack.c.l.bf16 %v10376_v25 }
 0x4b3   : > { %v5776_v62 = vadd.f32 %v11140_v53, %v5308_v17  ;;  %v5778_v47 = vadd.f32 %v11141_v5, %v5501_v11  ;;  %v5903_v20 = vmax.f32 %v5775_v61, 0.0  ;;  %v5905_v35 = vmax.f32 %v5777_v16, 0.0  ;;  %v10650_v5 = vld [vmem:[%s8852_s15 + $0x160] sm:$0xff] }
 0x4b4   : > { %v5779_v37 = vadd.f32 %v11142_v39, %v5310_v33  ;;  %v5781_v13 = vadd.f32 %v11143_v60, %v5503_v22  ;;  %v11144_v4 = vunpack.c.h.bf16 %v10372_v21  ;;  %v11145_v0 = vunpack.c.h.bf16 %v10376_v25  ;;  %v10654_v33 = vld [vmem:[%s8852_s15 + $0x168] sm:$0xff] }
 0x4b5   : > { %v5904_v1 = vmax.f32 %v5776_v62, 0.0  ;;  %v5906_v56 = vmax.f32 %v5778_v47, 0.0  ;;  %v5695_v61 = vunpack.c.l.bf16 %v10650_v5  ;;  %v5697_v22 = vunpack.c.l.bf16 %v10654_v33  ;;  %v5315_v47 = vpop.f32.mrb[232].mxu1 }
 0x4b6   : > { %v5780_v17 = vadd.f32 %v11144_v4, %v5312_v18  ;;  %v5782_v11 = vadd.f32 %v11145_v0, %v5505_v3  ;;  %v5907_v53 = vmax.f32 %v5779_v37, 0.0  ;;  %v5909_v54 = vmax.f32 %v5781_v13, 0.0  ;;  %v5508_v18 = vpop.f32.mrb[232].mxu0  ;;  %v5317_v39 = vpop.f32.mrb[233].mxu1 }
 0x4b7   : > { %v7070_v16 = vpack.c.bf16 %v5904_v1, %v5903_v20  ;;  %v7071_v27 = vpack.c.bf16 %v5906_v56, %v5905_v35  ;;  %v5316_v25 = vadd.f32 %v5315_v47, %v10253_v48  ;;  %v5509_v3 = vadd.f32 %v5508_v18, %v10264_v19  ;;  %v5510_v37 = vpop.f32.mrb[233].mxu0  ;;  %v5319_v4 = vpop.f32.mrb[234].mxu1 }
 0x4b8   : > { %v5908_v62 = vmax.f32 %v5780_v17, 0.0  ;;  %v5910_v21 = vmax.f32 %v5782_v11, 0.0  ;;  %v5318_v1 = vadd.f32 %v5317_v39, %v10266_v44  ;;  %v5511_v56 = vadd.f32 %v5510_v37, %v10273_v41  ;;  %v5512_v17 = vpop.f32.mrb[234].mxu0 }
 0x4b9   : > { %6395 = vst [vmem:[%s10469_s29 + $0xa0] sm:$0xff] %v7070_v16  ;;  %6396 = vst [vmem:[%s10469_s29 + $0xa8] sm:$0xff] %v7071_v27  ;;  %v11146_v0 = vunpack.c.l.bf16 %v10382_v63  ;;  %v11147_v47 = vunpack.c.l.bf16 %v10386_v23  ;;  %v5320_v60 = vadd.f32 %v5319_v4, %v10253_v48  ;;  %v5513_v13 = vadd.f32 %v5512_v17, %v10264_v19  ;;  %v5321_v16 = vpop.f32.mrb[235].mxu1  ;;  %v5514_v27 = vpop.f32.mrb[235].mxu0 }
 0x4ba   : > { %v7072_v20 = vpack.c.bf16 %v5908_v62, %v5907_v53  ;;  %v7073_v35 = vpack.c.bf16 %v5910_v21, %v5909_v54  ;;  %v11148_v53 = vunpack.c.h.bf16 %v10382_v63  ;;  %v11149_v62 = vunpack.c.h.bf16 %v10386_v23 }
 0x4bb   : > { %v5783_v11 = vadd.f32 %v11146_v0, %v5316_v25  ;;  %v5785_v18 = vadd.f32 %v11147_v47, %v5509_v3  ;;  %v5322_v25 = vadd.f32 %v5321_v16, %v10266_v44  ;;  %v5515_v3 = vadd.f32 %v5514_v27, %v10273_v41 }
 0x4bc   : > { %6397 = vst [vmem:[%s10469_s29 + $0xb0] sm:$0xff] %v7072_v20  ;;  %6398 = vst [vmem:[%s10469_s29 + $0xb8] sm:$0xff] %v7073_v35  ;;  %v5784_v54 = vadd.f32 %v11148_v53, %v5318_v1  ;;  %v5786_v21 = vadd.f32 %v11149_v62, %v5511_v56  ;;  %v11150_v4 = vunpack.c.l.bf16 %v10392_v50  ;;  %v11151_v20 = vunpack.c.l.bf16 %v10396_v7  ;;  %v10688_v62 = vld [vmem:[%s8852_s15 + $0x170] sm:$0xff] }
 0x4bd   : > { %v5911_v39 = vmax.f32 %v5783_v11, 0.0  ;;  %v5913_v37 = vmax.f32 %v5785_v18, 0.0  ;;  %v11152_v63 = vunpack.c.h.bf16 %v10392_v50  ;;  %v11153_v23 = vunpack.c.h.bf16 %v10396_v7 }
 0x4be   : > { %v5787_v17 = vadd.f32 %v11150_v4, %v5320_v60  ;;  %v5789_v0 = vadd.f32 %v11151_v20, %v5513_v13  ;;  %v5912_v35 = vmax.f32 %v5784_v54, 0.0  ;;  %v5914_v47 = vmax.f32 %v5786_v21, 0.0  ;;  %v10692_v60 = vld [vmem:[%s8852_s15 + $0x178] sm:$0xff]  ;;  %v5325_v21 = vpop.f32.mrb[236].mxu1 }
 0x4bf   : > { %v5788_v1 = vadd.f32 %v11152_v63, %v5322_v25  ;;  %v5790_v56 = vadd.f32 %v11153_v23, %v5515_v3  ;;  %v5699_v11 = vunpack.c.l.bf16 %v10688_v62  ;;  %v5701_v13 = vunpack.c.l.bf16 %v10692_v60  ;;  %v5518_v25 = vpop.f32.mrb[236].mxu0  ;;  %v5327_v4 = vpop.f32.mrb[237].mxu1 }
 0x4c0   : > { %v5915_v53 = vmax.f32 %v5787_v17, 0.0  ;;  %v5917_v16 = vmax.f32 %v5789_v0, 0.0  ;;  %v7074_v18 = vpack.c.bf16 %v5912_v35, %v5911_v39  ;;  %v7075_v27 = vpack.c.bf16 %v5914_v47, %v5913_v37  ;;  %v5520_v17 = vpop.f32.mrb[237].mxu0  ;;  %v5329_v63 = vpop.f32.mrb[238].mxu1 }
 0x4c1   : > { %v5916_v54 = vmax.f32 %v5788_v1, 0.0  ;;  %v5918_v50 = vmax.f32 %v5790_v56, 0.0  ;;  %v5326_v7 = vadd.f32 %v5325_v21, %v10253_v48  ;;  %v5519_v3 = vadd.f32 %v5518_v25, %v10264_v19  ;;  %v5522_v1 = vpop.f32.mrb[238].mxu0 }
 0x4c2   : > { %6399 = vst [vmem:[%s10469_s29 + $0xc0] sm:$0xff] %v7074_v18  ;;  %6400 = vst [vmem:[%s10469_s29 + $0xc8] sm:$0xff] %v7075_v27  ;;  %v5328_v35 = vadd.f32 %v5327_v4, %v10266_v44  ;;  %v5521_v47 = vadd.f32 %v5520_v17, %v10273_v41  ;;  %v11154_v23 = vunpack.c.l.bf16 %v10402_v28  ;;  %v11155_v21 = vunpack.c.l.bf16 %v10406_v8  ;;  %v5331_v18 = vpop.f32.mrb[239].mxu1  ;;  %v5524_v27 = vpop.f32.mrb[239].mxu0 }
 0x4c3   : > { %v7076_v39 = vpack.c.bf16 %v5916_v54, %v5915_v53  ;;  %v7077_v37 = vpack.c.bf16 %v5918_v50, %v5917_v16  ;;  %v5330_v20 = vadd.f32 %v5329_v63, %v10253_v48  ;;  %v5523_v0 = vadd.f32 %v5522_v1, %v10264_v19 }
 0x4c4   : > { %v5791_v56 = vadd.f32 %v11154_v23, %v5326_v7  ;;  %v5793_v25 = vadd.f32 %v11155_v21, %v5519_v3  ;;  %v11156_v53 = vunpack.c.h.bf16 %v10402_v28  ;;  %v11157_v54 = vunpack.c.h.bf16 %v10406_v8 }
 0x4c5   : > { %6401 = vst [vmem:[%s10469_s29 + $0xd0] sm:$0xff] %v7076_v39  ;;  %6402 = vst [vmem:[%s10469_s29 + $0xd8] sm:$0xff] %v7077_v37  ;;  %v5332_v7 = vadd.f32 %v5331_v18, %v10266_v44  ;;  %v5525_v3 = vadd.f32 %v5524_v27, %v10273_v41  ;;  %v11158_v63 = vunpack.c.l.bf16 %v10412_v36  ;;  %v11159_v39 = vunpack.c.l.bf16 %v10416_v24 }
 0x4c6   : > { %v5792_v16 = vadd.f32 %v11156_v53, %v5328_v35  ;;  %v5794_v50 = vadd.f32 %v11157_v54, %v5521_v47  ;;  %v5919_v4 = vmax.f32 %v5791_v56, 0.0  ;;  %v5921_v17 = vmax.f32 %v5793_v25, 0.0  ;;  %v10726_v54 = vld [vmem:[%s8852_s15 + $0x180] sm:$0xff] }
 0x4c7   : > { %v5795_v1 = vadd.f32 %v11158_v63, %v5330_v20  ;;  %v5797_v23 = vadd.f32 %v11159_v39, %v5523_v0  ;;  %v11160_v28 = vunpack.c.h.bf16 %v10412_v36  ;;  %v11161_v8 = vunpack.c.h.bf16 %v10416_v24  ;;  %v10730_v20 = vld [vmem:[%s8852_s15 + $0x188] sm:$0xff] }
 0x4c8   : > { %v5920_v37 = vmax.f32 %v5792_v16, 0.0  ;;  %v5922_v21 = vmax.f32 %v5794_v50, 0.0  ;;  %v5703_v56 = vunpack.c.l.bf16 %v10726_v54  ;;  %v5705_v0 = vunpack.c.l.bf16 %v10730_v20  ;;  %v5335_v50 = vpop.f32.mrb[240].mxu1 }
 0x4c9   : > { %v5796_v35 = vadd.f32 %v11160_v28, %v5332_v7  ;;  %v5798_v47 = vadd.f32 %v11161_v8, %v5525_v3  ;;  %v5923_v53 = vmax.f32 %v5795_v1, 0.0  ;;  %v5925_v18 = vmax.f32 %v5797_v23, 0.0  ;;  %v5528_v7 = vpop.f32.mrb[240].mxu0  ;;  %v5337_v63 = vpop.f32.mrb[241].mxu1 }
 0x4ca   : > { %v7078_v25 = vpack.c.bf16 %v5920_v37, %v5919_v4  ;;  %v7079_v27 = vpack.c.bf16 %v5922_v21, %v5921_v17  ;;  %v5336_v24 = vadd.f32 %v5335_v50, %v10253_v48  ;;  %v5529_v3 = vadd.f32 %v5528_v7, %v10264_v19  ;;  %v5530_v1 = vpop.f32.mrb[241].mxu0  ;;  %v5339_v28 = vpop.f32.mrb[242].mxu1 }
 0x4cb   : > { %v5924_v16 = vmax.f32 %v5796_v35, 0.0  ;;  %v5926_v36 = vmax.f32 %v5798_v47, 0.0  ;;  %v5338_v37 = vadd.f32 %v5337_v63, %v10266_v44  ;;  %v5531_v21 = vadd.f32 %v5530_v1, %v10273_v41  ;;  %v5532_v35 = vpop.f32.mrb[242].mxu0 }
 0x4cc   : > { %6403 = vst [vmem:[%s10469_s29 + $0xe0] sm:$0xff] %v7078_v25  ;;  %6404 = vst [vmem:[%s10469_s29 + $0xe8] sm:$0xff] %v7079_v27  ;;  %v11162_v8 = vunpack.c.l.bf16 %v10424_v14  ;;  %v11163_v50 = vunpack.c.l.bf16 %v10428_v6  ;;  %v5340_v39 = vadd.f32 %v5339_v28, %v10253_v48  ;;  %v5533_v23 = vadd.f32 %v5532_v35, %v10264_v19  ;;  %v5341_v25 = vpop.f32.mrb[243].mxu1  ;;  %v5534_v27 = vpop.f32.mrb[243].mxu0 }
 0x4cd   : > { %v7080_v4 = vpack.c.bf16 %v5924_v16, %v5923_v53  ;;  %v7081_v17 = vpack.c.bf16 %v5926_v36, %v5925_v18  ;;  %v11164_v53 = vunpack.c.h.bf16 %v10424_v14  ;;  %v11165_v16 = vunpack.c.h.bf16 %v10428_v6 }
 0x4ce   : > { %v5799_v47 = vadd.f32 %v11162_v8, %v5336_v24  ;;  %v5801_v7 = vadd.f32 %v11163_v50, %v5529_v3  ;;  %v5342_v24 = vadd.f32 %v5341_v25, %v10266_v44  ;;  %v5535_v3 = vadd.f32 %v5534_v27, %v10273_v41  ;;  %v10764_v8 = vld [vmem:[%s8852_s15 + $0x190] sm:$0xff] }
 0x4cf   : > { %6405 = vst [vmem:[%s10469_s29 + $0xf0] sm:$0xff] %v7080_v4  ;;  %6406 = vst [vmem:[%s10469_s29 + $0xf8] sm:$0xff] %v7081_v17  ;;  %v5800_v18 = vadd.f32 %v11164_v53, %v5338_v37  ;;  %v5802_v36 = vadd.f32 %v11165_v16, %v5531_v21  ;;  %v5803_v28 = vadd.f32 %v5675_v43, %v5340_v39  ;;  %v10768_v43 = vld [vmem:[%s8852_s15 + $0x198] sm:$0xff]  ;;  %v5708_v53 = vunpack.c.h.bf16 %v10764_v8 }
 0x4d0   : > { %v5927_v63 = vmax.f32 %v5799_v47, 0.0  ;;  %v5929_v1 = vmax.f32 %v5801_v7, 0.0  ;;  %v5805_v4 = vadd.f32 %v5677_v46, %v5533_v23  ;;  %v5804_v14 = vadd.f32 %v5676_v52, %v5342_v24  ;;  %v5345_v52 = vpop.f32.mrb[244].mxu1  ;;  %v5538_v7 = vpop.f32.mrb[244].mxu0 }
 0x4d1   : > { %v5928_v17 = vmax.f32 %v5800_v18, 0.0  ;;  %v5930_v35 = vmax.f32 %v5802_v36, 0.0  ;;  %v5806_v6 = vadd.f32 %v5678_v9, %v5535_v3  ;;  %v5931_v37 = vmax.f32 %v5803_v28, 0.0  ;;  %v5347_v25 = vpop.f32.mrb[245].mxu1  ;;  %v5540_v27 = vpop.f32.mrb[245].mxu0 }
 0x4d2   : > { %v5933_v21 = vmax.f32 %v5805_v4, 0.0  ;;  %v5707_v47 = vunpack.c.l.bf16 %v10764_v8  ;;  %v5709_v46 = vunpack.c.l.bf16 %v10768_v43  ;;  %v5932_v50 = vmax.f32 %v5804_v14, 0.0 }
 0x4d3   : > { %v7082_v39 = vpack.c.bf16 %v5928_v17, %v5927_v63  ;;  %v7083_v23 = vpack.c.bf16 %v5930_v35, %v5929_v1  ;;  %v5934_v58 = vmax.f32 %v5806_v6, 0.0  ;;  %v5346_v12 = vadd.f32 %v5345_v52, %v10253_v48  ;;  %v5349_v63 = vpop.f32.mrb[246].mxu1  ;;  %v5542_v1 = vpop.f32.mrb[246].mxu0 }
 0x4d4   : > { %v5539_v9 = vadd.f32 %v5538_v7, %v10264_v19  ;;  %v5710_v18 = vunpack.c.h.bf16 %v10768_v43  ;;  %v7084_v16 = vpack.c.bf16 %v5932_v50, %v5931_v37  ;;  %v5348_v24 = vadd.f32 %v5347_v25, %v10266_v44  ;;  %v5351_v14 = vpop.f32.mrb[247].mxu1  ;;  %v5544_v6 = vpop.f32.mrb[247].mxu0  ;;  %v10802_v25 = vld [vmem:[%s8852_s15 + $0x1a0] sm:$0xff] }
 0x4d5   : > { %6407 = vst [vmem:[%s10469_s29 + $0x100] sm:$0xff] %v7082_v39  ;;  %6408 = vst [vmem:[%s10469_s29 + $0x108] sm:$0xff] %v7083_v23  ;;  %v7085_v36 = vpack.c.bf16 %v5934_v58, %v5933_v21  ;;  %v5541_v3 = vadd.f32 %v5540_v27, %v10273_v41  ;;  %v5807_v28 = vadd.f32 %v5679_v42, %v5346_v12  ;;  %v11166_v55 = vunpack.c.h.bf16 %v10536_v29 }
 0x4d6   : > { %v5809_v4 = vadd.f32 %v5681_v34, %v5539_v9  ;;  %v5350_v17 = vadd.f32 %v5349_v63, %v10253_v48  ;;  %v5543_v35 = vadd.f32 %v5542_v1, %v10264_v19  ;;  %6409 = vst [vmem:[%s10469_s29 + $0x110] sm:$0xff] %v7084_v16  ;;  %v5808_v37 = vadd.f32 %v5680_v26, %v5348_v24  ;;  %v5548_v63 = vpop.f32.mrb[248].mxu0 }
 0x4d7   : > { %6410 = vst [vmem:[%s10469_s29 + $0x118] sm:$0xff] %v7085_v36  ;;  %v5810_v21 = vadd.f32 %v5682_v31, %v5541_v3  ;;  %v5352_v42 = vadd.f32 %v5351_v14, %v10266_v44  ;;  %v5545_v34 = vadd.f32 %v5544_v6, %v10273_v41  ;;  %v5935_v39 = vmax.f32 %v5807_v28, 0.0  ;;  %v5355_v3 = vpop.f32.mrb[248].mxu1 }
 0x4d8   : > { %v5937_v23 = vmax.f32 %v5809_v4, 0.0  ;;  %v5811_v50 = vadd.f32 %v5683_v2, %v5350_v17  ;;  %v5813_v58 = vadd.f32 %v5685_v32, %v5543_v35  ;;  %v5936_v52 = vmax.f32 %v5808_v37, 0.0  ;;  %v10806_v2 = vld [vmem:[%s8852_s15 + $0x1a8] sm:$0xff]  ;;  %v5357_v28 = vpop.f32.mrb[249].mxu1  ;;  %v5550_v4 = vpop.f32.mrb[249].mxu0 }
 0x4d9   : > { %v5938_v7 = vmax.f32 %v5810_v21, 0.0  ;;  %v5812_v26 = vadd.f32 %v11166_v55, %v5352_v42  ;;  %v11167_v10 = vunpack.c.h.bf16 %v10540_v40  ;;  %v5711_v27 = vunpack.c.l.bf16 %v10802_v25  ;;  %v5359_v42 = vpop.f32.mrb[250].mxu1 }
 0x4da   : > { %v5939_v12 = vmax.f32 %v5811_v50, 0.0  ;;  %v5941_v9 = vmax.f32 %v5813_v58, 0.0  ;;  %v5713_v32 = vunpack.c.l.bf16 %v10806_v2  ;;  %v7086_v16 = vpack.c.bf16 %v5936_v52, %v5935_v39  ;;  %v5361_v52 = vpop.f32.mrb[251].mxu1 }
 0x4db   : > { %v5814_v31 = vadd.f32 %v11167_v10, %v5545_v34  ;;  %v7087_v36 = vpack.c.bf16 %v5938_v7, %v5937_v23  ;;  %v5940_v24 = vmax.f32 %v5812_v26, 0.0  ;;  %v5356_v40 = vadd.f32 %v5355_v3, %v10253_v48  ;;  %v5552_v34 = vpop.f32.mrb[250].mxu0 }
 0x4dc   : > { %v5549_v1 = vadd.f32 %v5548_v63, %v10264_v19  ;;  %v5712_v17 = vunpack.c.h.bf16 %v10802_v25  ;;  %v5714_v35 = vunpack.c.h.bf16 %v10806_v2  ;;  %6411 = vst [vmem:[%s10469_s29 + $0x120] sm:$0xff] %v7086_v16  ;;  %v5358_v37 = vadd.f32 %v5357_v28, %v10266_v44  ;;  %v5554_v7 = vpop.f32.mrb[251].mxu0  ;;  %v10840_v28 = vld [vmem:[%s8852_s15 + $0x1b0] sm:$0xff] }
 0x4dd   : > { %v5942_v29 = vmax.f32 %v5814_v31, 0.0  ;;  %6412 = vst [vmem:[%s10469_s29 + $0x128] sm:$0xff] %v7087_v36  ;;  %v7088_v14 = vpack.c.bf16 %v5940_v24, %v5939_v12  ;;  %v5551_v21 = vadd.f32 %v5550_v4, %v10273_v41  ;;  %v5815_v39 = vadd.f32 %v5687_v59, %v5356_v40 }
 0x4de   : > { %v5817_v23 = vadd.f32 %v5689_v30, %v5549_v1  ;;  %v5360_v50 = vadd.f32 %v5359_v42, %v10253_v48  ;;  %v5553_v58 = vadd.f32 %v5552_v34, %v10264_v19  ;;  %v11168_v55 = vunpack.c.h.bf16 %v10574_v51  ;;  %v5558_v42 = vpop.f32.mrb[252].mxu0 }
 0x4df   : > { %v7089_v6 = vpack.c.bf16 %v5942_v29, %v5941_v9  ;;  %6413 = vst [vmem:[%s10469_s29 + $0x130] sm:$0xff] %v7088_v14  ;;  %v11169_v10 = vunpack.c.h.bf16 %v10578_v38  ;;  %v5362_v59 = vadd.f32 %v5361_v52, %v10266_v44  ;;  %v5555_v30 = vadd.f32 %v5554_v7, %v10273_v41 }
 0x4e0   : > { %v5816_v26 = vadd.f32 %v11168_v55, %v5358_v37  ;;  %v5943_v12 = vmax.f32 %v5815_v39, 0.0  ;;  %v5945_v9 = vmax.f32 %v5817_v23, 0.0  ;;  %v5819_v16 = vadd.f32 %v5691_v45, %v5360_v50  ;;  %v10844_v45 = vld [vmem:[%s8852_s15 + $0x1b8] sm:$0xff]  ;;  %v5560_v23 = vpop.f32.mrb[253].mxu0 }
 0x4e1   : > { %6414 = vst [vmem:[%s10469_s29 + $0x138] sm:$0xff] %v7089_v6  ;;  %v5818_v31 = vadd.f32 %v11169_v10, %v5551_v21  ;;  %v5821_v36 = vadd.f32 %v5693_v49, %v5553_v58  ;;  %v11170_v51 = vunpack.c.h.bf16 %v10612_v57  ;;  %v11171_v38 = vunpack.c.h.bf16 %v10616_v15  ;;  %v5365_v21 = vpop.f32.mrb[252].mxu1 }
 0x4e2   : > { %v5944_v24 = vmax.f32 %v5816_v26, 0.0  ;;  %v5947_v40 = vmax.f32 %v5819_v16, 0.0  ;;  %v5715_v4 = vunpack.c.l.bf16 %v10840_v28  ;;  %v5717_v49 = vunpack.c.l.bf16 %v10844_v45  ;;  %v5367_v39 = vpop.f32.mrb[253].mxu1 }
 0x4e3   : > { %v5946_v29 = vmax.f32 %v5818_v31, 0.0  ;;  %v5820_v3 = vadd.f32 %v11170_v51, %v5362_v59  ;;  %v5822_v63 = vadd.f32 %v11171_v38, %v5555_v30  ;;  %v5949_v1 = vmax.f32 %v5821_v36, 0.0  ;;  %v5369_v10 = vpop.f32.mrb[254].mxu1  ;;  %v5562_v31 = vpop.f32.mrb[254].mxu0 }
 0x4e4   : > { %v7090_v14 = vpack.c.bf16 %v5944_v24, %v5943_v12  ;;  %v5366_v15 = vadd.f32 %v5365_v21, %v10253_v48  ;;  %v5559_v34 = vadd.f32 %v5558_v42, %v10264_v19  ;;  %v5716_v50 = vunpack.c.h.bf16 %v10840_v28  ;;  %v5371_v16 = vpop.f32.mrb[255].mxu1  ;;  %v5564_v36 = vpop.f32.mrb[255].mxu0 }
 0x4e5   : > { %v7091_v6 = vpack.c.bf16 %v5946_v29, %v5945_v9  ;;  %v5948_v37 = vmax.f32 %v5820_v3, 0.0  ;;  %v5950_v57 = vmax.f32 %v5822_v63, 0.0  ;;  %v5718_v58 = vunpack.c.h.bf16 %v10844_v45 }
 0x4e6   : > { %6415 = vst [vmem:[%s10469_s29 + $0x140] sm:$0xff] %v7090_v14  ;;  %v5368_v55 = vadd.f32 %v5367_v39, %v10266_v44  ;;  %v5561_v26 = vadd.f32 %v5560_v23, %v10273_v41  ;;  %v5823_v59 = vadd.f32 %v5695_v61, %v5366_v15  ;;  %v5825_v30 = vadd.f32 %v5697_v22, %v5559_v34  ;;  %v10878_v15 = vld [vmem:[%s8852_s15 + $0x1c0] sm:$0xff] }
 0x4e7   : > { %6416 = vst [vmem:[%s10469_s29 + $0x148] sm:$0xff] %v7091_v6  ;;  %v7092_v52 = vpack.c.bf16 %v5948_v37, %v5947_v40  ;;  %v7093_v7 = vpack.c.bf16 %v5950_v57, %v5949_v1  ;;  %v5370_v12 = vadd.f32 %v5369_v10, %v10253_v48  ;;  %v5563_v9 = vadd.f32 %v5562_v31, %v10264_v19 }
 0x4e8   : > { %v11172_v24 = vunpack.c.h.bf16 %v10650_v5  ;;  %v11173_v51 = vunpack.c.h.bf16 %v10654_v33  ;;  %v5372_v61 = vadd.f32 %v5371_v16, %v10266_v44  ;;  %v5565_v22 = vadd.f32 %v5564_v36, %v10273_v41 }
 0x4e9   : > { %6417 = vst [vmem:[%s10469_s29 + $0x150] sm:$0xff] %v7092_v52  ;;  %6418 = vst [vmem:[%s10469_s29 + $0x158] sm:$0xff] %v7093_v7  ;;  %v5951_v38 = vmax.f32 %v5823_v59, 0.0  ;;  %v5953_v63 = vmax.f32 %v5825_v30, 0.0  ;;  %v5827_v40 = vadd.f32 %v5699_v11, %v5370_v12  ;;  %v5829_v1 = vadd.f32 %v5701_v13, %v5563_v9  ;;  %v10882_v11 = vld [vmem:[%s8852_s15 + $0x1c8] sm:$0xff]  ;;  %v5375_v7 = vpop.f32.mrb[0].mxu1 }
 0x4ea   : > { %v5824_v29 = vadd.f32 %v11172_v24, %v5368_v55  ;;  %v5826_v3 = vadd.f32 %v11173_v51, %v5561_v26  ;;  %v11174_v5 = vunpack.c.h.bf16 %v10688_v62  ;;  %v11175_v33 = vunpack.c.h.bf16 %v10692_v60  ;;  %v5568_v55 = vpop.f32.mrb[0].mxu0  ;;  %v5377_v10 = vpop.f32.mrb[1].mxu1 }
 0x4eb   : > { %v5955_v21 = vmax.f32 %v5827_v40, 0.0  ;;  %v5957_v42 = vmax.f32 %v5829_v1, 0.0  ;;  %v5719_v34 = vunpack.c.l.bf16 %v10878_v15  ;;  %v5721_v13 = vunpack.c.l.bf16 %v10882_v11  ;;  %v5570_v31 = vpop.f32.mrb[1].mxu0  ;;  %v5379_v24 = vpop.f32.mrb[2].mxu1 }
 0x4ec   : > { %v5952_v14 = vmax.f32 %v5824_v29, 0.0  ;;  %v5954_v6 = vmax.f32 %v5826_v3, 0.0  ;;  %v5828_v37 = vadd.f32 %v11174_v5, %v5372_v61  ;;  %v5830_v57 = vadd.f32 %v11175_v33, %v5565_v22  ;;  %v5572_v29 = vpop.f32.mrb[2].mxu0 }
 0x4ed   : > { %v5376_v60 = vadd.f32 %v5375_v7, %v10253_v48  ;;  %v5569_v26 = vadd.f32 %v5568_v55, %v10264_v19  ;;  %v5720_v59 = vunpack.c.h.bf16 %v10878_v15  ;;  %v5722_v30 = vunpack.c.h.bf16 %v10882_v11 }
 0x4ee   : > { %v7094_v39 = vpack.c.bf16 %v5952_v14, %v5951_v38  ;;  %v7095_v23 = vpack.c.bf16 %v5954_v6, %v5953_v63  ;;  %v5956_v52 = vmax.f32 %v5828_v37, 0.0  ;;  %v5958_v62 = vmax.f32 %v5830_v57, 0.0  ;;  %v5381_v38 = vpop.f32.mrb[3].mxu1  ;;  %v5574_v63 = vpop.f32.mrb[3].mxu0 }
 0x4ef   : > { %v5378_v16 = vadd.f32 %v5377_v10, %v10266_v44  ;;  %v5571_v36 = vadd.f32 %v5570_v31, %v10273_v41  ;;  %v5831_v51 = vadd.f32 %v5703_v56, %v5376_v60  ;;  %v5833_v3 = vadd.f32 %v5705_v0, %v5569_v26  ;;  %v5578_v26 = vpop.f32.mrb[4].mxu0 }
 0x4f0   : > { %6419 = vst [vmem:[%s10469_s29 + $0x160] sm:$0xff] %v7094_v39  ;;  %6420 = vst [vmem:[%s10469_s29 + $0x168] sm:$0xff] %v7095_v23  ;;  %v7096_v12 = vpack.c.bf16 %v5956_v52, %v5955_v21  ;;  %v7097_v9 = vpack.c.bf16 %v5958_v62, %v5957_v42  ;;  %v5380_v61 = vadd.f32 %v5379_v24, %v10253_v48  ;;  %v11176_v40 = vunpack.c.h.bf16 %v10726_v54  ;;  %v10916_v52 = vld [vmem:[%s8852_s15 + $0x1d0] sm:$0xff]  ;;  %v5580_v31 = vpop.f32.mrb[5].mxu0 }
 0x4f1   : > { %v5573_v22 = vadd.f32 %v5572_v29, %v10264_v19  ;;  %v11177_v14 = vunpack.c.h.bf16 %v10730_v20  ;;  %v5382_v56 = vadd.f32 %v5381_v38, %v10266_v44  ;;  %v5575_v0 = vadd.f32 %v5574_v63, %v10273_v41 }
 0x4f2   : > { %6421 = vst [vmem:[%s10469_s29 + $0x170] sm:$0xff] %v7096_v12  ;;  %6422 = vst [vmem:[%s10469_s29 + $0x178] sm:$0xff] %v7097_v9  ;;  %v5832_v1 = vadd.f32 %v11176_v40, %v5378_v16  ;;  %v5959_v5 = vmax.f32 %v5831_v51, 0.0  ;;  %v5961_v37 = vmax.f32 %v5833_v3, 0.0  ;;  %v5835_v33 = vadd.f32 %v5707_v47, %v5380_v61  ;;  %v10920_v47 = vld [vmem:[%s8852_s15 + $0x1d8] sm:$0xff]  ;;  %v5582_v3 = vpop.f32.mrb[6].mxu0 }
 0x4f3   : > { %v5834_v6 = vadd.f32 %v11177_v14, %v5571_v36  ;;  %v5837_v57 = vadd.f32 %v5709_v46, %v5573_v22  ;;  %v5836_v54 = vadd.f32 %v5708_v53, %v5382_v56  ;;  %v5838_v20 = vadd.f32 %v5710_v18, %v5575_v0  ;;  %v5385_v53 = vpop.f32.mrb[4].mxu1 }
 0x4f4   : > { %v5960_v21 = vmax.f32 %v5832_v1, 0.0  ;;  %v5963_v39 = vmax.f32 %v5835_v33, 0.0  ;;  %v5723_v62 = vunpack.c.l.bf16 %v10916_v52  ;;  %v5725_v46 = vunpack.c.l.bf16 %v10920_v47  ;;  %v5387_v10 = vpop.f32.mrb[5].mxu1  ;;  %v5584_v1 = vpop.f32.mrb[7].mxu0 }
 0x4f5   : > { %v5962_v42 = vmax.f32 %v5834_v6, 0.0  ;;  %v5965_v23 = vmax.f32 %v5837_v57, 0.0  ;;  %v5964_v60 = vmax.f32 %v5836_v54, 0.0  ;;  %v5966_v8 = vmax.f32 %v5838_v20, 0.0  ;;  %v5389_v51 = vpop.f32.mrb[6].mxu1 }
 0x4f6   : > { %v7098_v7 = vpack.c.bf16 %v5960_v21, %v5959_v5  ;;  %v5386_v43 = vadd.f32 %v5385_v53, %v10253_v48  ;;  %v5579_v18 = vadd.f32 %v5578_v26, %v10264_v19  ;;  %v5724_v12 = vunpack.c.h.bf16 %v10916_v52  ;;  %v5391_v40 = vpop.f32.mrb[7].mxu1  ;;  %v10954_v21 = vld [vmem:[%s8852_s15 + $0x1e0] sm:$0xff] }
 0x4f7   : > { %v7099_v55 = vpack.c.bf16 %v5962_v42, %v5961_v37  ;;  %v5726_v9 = vunpack.c.h.bf16 %v10920_v47  ;;  %v7100_v16 = vpack.c.bf16 %v5964_v60, %v5963_v39  ;;  %v7101_v36 = vpack.c.bf16 %v5966_v8, %v5965_v23  ;;  %v5588_v23 = vpop.f32.mrb[8].mxu0 }
 0x4f8   : > { %6423 = vst [vmem:[%s10469_s29 + $0x180] sm:$0xff] %v7098_v7  ;;  %v5388_v24 = vadd.f32 %v5387_v10, %v10266_v44  ;;  %v5581_v29 = vadd.f32 %v5580_v31, %v10273_v41  ;;  %v5839_v61 = vadd.f32 %v5711_v27, %v5386_v43  ;;  %v5841_v22 = vadd.f32 %v5713_v32, %v5579_v18 }
 0x4f9   : > { %6424 = vst [vmem:[%s10469_s29 + $0x188] sm:$0xff] %v7099_v55  ;;  %v5390_v38 = vadd.f32 %v5389_v51, %v10253_v48  ;;  %v5583_v63 = vadd.f32 %v5582_v3, %v10264_v19  ;;  %6425 = vst [vmem:[%s10469_s29 + $0x190] sm:$0xff] %v7100_v16  ;;  %v5392_v27 = vadd.f32 %v5391_v40, %v10266_v44  ;;  %v5727_v42 = vunpack.c.l.bf16 %v10954_v21  ;;  %v5590_v55 = vpop.f32.mrb[9].mxu0 }
 0x4fa   : > { %6426 = vst [vmem:[%s10469_s29 + $0x198] sm:$0xff] %v7101_v36  ;;  %v5840_v14 = vadd.f32 %v5712_v17, %v5388_v24  ;;  %v5842_v6 = vadd.f32 %v5714_v35, %v5581_v29  ;;  %v5585_v32 = vadd.f32 %v5584_v1, %v10273_v41  ;;  %v5967_v56 = vmax.f32 %v5839_v61, 0.0  ;;  %v5592_v31 = vpop.f32.mrb[10].mxu0 }
 0x4fb   : > { %v5969_v0 = vmax.f32 %v5841_v22, 0.0  ;;  %v5843_v5 = vadd.f32 %v5715_v4, %v5390_v38  ;;  %v5845_v37 = vadd.f32 %v5717_v49, %v5583_v63  ;;  %v5844_v25 = vadd.f32 %v5716_v50, %v5392_v27  ;;  %v10958_v4 = vld [vmem:[%s8852_s15 + $0x1e8] sm:$0xff]  ;;  %v5395_v50 = vpop.f32.mrb[8].mxu1  ;;  %v5594_v3 = vpop.f32.mrb[11].mxu0  ;;  %v8403_v27 = vld [vmem:[%s8852_s15 + $0x1f0] sm:$0xff] }
 0x4fc   : > { %v5968_v33 = vmax.f32 %v5840_v14, 0.0  ;;  %v5970_v57 = vmax.f32 %v5842_v6, 0.0  ;;  %v5846_v2 = vadd.f32 %v5718_v58, %v5585_v32  ;;  %v5729_v49 = vunpack.c.l.bf16 %v10958_v4  ;;  %v5397_v7 = vpop.f32.mrb[9].mxu1 }
 0x4fd   : > { %v5971_v17 = vmax.f32 %v5843_v5, 0.0  ;;  %v5973_v35 = vmax.f32 %v5845_v37, 0.0  ;;  %v5972_v39 = vmax.f32 %v5844_v25, 0.0  ;;  %v5396_v45 = vadd.f32 %v5395_v50, %v10253_v48  ;;  %v5399_v10 = vpop.f32.mrb[10].mxu1 }
 0x4fe   : > { %v7102_v54 = vpack.c.bf16 %v5968_v33, %v5967_v56  ;;  %v7103_v20 = vpack.c.bf16 %v5970_v57, %v5969_v0  ;;  %v5974_v28 = vmax.f32 %v5846_v2, 0.0  ;;  %v5589_v58 = vadd.f32 %v5588_v23, %v10264_v19  ;;  %v5401_v51 = vpop.f32.mrb[11].mxu1  ;;  %v8404_v56 = vld [vmem:[%s8852_s15 + $0x1f8] sm:$0xff]  ;;  %v5598_v57 = vpop.f32.mrb[12].mxu0 }
 0x4ff   : > { %v5728_v60 = vunpack.c.h.bf16 %v10954_v21  ;;  %v5730_v8 = vunpack.c.h.bf16 %v10958_v4  ;;  %v7104_v53 = vpack.c.bf16 %v5972_v39, %v5971_v17  ;;  %v5398_v43 = vadd.f32 %v5397_v7, %v10266_v44  ;;  %v5405_v33 = vpop.f32.mrb[12].mxu1 }
 0x500   : > { %6427 = vst [vmem:[%s10469_s29 + $0x1a0] sm:$0xff] %v7102_v54  ;;  %6428 = vst [vmem:[%s10469_s29 + $0x1a8] sm:$0xff] %v7103_v20  ;;  %v7105_v26 = vpack.c.bf16 %v5974_v28, %v5973_v35  ;;  %v5591_v18 = vadd.f32 %v5590_v55, %v10273_v41  ;;  %v5847_v16 = vadd.f32 %v5719_v34, %v5396_v45  ;;  %v5731_v32 = vunpack.c.l.bf16 %v8403_v27  ;;  %v5407_v47 = vpop.f32.mrb[13].mxu1 }
 0x501   : > { %v5849_v36 = vadd.f32 %v5721_v13, %v5589_v58  ;;  %v5400_v24 = vadd.f32 %v5399_v10, %v10253_v48  ;;  %v5593_v29 = vadd.f32 %v5592_v31, %v10264_v19  ;;  %6429 = vst [vmem:[%s10469_s29 + $0x1b0] sm:$0xff] %v7104_v53  ;;  %v5848_v61 = vadd.f32 %v5720_v59, %v5398_v43  ;;  %v5409_v39 = vpop.f32.mrb[14].mxu1 }
 0x502   : > { %6430 = vst [vmem:[%s10469_s29 + $0x1b8] sm:$0xff] %v7105_v26  ;;  %v5850_v22 = vadd.f32 %v5722_v30, %v5591_v18  ;;  %v5402_v34 = vadd.f32 %v5401_v51, %v10266_v44  ;;  %v5595_v13 = vadd.f32 %v5594_v3, %v10273_v41  ;;  %v5975_v38 = vmax.f32 %v5847_v16, 0.0  ;;  %v5411_v7 = vpop.f32.mrb[15].mxu1 }
 0x503   : > { %v5977_v63 = vmax.f32 %v5849_v36, 0.0  ;;  %v5851_v40 = vadd.f32 %v5723_v62, %v5400_v24  ;;  %v5853_v1 = vadd.f32 %v5725_v46, %v5593_v29  ;;  %v5976_v14 = vmax.f32 %v5848_v61, 0.0 }
 0x504   : > { %v5978_v6 = vmax.f32 %v5850_v22, 0.0  ;;  %v5852_v15 = vadd.f32 %v5724_v12, %v5402_v34  ;;  %v5854_v11 = vadd.f32 %v5726_v9, %v5595_v13  ;;  %v5733_v0 = vunpack.c.l.bf16 %v8404_v56  ;;  %v5600_v9 = vpop.f32.mrb[13].mxu0 }
 0x505   : > { %v5979_v59 = vmax.f32 %v5851_v40, 0.0  ;;  %v5981_v30 = vmax.f32 %v5853_v1, 0.0  ;;  %v7106_v62 = vpack.c.bf16 %v5976_v14, %v5975_v38  ;;  %v5406_v52 = vadd.f32 %v5405_v33, %v10253_v48  ;;  %v5602_v28 = vpop.f32.mrb[14].mxu0 }
 0x506   : > { %v7107_v5 = vpack.c.bf16 %v5978_v6, %v5977_v63  ;;  %v5980_v37 = vmax.f32 %v5852_v15, 0.0  ;;  %v5982_v46 = vmax.f32 %v5854_v11, 0.0  ;;  %v5599_v12 = vadd.f32 %v5598_v57, %v10264_v19  ;;  %v5604_v55 = vpop.f32.mrb[15].mxu0 }
 0x507   : > { %v5732_v25 = vunpack.c.h.bf16 %v8403_v27  ;;  %v5734_v2 = vunpack.c.h.bf16 %v8404_v56  ;;  %6431 = vst [vmem:[%s10469_s29 + $0x1c0] sm:$0xff] %v7106_v62  ;;  %v5408_v54 = vadd.f32 %v5407_v47, %v10266_v44  ;;  %v5601_v20 = vadd.f32 %v5600_v9, %v10273_v41 }
 0x508   : > { %6432 = vst [vmem:[%s10469_s29 + $0x1c8] sm:$0xff] %v7107_v5  ;;  %v7108_v17 = vpack.c.bf16 %v5980_v37, %v5979_v59  ;;  %v7109_v35 = vpack.c.bf16 %v5982_v46, %v5981_v30  ;;  %v5855_v50 = vadd.f32 %v5727_v42, %v5406_v52  ;;  %v5857_v23 = vadd.f32 %v5729_v49, %v5599_v12 }
 0x509   : > { %v5410_v45 = vadd.f32 %v5409_v39, %v10253_v48  ;;  %v5603_v58 = vadd.f32 %v5602_v28, %v10264_v19  ;;  %v5856_v53 = vadd.f32 %v5728_v60, %v5408_v54  ;;  %v5858_v26 = vadd.f32 %v5730_v8, %v5601_v20 }
 0x50a   : > { %6433 = vst [vmem:[%s10469_s29 + $0x1d0] sm:$0xff] %v7108_v17  ;;  %6434 = vst [vmem:[%s10469_s29 + $0x1d8] sm:$0xff] %v7109_v35  ;;  %v5412_v42 = vadd.f32 %v5411_v7, %v10266_v44  ;;  %v5605_v49 = vadd.f32 %v5604_v55, %v10273_v41  ;;  %v5983_v43 = vmax.f32 %v5855_v50, 0.0  ;;  %v5985_v48 = vmax.f32 %v5857_v23, 0.0 }
 0x50b   : > { %v5859_v18 = vadd.f32 %v5731_v32, %v5410_v45  ;;  %v5861_v19 = vadd.f32 %v5733_v0, %v5603_v58  ;;  %v5984_v10 = vmax.f32 %v5856_v53, 0.0  ;;  %v5986_v31 = vmax.f32 %v5858_v26, 0.0 }
 0x50c   : > { %v5860_v16 = vadd.f32 %v5732_v25, %v5412_v42  ;;  %v5862_v36 = vadd.f32 %v5734_v2, %v5605_v49 }
 0x50d   : > { %v5987_v21 = vmax.f32 %v5859_v18, 0.0  ;;  %v5989_v4 = vmax.f32 %v5861_v19, 0.0  ;;  %v7110_v44 = vpack.c.bf16 %v5984_v10, %v5983_v43  ;;  %v7111_v41 = vpack.c.bf16 %v5986_v31, %v5985_v48 }
 0x50e   : > { %v5988_v60 = vmax.f32 %v5860_v16, 0.0  ;;  %v5990_v8 = vmax.f32 %v5862_v36, 0.0 }
 0x50f   : > { %6435 = vst [vmem:[%s10469_s29 + $0x1e0] sm:$0xff] %v7110_v44  ;;  %6436 = vst [vmem:[%s10469_s29 + $0x1e8] sm:$0xff] %v7111_v41 }
 0x510   : > { %v7112_v24 = vpack.c.bf16 %v5988_v60, %v5987_v21  ;;  %v7113_v29 = vpack.c.bf16 %v5990_v8, %v5989_v4 }
 0x512   : > { %6437 = vst [vmem:[%s10469_s29 + $0x1f0] sm:$0xff] %v7112_v24  ;;  %6438 = vst [vmem:[%s10469_s29 + $0x1f8] sm:$0xff] %v7113_v29 }
 0x513   : > { %8532 = shalt.err (!%p8529_p4)
}
 0x514   : > { %s8533_s17 = scalar_lea.hbm %s11018_s9, 8192  ;;  %s8537_s16 = scalar_lea.hbm %s11075_s7, 16384 }
 0x515   : > { %p8534_p9 = scmp.ne.s32.totalorder %s11018_s9, %s8533_s17  ;;  %p8538_p8 = scmp.lt.u32.totalorder %s11018_s9, %s11075_s7 }
 0x516   : > { %p8539_p13 = scmp.lt.u32.totalorder %s8537_s16, %s8533_s17  ;;  %p8541_p10 = scmp.lt.u32.totalorder %s8533_s17, %s11018_s9 }
 0x517   : > { %p8535_p0 = pnand %p8534_p9, %p8795_p5 }
 0x518   : > { %p8540_p6 = por %p8539_p13, %p8538_p8 }
 0x519   : > { %p8536_p11 = pneg %p8535_p0 }
 0x51a   : > { %p8542_p3 = por %p8541_p10, %p8540_p6 }
 0x51c   : > { %p8543_p7 = pnand %p8542_p3, %p8536_p11 }
 0x51e   : > { %8546 = shalt.err (!%p8543_p7)
}
 0x51f   : > { %s8605_s15 = smov 256   ;;  %s8606_s30 = smov 16  }
 0x520   : > { %7889 = dma.vmem_to_hbm [thread:$0]  (%p8795_p5), %s11020_s11, 8192, %s11018_s9, %s6440_s28, %s8605_s15, %s8605_s15, %s8606_s30  }
 0x521 PF: > { %s11178_s14 = sld [smem:[#allocation16_spill]]  ;;  %s6468_s22 = sand.u32 1, %s8581_s24  }
 0x522   : > { %p11180_p2 = scmp.ge.s32.totalorder %s8593_s27, 2  ;;  %s6469_s10 = scalar_lea.sflag [#allocation5], %s6468_s22 }
 0x527   : > { %p11179_p12 = scmp.ne.s32.totalorder %s11178_s14, 0 }
 0x529   : > { %p7906_p1 = pnand %p11180_p2, %p11179_p12 }
 0x52b   : > { %8576 = dma.done.wait (!%p7906_p1), %s6469_s10, 8192  }
 0x52c   : > { %8578 = vsyncadd (!%p7906_p1), %s6469_s10, 4294959104  ;;  %p22_p4 = scmp.ge.s32.totalorder %s8781_s8, 4   ;;  %s11181_s24 = smov %s8585_s25 }
 0x52d   : > { %s11182_s25 = smov %s8589_s26  ;;  %s11183_s26 = smov %s8791_s19 }
 0x52e   : > { %s11184_s27 = smov %s8781_s8  ;;  %24 = sbr.rel (!%p22_p4) target bundleno = 7 (0x7), region = 108 }
 0x535   :  { %6474 = vsyncpa [#allocation4], 1 }
 0x536   :  { %6476 = vsyncpa [#allocation4 + $0x1], 1 }
 0x537   :  { %6477 = vsyncpa [#allocation7], 1 }
 0x538   :  { %6478 = vsyncpa [#allocation10], 1 }
 0x539   :  { %6479 = vsyncpa [#allocation5], 1 }
 0x53a   :  { %6481 = vsyncpa [#allocation5 + $0x1], 1 }

</bundles_post_ra>
